<compile_context>
chip_gen: v7x
topology: tpu7x:2x2x1
jax: 0.10.0
libtpu: 0.0.40
codegen_flags: <defaults>
</compile_context>

<pallas_src>
import functools

import jax
import jax.numpy as jnp
from jax import lax
from jax.experimental import pallas as pl
from jax.experimental.pallas import tpu as pltpu


# --------------------------------------------------------------------------------- helpers
def _vpu_matmul(a, b):
    """(m,k)@(k,n) with tiny static k as an unrolled VPU outer-product sum (keeps MXU free)."""
    k = a.shape[1]
    acc = a[:, 0:1] * b[0:1, :]
    for i in range(1, k):
        acc = acc + a[:, i:i + 1] * b[i:i + 1, :]
    return acc


# --------------------------------------------------------------------------------- kernel
def evolvegcno_rollout_kernel(x_ref, ahat_ref, wpack_ref, vecpack_ref,
                              pred_ref, wev_ref, wstate_ref):
    tb, n, f = x_ref.shape                 # time block, nodes, node features
    wp = wpack_ref[...]                    # (F, 7F+1) = [W_init | W_ih^T | W_hh^T | w_lin]
    vp = vecpack_ref[...]                  # (1, 7F+1) = [b_ih | b_hh | b_conv | b_lin]
    a_hat = ahat_ref[...]                  # (N, N) normalized adjacency (static graph, DMA'd once)

    @pl.when(pl.program_id(0) == 0)
    def _():
        wstate_ref[...] = wp[:, :f]        # W_0 = EvolveGCNO.initial_weight

    w_gru = wp[:, f:7 * f]                 # (F, 6F) fused [W_ih^T | W_hh^T]
    w_lin = wp[:, 7 * f:7 * f + 1]         # (F, 1)  final Linear weight
    b_gru = vp[:, :6 * f]                  # (1, 6F) fused [b_ih | b_hh]
    b_conv = vp[:, 6 * f:7 * f]            # (1, F)  GCNConv bias
    b_lin = vp[:, 7 * f:7 * f + 1]         # (1, 1)  final Linear bias

    w = wstate_ref[...]                    # carried EvolveGCN-O weight state (F, F)
    cols = []
    for i in range(tb):                    # static unroll over the Tb timesteps of this block
        # ---- 1) GRU evolution of the weight (x == h == W_{t-1}); PyTorch gate order r, z, n.
        gates = _vpu_matmul(w, w_gru) + b_gru                       # (F, 6F), one fused proj
        gi, gh = gates[:, :3 * f], gates[:, 3 * f:]
        r = jax.nn.sigmoid(gi[:, :f] + gh[:, :f])
        z = jax.nn.sigmoid(gi[:, f:2 * f] + gh[:, f:2 * f])
        cand = jnp.tanh(gi[:, 2 * f:] + r * gh[:, 2 * f:])
        w = (1.0 - z) * cand + z * w                                # evolved weight W_t

        # ---- 2) GCNConv with the evolved fixed weight, then ReLU + Linear(F -> 1).
        xw = _vpu_matmul(x_ref[i], w)                               # (N, F), VPU
        conv = jnp.dot(a_hat, xw, preferred_element_type=jnp.float32) + b_conv   # MXU
        h = jnp.maximum(conv, 0.0)                                  # ReLU
        cols.append(_vpu_matmul(h, w_lin) + b_lin)                  # (N, 1), VPU

    wstate_ref[...] = w                                             # carry state to next grid step

    @pl.when(pl.program_id(0) == pl.num_programs(0) - 1)
    def _():
        wev_ref[...] = w                                            # expose final recurrent state

    # One lane-dense (Tb, N) store per grid step instead of Tb masked (N, 1) column stores.
    pred_ref[...] = jnp.concatenate(cols, axis=1).T


# --------------------------------------------------------------------------------- packing (one-time)
def pack_params(params):
    """Pack the module's 8 parameter tensors into 2 buffers (done once)."""
    w_init, w_ih, w_hh, b_ih, b_hh, b_conv, w_lin, b_lin = params
    wpack = jnp.concatenate([w_init, w_ih.T, w_hh.T, w_lin], axis=1)             # (F, 7F+1)
    vecpack = jnp.concatenate([b_ih, b_hh, b_conv, b_lin])[None, :]              # (1, 7F+1)
    return wpack, vecpack


def pack_graph(edge_index, edge_weight, n):
    """One-time preprocessing of the static graph: dense PyG gcn_norm adjacency."""
    src = edge_index[0]
    dst = edge_index[1]
    a = jnp.zeros((n, n), jnp.float32).at[dst, src].add(edge_weight.astype(jnp.float32))
    a = a + jnp.eye(n, dtype=jnp.float32)                 # self loops, weight 1
    deg = a.sum(axis=1)
    dinv = jnp.where(deg > 0.0, lax.rsqrt(deg), 0.0)
    return dinv[:, None] * a * dinv[None, :]              # D^-1/2 (A + I) D^-1/2


# --------------------------------------------------------------------------------- wrapper
@functools.partial(jax.jit, static_argnames=("tb",))
def evolvegcno_rollout(x_seq, a_hat, wpack, vecpack, tb=8):
    """Fused T-step rollout.  Returns (predictions (T, N), final evolved weight (F, F)).

    Feeding the returned weight back into wpack[:, :F] continues the recurrence across calls.
    """
    t, n, f = x_seq.shape
    assert t % tb == 0, "T must be a multiple of the time block tb"
    preds, w_ev = pl.pallas_call(
        evolvegcno_rollout_kernel,
        out_shape=(jax.ShapeDtypeStruct((t, n), jnp.float32),
                   jax.ShapeDtypeStruct((f, f), jnp.float32)),
        grid=(t // tb,),
        in_specs=[pl.BlockSpec((tb, n, f), lambda i: (i, 0, 0)),    # x: one (Tb,N,F) block / step
                  pl.BlockSpec((n, n), lambda i: (0, 0)),           # A_hat: resident
                  pl.BlockSpec(wpack.shape, lambda i: (0, 0)),      # params: resident
                  pl.BlockSpec(vecpack.shape, lambda i: (0, 0))],
        out_specs=(pl.BlockSpec((tb, n), lambda i: (i, 0)),         # lane-dense prediction slab
                   pl.BlockSpec((f, f), lambda i: (0, 0))),         # final evolved weight
        scratch_shapes=[pltpu.VMEM((f, f), jnp.float32)],           # recurrent weight state
        compiler_params=pltpu.CompilerParams(dimension_semantics=("arbitrary",)),
    )(x_seq, a_hat, wpack, vecpack)
    return preds, w_ev


# --------------------------------------------------------------------------------- init / reference
def init_params(key, f):
    """Shapes matching EvolveGCNO(node_features=f) + Linear(f, 1)."""
    ks = jax.random.split(key, 8)
    s = float(f) ** -0.5

    def u(k, shape, scale):
        return jax.random.uniform(k, shape, jnp.float32, -scale, scale)

    w_init = u(ks[0], (f, f), s)           # EvolveGCNO.initial_weight (squeezed)
    w_ih = u(ks[1], (3 * f, f), s)         # GRU weight_ih_l0 (rows: r | z | n)
    w_hh = u(ks[2], (3 * f, f), s)         # GRU weight_hh_l0
    b_ih = u(ks[3], (3 * f,), s)           # GRU bias_ih_l0
    b_hh = u(ks[4], (3 * f,), s)           # GRU bias_hh_l0
    b_conv = u(ks[5], (f,), 0.1)           # GCNConv bias (PyG zero-inits; random to exercise path)
    w_lin = u(ks[6], (f, 1), s)            # Linear(f, 1) weight
    b_lin = u(ks[7], (1,), s)              # Linear(f, 1) bias
    return (w_init, w_ih, w_hh, b_ih, b_hh, b_conv, w_lin, b_lin)


def reference_rollout(x_seq, edge_index, edge_weight, params):
    """Pure-JAX reference: T sequential forward calls of EvolveGCNO_RecurrentGCN."""
    w, w_ih, w_hh, b_ih, b_hh, b_conv, w_lin, b_lin = params
    f = w.shape[0]
    t, n, _ = x_seq.shape
    hp = lax.Precision.HIGHEST

    src, dst = edge_index[0], edge_index[1]
    a = jnp.zeros((n, n), jnp.float32).at[dst, src].add(edge_weight)
    a = a + jnp.eye(n, dtype=jnp.float32)
    deg = a.sum(axis=1)
    dinv = jnp.where(deg > 0.0, lax.rsqrt(deg), 0.0)
    a_hat = dinv[:, None] * a * dinv[None, :]

    outs = []
    for step in range(t):
        gi = jnp.dot(w, w_ih.T, precision=hp) + b_ih
        gh = jnp.dot(w, w_hh.T, precision=hp) + b_hh
        r = jax.nn.sigmoid(gi[:, :f] + gh[:, :f])
        z = jax.nn.sigmoid(gi[:, f:2 * f] + gh[:, f:2 * f])
        cand = jnp.tanh(gi[:, 2 * f:] + r * gh[:, 2 * f:])
        w = (1.0 - z) * cand + z * w

        conv = jnp.dot(a_hat, jnp.dot(x_seq[step], w, precision=hp), precision=hp) + b_conv
        h = jnp.maximum(conv, 0.0)
        outs.append(jnp.dot(h, w_lin, precision=hp) + b_lin)       # (N, 1)
    return jnp.concatenate(outs, axis=1).T, w                       # (T, N), (F, F)


# --------------------------------------------------------------------------------- main
if __name__ == "__main__":
    N, F, T, TB = 20, 4, 32, 8            # CHICKENPOX: 20 county nodes, 4 lagged features; 32-step rollout
    key = jax.random.PRNGKey(0)
    k_x, k_w, k_p = jax.random.split(key, 3)

    # node feature sequence
    x_seq = jax.random.normal(k_x, (T, N, F), jnp.float32)

    # deterministic bidirectional ring graph with positive edge weights (static over time)
    idx = jnp.arange(N)
    src = jnp.concatenate([idx, (idx + 1) % N])
    dst = jnp.concatenate([(idx + 1) % N, idx])
    edge_index = jnp.stack([src, dst], axis=0)                      # (2, E), E = 2N
    edge_weight = jax.random.uniform(k_w, (2 * N,), jnp.float32, 0.5, 1.5)

    params = init_params(k_p, F)
    wpack, vecpack = pack_params(params)                # packed once
    a_hat = pack_graph(edge_index, edge_weight, N)      # normalized adjacency, built once

    preds, w_ev = evolvegcno_rollout(x_seq, a_hat, wpack, vecpack, tb=TB)
    preds, w_ev = jax.block_until_ready((preds, w_ev))

    ref_preds, ref_w = reference_rollout(x_seq, edge_index, edge_weight, params)

    assert preds.shape == (T, N)                        # per-step module output is (N, 1); row t == step t
    assert w_ev.shape == (F, F)
    assert jnp.allclose(w_ev, ref_w, atol=1e-4, rtol=1e-4)
    assert jnp.allclose(preds, ref_preds, atol=1e-4, rtol=1e-4)

    print("KERNEL_OK")
</pallas_src>

<mosaic_0001>
module attributes {stable_mosaic.version = 11 : i64} {
  func.func @evolvegcno_rollout_kernel(%arg0: i32, %arg1: memref<8x20x4xf32, #tpu.memory_space<vmem>>, %arg2: memref<20x20xf32, #tpu.memory_space<vmem>>, %arg3: memref<4x29xf32, #tpu.memory_space<vmem>>, %arg4: memref<1x29xf32, #tpu.memory_space<vmem>>, %arg5: memref<8x20xf32, #tpu.memory_space<vmem>>, %arg6: memref<4x4xf32, #tpu.memory_space<vmem>>, %arg7: memref<4x4xf32, #tpu.memory_space<vmem>>) attributes {dimension_semantics = [#tpu.dimension_semantics<arbitrary>], iteration_bounds = array<i64: 4>, scalar_prefetch = 0 : i64, scratch_operands = 1 : i64, tpu.core_type = #tpu.core_type<tc>, window_params = [{transform_indices = @transform_0, window_bounds = array<i64: 8, 20, 4>}, {pipeline_mode = #tpu.pipeline_mode<synchronous>, transform_indices = @transform_1, window_bounds = array<i64: 20, 20>}, {pipeline_mode = #tpu.pipeline_mode<synchronous>, transform_indices = @transform_2, window_bounds = array<i64: 4, 29>}, {pipeline_mode = #tpu.pipeline_mode<synchronous>, transform_indices = @transform_3, window_bounds = array<i64: 1, 29>}, {transform_indices = @transform_4, window_bounds = array<i64: 8, 20>}, {pipeline_mode = #tpu.pipeline_mode<synchronous>, transform_indices = @transform_5, window_bounds = array<i64: 4, 4>}]} {
    %c0 = arith.constant 0 : index
    %c0_0 = arith.constant 0 : index
    %0 = vector.load %arg3[%c0, %c0_0] : memref<4x29xf32, #tpu.memory_space<vmem>>, vector<4x29xf32>
    %c0_1 = arith.constant 0 : index
    %c0_2 = arith.constant 0 : index
    %1 = vector.load %arg4[%c0_1, %c0_2] : memref<1x29xf32, #tpu.memory_space<vmem>>, vector<1x29xf32>
    %c0_3 = arith.constant 0 : index
    %c0_4 = arith.constant 0 : index
    %2 = vector.load %arg2[%c0_3, %c0_4] : memref<20x20xf32, #tpu.memory_space<vmem>>, vector<20x20xf32>
    %c0_i32 = arith.constant 0 : i32
    %3 = arith.cmpi eq, %arg0, %c0_i32 : i32
    %4 = arith.extui %3 : i1 to i32
    %c0_i32_5 = arith.constant 0 : i32
    %5 = arith.cmpi ne, %4, %c0_i32_5 : i32
    scf.if %5 {
      %851 = vector.extract_strided_slice %0 {offsets = [0, 0], sizes = [4, 4], strides = [1, 1]} : vector<4x29xf32> to vector<4x4xf32>
      %c0_69 = arith.constant 0 : index
      %c0_70 = arith.constant 0 : index
      %852 = vector.load %arg7[%c0_69, %c0_70] : memref<4x4xf32, #tpu.memory_space<vmem>>, vector<4x4xf32>
      tpu.vector_store %arg7[%c0_69, %c0_70], %851 {strides = array<i32>} : memref<4x4xf32, #tpu.memory_space<vmem>>, vector<4x4xf32>,
    } else {
    }
    %6 = vector.extract_strided_slice %0 {offsets = [0, 4], sizes = [4, 24], strides = [1, 1]} : vector<4x29xf32> to vector<4x24xf32>
    %7 = vector.extract_strided_slice %0 {offsets = [0, 28], sizes = [4, 1], strides = [1, 1]} : vector<4x29xf32> to vector<4x1xf32>
    %8 = vector.extract_strided_slice %1 {offsets = [0, 0], sizes = [1, 24], strides = [1, 1]} : vector<1x29xf32> to vector<1x24xf32>
    %9 = vector.extract_strided_slice %1 {offsets = [0, 24], sizes = [1, 4], strides = [1, 1]} : vector<1x29xf32> to vector<1x4xf32>
    %10 = vector.extract_strided_slice %1 {offsets = [0, 28], sizes = [1, 1], strides = [1, 1]} : vector<1x29xf32> to vector<1x1xf32>
    %c0_6 = arith.constant 0 : index
    %c0_7 = arith.constant 0 : index
    %11 = vector.load %arg7[%c0_6, %c0_7] : memref<4x4xf32, #tpu.memory_space<vmem>>, vector<4x4xf32>
    %12 = vector.extract_strided_slice %11 {offsets = [0, 0], sizes = [4, 1], strides = [1, 1]} : vector<4x4xf32> to vector<4x1xf32>
    %13 = vector.extract_strided_slice %6 {offsets = [0, 0], sizes = [1, 24], strides = [1, 1]} : vector<4x24xf32> to vector<1x24xf32>
    %14 = vector.broadcast %12 : vector<4x1xf32> to vector<4x24xf32>
    %15 = vector.broadcast %13 : vector<1x24xf32> to vector<4x24xf32>
    %16 = arith.mulf %14, %15 : vector<4x24xf32>
    %17 = vector.extract_strided_slice %11 {offsets = [0, 1], sizes = [4, 1], strides = [1, 1]} : vector<4x4xf32> to vector<4x1xf32>
    %18 = vector.extract_strided_slice %6 {offsets = [1, 0], sizes = [1, 24], strides = [1, 1]} : vector<4x24xf32> to vector<1x24xf32>
    %19 = vector.broadcast %17 : vector<4x1xf32> to vector<4x24xf32>
    %20 = vector.broadcast %18 : vector<1x24xf32> to vector<4x24xf32>
    %21 = arith.mulf %19, %20 : vector<4x24xf32>
    %22 = arith.addf %16, %21 : vector<4x24xf32>
    %23 = vector.extract_strided_slice %11 {offsets = [0, 2], sizes = [4, 1], strides = [1, 1]} : vector<4x4xf32> to vector<4x1xf32>
    %24 = vector.extract_strided_slice %6 {offsets = [2, 0], sizes = [1, 24], strides = [1, 1]} : vector<4x24xf32> to vector<1x24xf32>
    %25 = vector.broadcast %23 : vector<4x1xf32> to vector<4x24xf32>
    %26 = vector.broadcast %24 : vector<1x24xf32> to vector<4x24xf32>
    %27 = arith.mulf %25, %26 : vector<4x24xf32>
    %28 = arith.addf %22, %27 : vector<4x24xf32>
    %29 = vector.extract_strided_slice %11 {offsets = [0, 3], sizes = [4, 1], strides = [1, 1]} : vector<4x4xf32> to vector<4x1xf32>
    %30 = vector.extract_strided_slice %6 {offsets = [3, 0], sizes = [1, 24], strides = [1, 1]} : vector<4x24xf32> to vector<1x24xf32>
    %31 = vector.broadcast %29 : vector<4x1xf32> to vector<4x24xf32>
    %32 = vector.broadcast %30 : vector<1x24xf32> to vector<4x24xf32>
    %33 = arith.mulf %31, %32 : vector<4x24xf32>
    %34 = arith.addf %28, %33 : vector<4x24xf32>
    %35 = vector.broadcast %8 : vector<1x24xf32> to vector<4x24xf32>
    %36 = arith.addf %34, %35 : vector<4x24xf32>
    %37 = vector.extract_strided_slice %36 {offsets = [0, 0], sizes = [4, 12], strides = [1, 1]} : vector<4x24xf32> to vector<4x12xf32>
    %38 = vector.extract_strided_slice %36 {offsets = [0, 12], sizes = [4, 12], strides = [1, 1]} : vector<4x24xf32> to vector<4x12xf32>
    %39 = vector.extract_strided_slice %37 {offsets = [0, 0], sizes = [4, 4], strides = [1, 1]} : vector<4x12xf32> to vector<4x4xf32>
    %40 = vector.extract_strided_slice %38 {offsets = [0, 0], sizes = [4, 4], strides = [1, 1]} : vector<4x12xf32> to vector<4x4xf32>
    %41 = arith.addf %39, %40 : vector<4x4xf32>
    %42 = arith.negf %41 : vector<4x4xf32>
    %43 = math.exp %42 : vector<4x4xf32>
    %cst = arith.constant 1.000000e+00 : f32
    %44 = vector.broadcast %cst : f32 to vector<4x4xf32>
    %45 = arith.addf %44, %43 : vector<4x4xf32>
    %46 = arith.divf %44, %45 : vector<4x4xf32>
    %47 = vector.extract_strided_slice %37 {offsets = [0, 4], sizes = [4, 4], strides = [1, 1]} : vector<4x12xf32> to vector<4x4xf32>
    %48 = vector.extract_strided_slice %38 {offsets = [0, 4], sizes = [4, 4], strides = [1, 1]} : vector<4x12xf32> to vector<4x4xf32>
    %49 = arith.addf %47, %48 : vector<4x4xf32>
    %50 = arith.negf %49 : vector<4x4xf32>
    %51 = math.exp %50 : vector<4x4xf32>
    %cst_8 = arith.constant 1.000000e+00 : f32
    %52 = vector.broadcast %cst_8 : f32 to vector<4x4xf32>
    %53 = arith.addf %52, %51 : vector<4x4xf32>
    %54 = arith.divf %52, %53 : vector<4x4xf32>
    %55 = vector.extract_strided_slice %37 {offsets = [0, 8], sizes = [4, 4], strides = [1, 1]} : vector<4x12xf32> to vector<4x4xf32>
    %56 = vector.extract_strided_slice %38 {offsets = [0, 8], sizes = [4, 4], strides = [1, 1]} : vector<4x12xf32> to vector<4x4xf32>
    %57 = arith.mulf %46, %56 : vector<4x4xf32>
    %58 = arith.addf %55, %57 : vector<4x4xf32>
    %59 = math.tanh %58 : vector<4x4xf32>
    %cst_9 = arith.constant 1.000000e+00 : f32
    %60 = vector.broadcast %cst_9 : f32 to vector<4x4xf32>
    %61 = arith.subf %60, %54 : vector<4x4xf32>
    %62 = arith.mulf %61, %59 : vector<4x4xf32>
    %63 = arith.mulf %54, %11 : vector<4x4xf32>
    %64 = arith.addf %62, %63 : vector<4x4xf32>
    %c0_10 = arith.constant 0 : index
    %c0_11 = arith.constant 0 : index
    %c0_12 = arith.constant 0 : index
    %65 = vector.load %arg1[%c0_10, %c0_11, %c0_12] : memref<8x20x4xf32, #tpu.memory_space<vmem>>, vector<1x20x4xf32>
    %66 = vector.shape_cast %65 : vector<1x20x4xf32> to vector<20x4xf32>
    %67 = vector.extract_strided_slice %66 {offsets = [0, 0], sizes = [20, 1], strides = [1, 1]} : vector<20x4xf32> to vector<20x1xf32>
    %68 = vector.extract_strided_slice %64 {offsets = [0, 0], sizes = [1, 4], strides = [1, 1]} : vector<4x4xf32> to vector<1x4xf32>
    %69 = vector.broadcast %67 : vector<20x1xf32> to vector<20x4xf32>
    %70 = vector.broadcast %68 : vector<1x4xf32> to vector<20x4xf32>
    %71 = arith.mulf %69, %70 : vector<20x4xf32>
    %72 = vector.extract_strided_slice %66 {offsets = [0, 1], sizes = [20, 1], strides = [1, 1]} : vector<20x4xf32> to vector<20x1xf32>
    %73 = vector.extract_strided_slice %64 {offsets = [1, 0], sizes = [1, 4], strides = [1, 1]} : vector<4x4xf32> to vector<1x4xf32>
    %74 = vector.broadcast %72 : vector<20x1xf32> to vector<20x4xf32>
    %75 = vector.broadcast %73 : vector<1x4xf32> to vector<20x4xf32>
    %76 = arith.mulf %74, %75 : vector<20x4xf32>
    %77 = arith.addf %71, %76 : vector<20x4xf32>
    %78 = vector.extract_strided_slice %66 {offsets = [0, 2], sizes = [20, 1], strides = [1, 1]} : vector<20x4xf32> to vector<20x1xf32>
    %79 = vector.extract_strided_slice %64 {offsets = [2, 0], sizes = [1, 4], strides = [1, 1]} : vector<4x4xf32> to vector<1x4xf32>
    %80 = vector.broadcast %78 : vector<20x1xf32> to vector<20x4xf32>
    %81 = vector.broadcast %79 : vector<1x4xf32> to vector<20x4xf32>
    %82 = arith.mulf %80, %81 : vector<20x4xf32>
    %83 = arith.addf %77, %82 : vector<20x4xf32>
    %84 = vector.extract_strided_slice %66 {offsets = [0, 3], sizes = [20, 1], strides = [1, 1]} : vector<20x4xf32> to vector<20x1xf32>
    %85 = vector.extract_strided_slice %64 {offsets = [3, 0], sizes = [1, 4], strides = [1, 1]} : vector<4x4xf32> to vector<1x4xf32>
    %86 = vector.broadcast %84 : vector<20x1xf32> to vector<20x4xf32>
    %87 = vector.broadcast %85 : vector<1x4xf32> to vector<20x4xf32>
    %88 = arith.mulf %86, %87 : vector<20x4xf32>
    %89 = arith.addf %83, %88 : vector<20x4xf32>
    %cst_13 = arith.constant dense<0.000000e+00> : vector<20x4xf32>
    %90 = tpu.matmul %2, %89, %cst_13 {dimension_numbers = #tpu.dot_dimension_numbers<[1], [0], [0], [1], [0, 0, 1, 1], [], []>} : vector<20x20xf32>, vector<20x4xf32>, vector<20x4xf32> -> vector<20x4xf32>
    %91 = vector.broadcast %9 : vector<1x4xf32> to vector<20x4xf32>
    %92 = arith.addf %90, %91 : vector<20x4xf32>
    %cst_14 = arith.constant 0.000000e+00 : f32
    %93 = vector.broadcast %cst_14 : f32 to vector<20x4xf32>
    %94 = arith.maximumf %92, %93 : vector<20x4xf32>
    %95 = vector.extract_strided_slice %94 {offsets = [0, 0], sizes = [20, 1], strides = [1, 1]} : vector<20x4xf32> to vector<20x1xf32>
    %96 = vector.extract_strided_slice %7 {offsets = [0, 0], sizes = [1, 1], strides = [1, 1]} : vector<4x1xf32> to vector<1x1xf32>
    %97 = vector.broadcast %96 : vector<1x1xf32> to vector<20x1xf32>
    %98 = arith.mulf %95, %97 : vector<20x1xf32>
    %99 = vector.extract_strided_slice %94 {offsets = [0, 1], sizes = [20, 1], strides = [1, 1]} : vector<20x4xf32> to vector<20x1xf32>
    %100 = vector.extract_strided_slice %7 {offsets = [1, 0], sizes = [1, 1], strides = [1, 1]} : vector<4x1xf32> to vector<1x1xf32>
    %101 = vector.broadcast %100 : vector<1x1xf32> to vector<20x1xf32>
    %102 = arith.mulf %99, %101 : vector<20x1xf32>
    %103 = arith.addf %98, %102 : vector<20x1xf32>
    %104 = vector.extract_strided_slice %94 {offsets = [0, 2], sizes = [20, 1], strides = [1, 1]} : vector<20x4xf32> to vector<20x1xf32>
    %105 = vector.extract_strided_slice %7 {offsets = [2, 0], sizes = [1, 1], strides = [1, 1]} : vector<4x1xf32> to vector<1x1xf32>
    %106 = vector.broadcast %105 : vector<1x1xf32> to vector<20x1xf32>
    %107 = arith.mulf %104, %106 : vector<20x1xf32>
    %108 = arith.addf %103, %107 : vector<20x1xf32>
    %109 = vector.extract_strided_slice %94 {offsets = [0, 3], sizes = [20, 1], strides = [1, 1]} : vector<20x4xf32> to vector<20x1xf32>
    %110 = vector.extract_strided_slice %7 {offsets = [3, 0], sizes = [1, 1], strides = [1, 1]} : vector<4x1xf32> to vector<1x1xf32>
    %111 = vector.broadcast %110 : vector<1x1xf32> to vector<20x1xf32>
    %112 = arith.mulf %109, %111 : vector<20x1xf32>
    %113 = arith.addf %108, %112 : vector<20x1xf32>
    %114 = vector.broadcast %10 : vector<1x1xf32> to vector<20x1xf32>
    %115 = arith.addf %113, %114 : vector<20x1xf32>
    %116 = vector.extract_strided_slice %64 {offsets = [0, 0], sizes = [4, 1], strides = [1, 1]} : vector<4x4xf32> to vector<4x1xf32>
    %117 = vector.extract_strided_slice %6 {offsets = [0, 0], sizes = [1, 24], strides = [1, 1]} : vector<4x24xf32> to vector<1x24xf32>
    %118 = vector.broadcast %116 : vector<4x1xf32> to vector<4x24xf32>
    %119 = vector.broadcast %117 : vector<1x24xf32> to vector<4x24xf32>
    %120 = arith.mulf %118, %119 : vector<4x24xf32>
    %121 = vector.extract_strided_slice %64 {offsets = [0, 1], sizes = [4, 1], strides = [1, 1]} : vector<4x4xf32> to vector<4x1xf32>
    %122 = vector.extract_strided_slice %6 {offsets = [1, 0], sizes = [1, 24], strides = [1, 1]} : vector<4x24xf32> to vector<1x24xf32>
    %123 = vector.broadcast %121 : vector<4x1xf32> to vector<4x24xf32>
    %124 = vector.broadcast %122 : vector<1x24xf32> to vector<4x24xf32>
    %125 = arith.mulf %123, %124 : vector<4x24xf32>
    %126 = arith.addf %120, %125 : vector<4x24xf32>
    %127 = vector.extract_strided_slice %64 {offsets = [0, 2], sizes = [4, 1], strides = [1, 1]} : vector<4x4xf32> to vector<4x1xf32>
    %128 = vector.extract_strided_slice %6 {offsets = [2, 0], sizes = [1, 24], strides = [1, 1]} : vector<4x24xf32> to vector<1x24xf32>
    %129 = vector.broadcast %127 : vector<4x1xf32> to vector<4x24xf32>
    %130 = vector.broadcast %128 : vector<1x24xf32> to vector<4x24xf32>
    %131 = arith.mulf %129, %130 : vector<4x24xf32>
    %132 = arith.addf %126, %131 : vector<4x24xf32>
    %133 = vector.extract_strided_slice %64 {offsets = [0, 3], sizes = [4, 1], strides = [1, 1]} : vector<4x4xf32> to vector<4x1xf32>
    %134 = vector.extract_strided_slice %6 {offsets = [3, 0], sizes = [1, 24], strides = [1, 1]} : vector<4x24xf32> to vector<1x24xf32>
    %135 = vector.broadcast %133 : vector<4x1xf32> to vector<4x24xf32>
    %136 = vector.broadcast %134 : vector<1x24xf32> to vector<4x24xf32>
    %137 = arith.mulf %135, %136 : vector<4x24xf32>
    %138 = arith.addf %132, %137 : vector<4x24xf32>
    %139 = vector.broadcast %8 : vector<1x24xf32> to vector<4x24xf32>
    %140 = arith.addf %138, %139 : vector<4x24xf32>
    %141 = vector.extract_strided_slice %140 {offsets = [0, 0], sizes = [4, 12], strides = [1, 1]} : vector<4x24xf32> to vector<4x12xf32>
    %142 = vector.extract_strided_slice %140 {offsets = [0, 12], sizes = [4, 12], strides = [1, 1]} : vector<4x24xf32> to vector<4x12xf32>
    %143 = vector.extract_strided_slice %141 {offsets = [0, 0], sizes = [4, 4], strides = [1, 1]} : vector<4x12xf32> to vector<4x4xf32>
    %144 = vector.extract_strided_slice %142 {offsets = [0, 0], sizes = [4, 4], strides = [1, 1]} : vector<4x12xf32> to vector<4x4xf32>
    %145 = arith.addf %143, %144 : vector<4x4xf32>
    %146 = arith.negf %145 : vector<4x4xf32>
    %147 = math.exp %146 : vector<4x4xf32>
    %cst_15 = arith.constant 1.000000e+00 : f32
    %148 = vector.broadcast %cst_15 : f32 to vector<4x4xf32>
    %149 = arith.addf %148, %147 : vector<4x4xf32>
    %150 = arith.divf %148, %149 : vector<4x4xf32>
    %151 = vector.extract_strided_slice %141 {offsets = [0, 4], sizes = [4, 4], strides = [1, 1]} : vector<4x12xf32> to vector<4x4xf32>
    %152 = vector.extract_strided_slice %142 {offsets = [0, 4], sizes = [4, 4], strides = [1, 1]} : vector<4x12xf32> to vector<4x4xf32>
    %153 = arith.addf %151, %152 : vector<4x4xf32>
    %154 = arith.negf %153 : vector<4x4xf32>
    %155 = math.exp %154 : vector<4x4xf32>
    %cst_16 = arith.constant 1.000000e+00 : f32
    %156 = vector.broadcast %cst_16 : f32 to vector<4x4xf32>
    %157 = arith.addf %156, %155 : vector<4x4xf32>
    %158 = arith.divf %156, %157 : vector<4x4xf32>
    %159 = vector.extract_strided_slice %141 {offsets = [0, 8], sizes = [4, 4], strides = [1, 1]} : vector<4x12xf32> to vector<4x4xf32>
    %160 = vector.extract_strided_slice %142 {offsets = [0, 8], sizes = [4, 4], strides = [1, 1]} : vector<4x12xf32> to vector<4x4xf32>
    %161 = arith.mulf %150, %160 : vector<4x4xf32>
    %162 = arith.addf %159, %161 : vector<4x4xf32>
    %163 = math.tanh %162 : vector<4x4xf32>
    %cst_17 = arith.constant 1.000000e+00 : f32
    %164 = vector.broadcast %cst_17 : f32 to vector<4x4xf32>
    %165 = arith.subf %164, %158 : vector<4x4xf32>
    %166 = arith.mulf %165, %163 : vector<4x4xf32>
    %167 = arith.mulf %158, %64 : vector<4x4xf32>
    %168 = arith.addf %166, %167 : vector<4x4xf32>
    %c1 = arith.constant 1 : index
    %c0_18 = arith.constant 0 : index
    %c0_19 = arith.constant 0 : index
    %169 = vector.load %arg1[%c1, %c0_18, %c0_19] : memref<8x20x4xf32, #tpu.memory_space<vmem>>, vector<1x20x4xf32>
    %170 = vector.shape_cast %169 : vector<1x20x4xf32> to vector<20x4xf32>
    %171 = vector.extract_strided_slice %170 {offsets = [0, 0], sizes = [20, 1], strides = [1, 1]} : vector<20x4xf32> to vector<20x1xf32>
    %172 = vector.extract_strided_slice %168 {offsets = [0, 0], sizes = [1, 4], strides = [1, 1]} : vector<4x4xf32> to vector<1x4xf32>
    %173 = vector.broadcast %171 : vector<20x1xf32> to vector<20x4xf32>
    %174 = vector.broadcast %172 : vector<1x4xf32> to vector<20x4xf32>
    %175 = arith.mulf %173, %174 : vector<20x4xf32>
    %176 = vector.extract_strided_slice %170 {offsets = [0, 1], sizes = [20, 1], strides = [1, 1]} : vector<20x4xf32> to vector<20x1xf32>
    %177 = vector.extract_strided_slice %168 {offsets = [1, 0], sizes = [1, 4], strides = [1, 1]} : vector<4x4xf32> to vector<1x4xf32>
    %178 = vector.broadcast %176 : vector<20x1xf32> to vector<20x4xf32>
    %179 = vector.broadcast %177 : vector<1x4xf32> to vector<20x4xf32>
    %180 = arith.mulf %178, %179 : vector<20x4xf32>
    %181 = arith.addf %175, %180 : vector<20x4xf32>
    %182 = vector.extract_strided_slice %170 {offsets = [0, 2], sizes = [20, 1], strides = [1, 1]} : vector<20x4xf32> to vector<20x1xf32>
    %183 = vector.extract_strided_slice %168 {offsets = [2, 0], sizes = [1, 4], strides = [1, 1]} : vector<4x4xf32> to vector<1x4xf32>
    %184 = vector.broadcast %182 : vector<20x1xf32> to vector<20x4xf32>
    %185 = vector.broadcast %183 : vector<1x4xf32> to vector<20x4xf32>
    %186 = arith.mulf %184, %185 : vector<20x4xf32>
    %187 = arith.addf %181, %186 : vector<20x4xf32>
    %188 = vector.extract_strided_slice %170 {offsets = [0, 3], sizes = [20, 1], strides = [1, 1]} : vector<20x4xf32> to vector<20x1xf32>
    %189 = vector.extract_strided_slice %168 {offsets = [3, 0], sizes = [1, 4], strides = [1, 1]} : vector<4x4xf32> to vector<1x4xf32>
    %190 = vector.broadcast %188 : vector<20x1xf32> to vector<20x4xf32>
    %191 = vector.broadcast %189 : vector<1x4xf32> to vector<20x4xf32>
    %192 = arith.mulf %190, %191 : vector<20x4xf32>
    %193 = arith.addf %187, %192 : vector<20x4xf32>
    %cst_20 = arith.constant dense<0.000000e+00> : vector<20x4xf32>
    %194 = tpu.matmul %2, %193, %cst_20 {dimension_numbers = #tpu.dot_dimension_numbers<[1], [0], [0], [1], [0, 0, 1, 1], [], []>} : vector<20x20xf32>, vector<20x4xf32>, vector<20x4xf32> -> vector<20x4xf32>
    %195 = vector.broadcast %9 : vector<1x4xf32> to vector<20x4xf32>
    %196 = arith.addf %194, %195 : vector<20x4xf32>
    %cst_21 = arith.constant 0.000000e+00 : f32
    %197 = vector.broadcast %cst_21 : f32 to vector<20x4xf32>
    %198 = arith.maximumf %196, %197 : vector<20x4xf32>
    %199 = vector.extract_strided_slice %198 {offsets = [0, 0], sizes = [20, 1], strides = [1, 1]} : vector<20x4xf32> to vector<20x1xf32>
    %200 = vector.extract_strided_slice %7 {offsets = [0, 0], sizes = [1, 1], strides = [1, 1]} : vector<4x1xf32> to vector<1x1xf32>
    %201 = vector.broadcast %200 : vector<1x1xf32> to vector<20x1xf32>
    %202 = arith.mulf %199, %201 : vector<20x1xf32>
    %203 = vector.extract_strided_slice %198 {offsets = [0, 1], sizes = [20, 1], strides = [1, 1]} : vector<20x4xf32> to vector<20x1xf32>
    %204 = vector.extract_strided_slice %7 {offsets = [1, 0], sizes = [1, 1], strides = [1, 1]} : vector<4x1xf32> to vector<1x1xf32>
    %205 = vector.broadcast %204 : vector<1x1xf32> to vector<20x1xf32>
    %206 = arith.mulf %203, %205 : vector<20x1xf32>
    %207 = arith.addf %202, %206 : vector<20x1xf32>
    %208 = vector.extract_strided_slice %198 {offsets = [0, 2], sizes = [20, 1], strides = [1, 1]} : vector<20x4xf32> to vector<20x1xf32>
    %209 = vector.extract_strided_slice %7 {offsets = [2, 0], sizes = [1, 1], strides = [1, 1]} : vector<4x1xf32> to vector<1x1xf32>
    %210 = vector.broadcast %209 : vector<1x1xf32> to vector<20x1xf32>
    %211 = arith.mulf %208, %210 : vector<20x1xf32>
    %212 = arith.addf %207, %211 : vector<20x1xf32>
    %213 = vector.extract_strided_slice %198 {offsets = [0, 3], sizes = [20, 1], strides = [1, 1]} : vector<20x4xf32> to vector<20x1xf32>
    %214 = vector.extract_strided_slice %7 {offsets = [3, 0], sizes = [1, 1], strides = [1, 1]} : vector<4x1xf32> to vector<1x1xf32>
    %215 = vector.broadcast %214 : vector<1x1xf32> to vector<20x1xf32>
    %216 = arith.mulf %213, %215 : vector<20x1xf32>
    %217 = arith.addf %212, %216 : vector<20x1xf32>
    %218 = vector.broadcast %10 : vector<1x1xf32> to vector<20x1xf32>
    %219 = arith.addf %217, %218 : vector<20x1xf32>
    %220 = vector.extract_strided_slice %168 {offsets = [0, 0], sizes = [4, 1], strides = [1, 1]} : vector<4x4xf32> to vector<4x1xf32>
    %221 = vector.extract_strided_slice %6 {offsets = [0, 0], sizes = [1, 24], strides = [1, 1]} : vector<4x24xf32> to vector<1x24xf32>
    %222 = vector.broadcast %220 : vector<4x1xf32> to vector<4x24xf32>
    %223 = vector.broadcast %221 : vector<1x24xf32> to vector<4x24xf32>
    %224 = arith.mulf %222, %223 : vector<4x24xf32>
    %225 = vector.extract_strided_slice %168 {offsets = [0, 1], sizes = [4, 1], strides = [1, 1]} : vector<4x4xf32> to vector<4x1xf32>
    %226 = vector.extract_strided_slice %6 {offsets = [1, 0], sizes = [1, 24], strides = [1, 1]} : vector<4x24xf32> to vector<1x24xf32>
    %227 = vector.broadcast %225 : vector<4x1xf32> to vector<4x24xf32>
    %228 = vector.broadcast %226 : vector<1x24xf32> to vector<4x24xf32>
    %229 = arith.mulf %227, %228 : vector<4x24xf32>
    %230 = arith.addf %224, %229 : vector<4x24xf32>
    %231 = vector.extract_strided_slice %168 {offsets = [0, 2], sizes = [4, 1], strides = [1, 1]} : vector<4x4xf32> to vector<4x1xf32>
    %232 = vector.extract_strided_slice %6 {offsets = [2, 0], sizes = [1, 24], strides = [1, 1]} : vector<4x24xf32> to vector<1x24xf32>
    %233 = vector.broadcast %231 : vector<4x1xf32> to vector<4x24xf32>
    %234 = vector.broadcast %232 : vector<1x24xf32> to vector<4x24xf32>
    %235 = arith.mulf %233, %234 : vector<4x24xf32>
    %236 = arith.addf %230, %235 : vector<4x24xf32>
    %237 = vector.extract_strided_slice %168 {offsets = [0, 3], sizes = [4, 1], strides = [1, 1]} : vector<4x4xf32> to vector<4x1xf32>
    %238 = vector.extract_strided_slice %6 {offsets = [3, 0], sizes = [1, 24], strides = [1, 1]} : vector<4x24xf32> to vector<1x24xf32>
    %239 = vector.broadcast %237 : vector<4x1xf32> to vector<4x24xf32>
    %240 = vector.broadcast %238 : vector<1x24xf32> to vector<4x24xf32>
    %241 = arith.mulf %239, %240 : vector<4x24xf32>
    %242 = arith.addf %236, %241 : vector<4x24xf32>
    %243 = vector.broadcast %8 : vector<1x24xf32> to vector<4x24xf32>
    %244 = arith.addf %242, %243 : vector<4x24xf32>
    %245 = vector.extract_strided_slice %244 {offsets = [0, 0], sizes = [4, 12], strides = [1, 1]} : vector<4x24xf32> to vector<4x12xf32>
    %246 = vector.extract_strided_slice %244 {offsets = [0, 12], sizes = [4, 12], strides = [1, 1]} : vector<4x24xf32> to vector<4x12xf32>
    %247 = vector.extract_strided_slice %245 {offsets = [0, 0], sizes = [4, 4], strides = [1, 1]} : vector<4x12xf32> to vector<4x4xf32>
    %248 = vector.extract_strided_slice %246 {offsets = [0, 0], sizes = [4, 4], strides = [1, 1]} : vector<4x12xf32> to vector<4x4xf32>
    %249 = arith.addf %247, %248 : vector<4x4xf32>
    %250 = arith.negf %249 : vector<4x4xf32>
    %251 = math.exp %250 : vector<4x4xf32>
    %cst_22 = arith.constant 1.000000e+00 : f32
    %252 = vector.broadcast %cst_22 : f32 to vector<4x4xf32>
    %253 = arith.addf %252, %251 : vector<4x4xf32>
    %254 = arith.divf %252, %253 : vector<4x4xf32>
    %255 = vector.extract_strided_slice %245 {offsets = [0, 4], sizes = [4, 4], strides = [1, 1]} : vector<4x12xf32> to vector<4x4xf32>
    %256 = vector.extract_strided_slice %246 {offsets = [0, 4], sizes = [4, 4], strides = [1, 1]} : vector<4x12xf32> to vector<4x4xf32>
    %257 = arith.addf %255, %256 : vector<4x4xf32>
    %258 = arith.negf %257 : vector<4x4xf32>
    %259 = math.exp %258 : vector<4x4xf32>
    %cst_23 = arith.constant 1.000000e+00 : f32
    %260 = vector.broadcast %cst_23 : f32 to vector<4x4xf32>
    %261 = arith.addf %260, %259 : vector<4x4xf32>
    %262 = arith.divf %260, %261 : vector<4x4xf32>
    %263 = vector.extract_strided_slice %245 {offsets = [0, 8], sizes = [4, 4], strides = [1, 1]} : vector<4x12xf32> to vector<4x4xf32>
    %264 = vector.extract_strided_slice %246 {offsets = [0, 8], sizes = [4, 4], strides = [1, 1]} : vector<4x12xf32> to vector<4x4xf32>
    %265 = arith.mulf %254, %264 : vector<4x4xf32>
    %266 = arith.addf %263, %265 : vector<4x4xf32>
    %267 = math.tanh %266 : vector<4x4xf32>
    %cst_24 = arith.constant 1.000000e+00 : f32
    %268 = vector.broadcast %cst_24 : f32 to vector<4x4xf32>
    %269 = arith.subf %268, %262 : vector<4x4xf32>
    %270 = arith.mulf %269, %267 : vector<4x4xf32>
    %271 = arith.mulf %262, %168 : vector<4x4xf32>
    %272 = arith.addf %270, %271 : vector<4x4xf32>
    %c2 = arith.constant 2 : index
    %c0_25 = arith.constant 0 : index
    %c0_26 = arith.constant 0 : index
    %273 = vector.load %arg1[%c2, %c0_25, %c0_26] : memref<8x20x4xf32, #tpu.memory_space<vmem>>, vector<1x20x4xf32>
    %274 = vector.shape_cast %273 : vector<1x20x4xf32> to vector<20x4xf32>
    %275 = vector.extract_strided_slice %274 {offsets = [0, 0], sizes = [20, 1], strides = [1, 1]} : vector<20x4xf32> to vector<20x1xf32>
    %276 = vector.extract_strided_slice %272 {offsets = [0, 0], sizes = [1, 4], strides = [1, 1]} : vector<4x4xf32> to vector<1x4xf32>
    %277 = vector.broadcast %275 : vector<20x1xf32> to vector<20x4xf32>
    %278 = vector.broadcast %276 : vector<1x4xf32> to vector<20x4xf32>
    %279 = arith.mulf %277, %278 : vector<20x4xf32>
    %280 = vector.extract_strided_slice %274 {offsets = [0, 1], sizes = [20, 1], strides = [1, 1]} : vector<20x4xf32> to vector<20x1xf32>
    %281 = vector.extract_strided_slice %272 {offsets = [1, 0], sizes = [1, 4], strides = [1, 1]} : vector<4x4xf32> to vector<1x4xf32>
    %282 = vector.broadcast %280 : vector<20x1xf32> to vector<20x4xf32>
    %283 = vector.broadcast %281 : vector<1x4xf32> to vector<20x4xf32>
    %284 = arith.mulf %282, %283 : vector<20x4xf32>
    %285 = arith.addf %279, %284 : vector<20x4xf32>
    %286 = vector.extract_strided_slice %274 {offsets = [0, 2], sizes = [20, 1], strides = [1, 1]} : vector<20x4xf32> to vector<20x1xf32>
    %287 = vector.extract_strided_slice %272 {offsets = [2, 0], sizes = [1, 4], strides = [1, 1]} : vector<4x4xf32> to vector<1x4xf32>
    %288 = vector.broadcast %286 : vector<20x1xf32> to vector<20x4xf32>
    %289 = vector.broadcast %287 : vector<1x4xf32> to vector<20x4xf32>
    %290 = arith.mulf %288, %289 : vector<20x4xf32>
    %291 = arith.addf %285, %290 : vector<20x4xf32>
    %292 = vector.extract_strided_slice %274 {offsets = [0, 3], sizes = [20, 1], strides = [1, 1]} : vector<20x4xf32> to vector<20x1xf32>
    %293 = vector.extract_strided_slice %272 {offsets = [3, 0], sizes = [1, 4], strides = [1, 1]} : vector<4x4xf32> to vector<1x4xf32>
    %294 = vector.broadcast %292 : vector<20x1xf32> to vector<20x4xf32>
    %295 = vector.broadcast %293 : vector<1x4xf32> to vector<20x4xf32>
    %296 = arith.mulf %294, %295 : vector<20x4xf32>
    %297 = arith.addf %291, %296 : vector<20x4xf32>
    %cst_27 = arith.constant dense<0.000000e+00> : vector<20x4xf32>
    %298 = tpu.matmul %2, %297, %cst_27 {dimension_numbers = #tpu.dot_dimension_numbers<[1], [0], [0], [1], [0, 0, 1, 1], [], []>} : vector<20x20xf32>, vector<20x4xf32>, vector<20x4xf32> -> vector<20x4xf32>
    %299 = vector.broadcast %9 : vector<1x4xf32> to vector<20x4xf32>
    %300 = arith.addf %298, %299 : vector<20x4xf32>
    %cst_28 = arith.constant 0.000000e+00 : f32
    %301 = vector.broadcast %cst_28 : f32 to vector<20x4xf32>
    %302 = arith.maximumf %300, %301 : vector<20x4xf32>
    %303 = vector.extract_strided_slice %302 {offsets = [0, 0], sizes = [20, 1], strides = [1, 1]} : vector<20x4xf32> to vector<20x1xf32>
    %304 = vector.extract_strided_slice %7 {offsets = [0, 0], sizes = [1, 1], strides = [1, 1]} : vector<4x1xf32> to vector<1x1xf32>
    %305 = vector.broadcast %304 : vector<1x1xf32> to vector<20x1xf32>
    %306 = arith.mulf %303, %305 : vector<20x1xf32>
    %307 = vector.extract_strided_slice %302 {offsets = [0, 1], sizes = [20, 1], strides = [1, 1]} : vector<20x4xf32> to vector<20x1xf32>
    %308 = vector.extract_strided_slice %7 {offsets = [1, 0], sizes = [1, 1], strides = [1, 1]} : vector<4x1xf32> to vector<1x1xf32>
    %309 = vector.broadcast %308 : vector<1x1xf32> to vector<20x1xf32>
    %310 = arith.mulf %307, %309 : vector<20x1xf32>
    %311 = arith.addf %306, %310 : vector<20x1xf32>
    %312 = vector.extract_strided_slice %302 {offsets = [0, 2], sizes = [20, 1], strides = [1, 1]} : vector<20x4xf32> to vector<20x1xf32>
    %313 = vector.extract_strided_slice %7 {offsets = [2, 0], sizes = [1, 1], strides = [1, 1]} : vector<4x1xf32> to vector<1x1xf32>
    %314 = vector.broadcast %313 : vector<1x1xf32> to vector<20x1xf32>
    %315 = arith.mulf %312, %314 : vector<20x1xf32>
    %316 = arith.addf %311, %315 : vector<20x1xf32>
    %317 = vector.extract_strided_slice %302 {offsets = [0, 3], sizes = [20, 1], strides = [1, 1]} : vector<20x4xf32> to vector<20x1xf32>
    %318 = vector.extract_strided_slice %7 {offsets = [3, 0], sizes = [1, 1], strides = [1, 1]} : vector<4x1xf32> to vector<1x1xf32>
    %319 = vector.broadcast %318 : vector<1x1xf32> to vector<20x1xf32>
    %320 = arith.mulf %317, %319 : vector<20x1xf32>
    %321 = arith.addf %316, %320 : vector<20x1xf32>
    %322 = vector.broadcast %10 : vector<1x1xf32> to vector<20x1xf32>
    %323 = arith.addf %321, %322 : vector<20x1xf32>
    %324 = vector.extract_strided_slice %272 {offsets = [0, 0], sizes = [4, 1], strides = [1, 1]} : vector<4x4xf32> to vector<4x1xf32>
    %325 = vector.extract_strided_slice %6 {offsets = [0, 0], sizes = [1, 24], strides = [1, 1]} : vector<4x24xf32> to vector<1x24xf32>
    %326 = vector.broadcast %324 : vector<4x1xf32> to vector<4x24xf32>
    %327 = vector.broadcast %325 : vector<1x24xf32> to vector<4x24xf32>
    %328 = arith.mulf %326, %327 : vector<4x24xf32>
    %329 = vector.extract_strided_slice %272 {offsets = [0, 1], sizes = [4, 1], strides = [1, 1]} : vector<4x4xf32> to vector<4x1xf32>
    %330 = vector.extract_strided_slice %6 {offsets = [1, 0], sizes = [1, 24], strides = [1, 1]} : vector<4x24xf32> to vector<1x24xf32>
    %331 = vector.broadcast %329 : vector<4x1xf32> to vector<4x24xf32>
    %332 = vector.broadcast %330 : vector<1x24xf32> to vector<4x24xf32>
    %333 = arith.mulf %331, %332 : vector<4x24xf32>
    %334 = arith.addf %328, %333 : vector<4x24xf32>
    %335 = vector.extract_strided_slice %272 {offsets = [0, 2], sizes = [4, 1], strides = [1, 1]} : vector<4x4xf32> to vector<4x1xf32>
    %336 = vector.extract_strided_slice %6 {offsets = [2, 0], sizes = [1, 24], strides = [1, 1]} : vector<4x24xf32> to vector<1x24xf32>
    %337 = vector.broadcast %335 : vector<4x1xf32> to vector<4x24xf32>
    %338 = vector.broadcast %336 : vector<1x24xf32> to vector<4x24xf32>
    %339 = arith.mulf %337, %338 : vector<4x24xf32>
    %340 = arith.addf %334, %339 : vector<4x24xf32>
    %341 = vector.extract_strided_slice %272 {offsets = [0, 3], sizes = [4, 1], strides = [1, 1]} : vector<4x4xf32> to vector<4x1xf32>
    %342 = vector.extract_strided_slice %6 {offsets = [3, 0], sizes = [1, 24], strides = [1, 1]} : vector<4x24xf32> to vector<1x24xf32>
    %343 = vector.broadcast %341 : vector<4x1xf32> to vector<4x24xf32>
    %344 = vector.broadcast %342 : vector<1x24xf32> to vector<4x24xf32>
    %345 = arith.mulf %343, %344 : vector<4x24xf32>
    %346 = arith.addf %340, %345 : vector<4x24xf32>
    %347 = vector.broadcast %8 : vector<1x24xf32> to vector<4x24xf32>
    %348 = arith.addf %346, %347 : vector<4x24xf32>
    %349 = vector.extract_strided_slice %348 {offsets = [0, 0], sizes = [4, 12], strides = [1, 1]} : vector<4x24xf32> to vector<4x12xf32>
    %350 = vector.extract_strided_slice %348 {offsets = [0, 12], sizes = [4, 12], strides = [1, 1]} : vector<4x24xf32> to vector<4x12xf32>
    %351 = vector.extract_strided_slice %349 {offsets = [0, 0], sizes = [4, 4], strides = [1, 1]} : vector<4x12xf32> to vector<4x4xf32>
    %352 = vector.extract_strided_slice %350 {offsets = [0, 0], sizes = [4, 4], strides = [1, 1]} : vector<4x12xf32> to vector<4x4xf32>
    %353 = arith.addf %351, %352 : vector<4x4xf32>
    %354 = arith.negf %353 : vector<4x4xf32>
    %355 = math.exp %354 : vector<4x4xf32>
    %cst_29 = arith.constant 1.000000e+00 : f32
    %356 = vector.broadcast %cst_29 : f32 to vector<4x4xf32>
    %357 = arith.addf %356, %355 : vector<4x4xf32>
    %358 = arith.divf %356, %357 : vector<4x4xf32>
    %359 = vector.extract_strided_slice %349 {offsets = [0, 4], sizes = [4, 4], strides = [1, 1]} : vector<4x12xf32> to vector<4x4xf32>
    %360 = vector.extract_strided_slice %350 {offsets = [0, 4], sizes = [4, 4], strides = [1, 1]} : vector<4x12xf32> to vector<4x4xf32>
    %361 = arith.addf %359, %360 : vector<4x4xf32>
    %362 = arith.negf %361 : vector<4x4xf32>
    %363 = math.exp %362 : vector<4x4xf32>
    %cst_30 = arith.constant 1.000000e+00 : f32
    %364 = vector.broadcast %cst_30 : f32 to vector<4x4xf32>
    %365 = arith.addf %364, %363 : vector<4x4xf32>
    %366 = arith.divf %364, %365 : vector<4x4xf32>
    %367 = vector.extract_strided_slice %349 {offsets = [0, 8], sizes = [4, 4], strides = [1, 1]} : vector<4x12xf32> to vector<4x4xf32>
    %368 = vector.extract_strided_slice %350 {offsets = [0, 8], sizes = [4, 4], strides = [1, 1]} : vector<4x12xf32> to vector<4x4xf32>
    %369 = arith.mulf %358, %368 : vector<4x4xf32>
    %370 = arith.addf %367, %369 : vector<4x4xf32>
    %371 = math.tanh %370 : vector<4x4xf32>
    %cst_31 = arith.constant 1.000000e+00 : f32
    %372 = vector.broadcast %cst_31 : f32 to vector<4x4xf32>
    %373 = arith.subf %372, %366 : vector<4x4xf32>
    %374 = arith.mulf %373, %371 : vector<4x4xf32>
    %375 = arith.mulf %366, %272 : vector<4x4xf32>
    %376 = arith.addf %374, %375 : vector<4x4xf32>
    %c3 = arith.constant 3 : index
    %c0_32 = arith.constant 0 : index
    %c0_33 = arith.constant 0 : index
    %377 = vector.load %arg1[%c3, %c0_32, %c0_33] : memref<8x20x4xf32, #tpu.memory_space<vmem>>, vector<1x20x4xf32>
    %378 = vector.shape_cast %377 : vector<1x20x4xf32> to vector<20x4xf32>
    %379 = vector.extract_strided_slice %378 {offsets = [0, 0], sizes = [20, 1], strides = [1, 1]} : vector<20x4xf32> to vector<20x1xf32>
    %380 = vector.extract_strided_slice %376 {offsets = [0, 0], sizes = [1, 4], strides = [1, 1]} : vector<4x4xf32> to vector<1x4xf32>
    %381 = vector.broadcast %379 : vector<20x1xf32> to vector<20x4xf32>
    %382 = vector.broadcast %380 : vector<1x4xf32> to vector<20x4xf32>
    %383 = arith.mulf %381, %382 : vector<20x4xf32>
    %384 = vector.extract_strided_slice %378 {offsets = [0, 1], sizes = [20, 1], strides = [1, 1]} : vector<20x4xf32> to vector<20x1xf32>
    %385 = vector.extract_strided_slice %376 {offsets = [1, 0], sizes = [1, 4], strides = [1, 1]} : vector<4x4xf32> to vector<1x4xf32>
    %386 = vector.broadcast %384 : vector<20x1xf32> to vector<20x4xf32>
    %387 = vector.broadcast %385 : vector<1x4xf32> to vector<20x4xf32>
    %388 = arith.mulf %386, %387 : vector<20x4xf32>
    %389 = arith.addf %383, %388 : vector<20x4xf32>
    %390 = vector.extract_strided_slice %378 {offsets = [0, 2], sizes = [20, 1], strides = [1, 1]} : vector<20x4xf32> to vector<20x1xf32>
    %391 = vector.extract_strided_slice %376 {offsets = [2, 0], sizes = [1, 4], strides = [1, 1]} : vector<4x4xf32> to vector<1x4xf32>
    %392 = vector.broadcast %390 : vector<20x1xf32> to vector<20x4xf32>
    %393 = vector.broadcast %391 : vector<1x4xf32> to vector<20x4xf32>
    %394 = arith.mulf %392, %393 : vector<20x4xf32>
    %395 = arith.addf %389, %394 : vector<20x4xf32>
    %396 = vector.extract_strided_slice %378 {offsets = [0, 3], sizes = [20, 1], strides = [1, 1]} : vector<20x4xf32> to vector<20x1xf32>
    %397 = vector.extract_strided_slice %376 {offsets = [3, 0], sizes = [1, 4], strides = [1, 1]} : vector<4x4xf32> to vector<1x4xf32>
    %398 = vector.broadcast %396 : vector<20x1xf32> to vector<20x4xf32>
    %399 = vector.broadcast %397 : vector<1x4xf32> to vector<20x4xf32>
    %400 = arith.mulf %398, %399 : vector<20x4xf32>
    %401 = arith.addf %395, %400 : vector<20x4xf32>
    %cst_34 = arith.constant dense<0.000000e+00> : vector<20x4xf32>
    %402 = tpu.matmul %2, %401, %cst_34 {dimension_numbers = #tpu.dot_dimension_numbers<[1], [0], [0], [1], [0, 0, 1, 1], [], []>} : vector<20x20xf32>, vector<20x4xf32>, vector<20x4xf32> -> vector<20x4xf32>
    %403 = vector.broadcast %9 : vector<1x4xf32> to vector<20x4xf32>
    %404 = arith.addf %402, %403 : vector<20x4xf32>
    %cst_35 = arith.constant 0.000000e+00 : f32
    %405 = vector.broadcast %cst_35 : f32 to vector<20x4xf32>
    %406 = arith.maximumf %404, %405 : vector<20x4xf32>
    %407 = vector.extract_strided_slice %406 {offsets = [0, 0], sizes = [20, 1], strides = [1, 1]} : vector<20x4xf32> to vector<20x1xf32>
    %408 = vector.extract_strided_slice %7 {offsets = [0, 0], sizes = [1, 1], strides = [1, 1]} : vector<4x1xf32> to vector<1x1xf32>
    %409 = vector.broadcast %408 : vector<1x1xf32> to vector<20x1xf32>
    %410 = arith.mulf %407, %409 : vector<20x1xf32>
    %411 = vector.extract_strided_slice %406 {offsets = [0, 1], sizes = [20, 1], strides = [1, 1]} : vector<20x4xf32> to vector<20x1xf32>
    %412 = vector.extract_strided_slice %7 {offsets = [1, 0], sizes = [1, 1], strides = [1, 1]} : vector<4x1xf32> to vector<1x1xf32>
    %413 = vector.broadcast %412 : vector<1x1xf32> to vector<20x1xf32>
    %414 = arith.mulf %411, %413 : vector<20x1xf32>
    %415 = arith.addf %410, %414 : vector<20x1xf32>
    %416 = vector.extract_strided_slice %406 {offsets = [0, 2], sizes = [20, 1], strides = [1, 1]} : vector<20x4xf32> to vector<20x1xf32>
    %417 = vector.extract_strided_slice %7 {offsets = [2, 0], sizes = [1, 1], strides = [1, 1]} : vector<4x1xf32> to vector<1x1xf32>
    %418 = vector.broadcast %417 : vector<1x1xf32> to vector<20x1xf32>
    %419 = arith.mulf %416, %418 : vector<20x1xf32>
    %420 = arith.addf %415, %419 : vector<20x1xf32>
    %421 = vector.extract_strided_slice %406 {offsets = [0, 3], sizes = [20, 1], strides = [1, 1]} : vector<20x4xf32> to vector<20x1xf32>
    %422 = vector.extract_strided_slice %7 {offsets = [3, 0], sizes = [1, 1], strides = [1, 1]} : vector<4x1xf32> to vector<1x1xf32>
    %423 = vector.broadcast %422 : vector<1x1xf32> to vector<20x1xf32>
    %424 = arith.mulf %421, %423 : vector<20x1xf32>
    %425 = arith.addf %420, %424 : vector<20x1xf32>
    %426 = vector.broadcast %10 : vector<1x1xf32> to vector<20x1xf32>
    %427 = arith.addf %425, %426 : vector<20x1xf32>
    %428 = vector.extract_strided_slice %376 {offsets = [0, 0], sizes = [4, 1], strides = [1, 1]} : vector<4x4xf32> to vector<4x1xf32>
    %429 = vector.extract_strided_slice %6 {offsets = [0, 0], sizes = [1, 24], strides = [1, 1]} : vector<4x24xf32> to vector<1x24xf32>
    %430 = vector.broadcast %428 : vector<4x1xf32> to vector<4x24xf32>
    %431 = vector.broadcast %429 : vector<1x24xf32> to vector<4x24xf32>
    %432 = arith.mulf %430, %431 : vector<4x24xf32>
    %433 = vector.extract_strided_slice %376 {offsets = [0, 1], sizes = [4, 1], strides = [1, 1]} : vector<4x4xf32> to vector<4x1xf32>
    %434 = vector.extract_strided_slice %6 {offsets = [1, 0], sizes = [1, 24], strides = [1, 1]} : vector<4x24xf32> to vector<1x24xf32>
    %435 = vector.broadcast %433 : vector<4x1xf32> to vector<4x24xf32>
    %436 = vector.broadcast %434 : vector<1x24xf32> to vector<4x24xf32>
    %437 = arith.mulf %435, %436 : vector<4x24xf32>
    %438 = arith.addf %432, %437 : vector<4x24xf32>
    %439 = vector.extract_strided_slice %376 {offsets = [0, 2], sizes = [4, 1], strides = [1, 1]} : vector<4x4xf32> to vector<4x1xf32>
    %440 = vector.extract_strided_slice %6 {offsets = [2, 0], sizes = [1, 24], strides = [1, 1]} : vector<4x24xf32> to vector<1x24xf32>
    %441 = vector.broadcast %439 : vector<4x1xf32> to vector<4x24xf32>
    %442 = vector.broadcast %440 : vector<1x24xf32> to vector<4x24xf32>
    %443 = arith.mulf %441, %442 : vector<4x24xf32>
    %444 = arith.addf %438, %443 : vector<4x24xf32>
    %445 = vector.extract_strided_slice %376 {offsets = [0, 3], sizes = [4, 1], strides = [1, 1]} : vector<4x4xf32> to vector<4x1xf32>
    %446 = vector.extract_strided_slice %6 {offsets = [3, 0], sizes = [1, 24], strides = [1, 1]} : vector<4x24xf32> to vector<1x24xf32>
    %447 = vector.broadcast %445 : vector<4x1xf32> to vector<4x24xf32>
    %448 = vector.broadcast %446 : vector<1x24xf32> to vector<4x24xf32>
    %449 = arith.mulf %447, %448 : vector<4x24xf32>
    %450 = arith.addf %444, %449 : vector<4x24xf32>
    %451 = vector.broadcast %8 : vector<1x24xf32> to vector<4x24xf32>
    %452 = arith.addf %450, %451 : vector<4x24xf32>
    %453 = vector.extract_strided_slice %452 {offsets = [0, 0], sizes = [4, 12], strides = [1, 1]} : vector<4x24xf32> to vector<4x12xf32>
    %454 = vector.extract_strided_slice %452 {offsets = [0, 12], sizes = [4, 12], strides = [1, 1]} : vector<4x24xf32> to vector<4x12xf32>
    %455 = vector.extract_strided_slice %453 {offsets = [0, 0], sizes = [4, 4], strides = [1, 1]} : vector<4x12xf32> to vector<4x4xf32>
    %456 = vector.extract_strided_slice %454 {offsets = [0, 0], sizes = [4, 4], strides = [1, 1]} : vector<4x12xf32> to vector<4x4xf32>
    %457 = arith.addf %455, %456 : vector<4x4xf32>
    %458 = arith.negf %457 : vector<4x4xf32>
    %459 = math.exp %458 : vector<4x4xf32>
    %cst_36 = arith.constant 1.000000e+00 : f32
    %460 = vector.broadcast %cst_36 : f32 to vector<4x4xf32>
    %461 = arith.addf %460, %459 : vector<4x4xf32>
    %462 = arith.divf %460, %461 : vector<4x4xf32>
    %463 = vector.extract_strided_slice %453 {offsets = [0, 4], sizes = [4, 4], strides = [1, 1]} : vector<4x12xf32> to vector<4x4xf32>
    %464 = vector.extract_strided_slice %454 {offsets = [0, 4], sizes = [4, 4], strides = [1, 1]} : vector<4x12xf32> to vector<4x4xf32>
    %465 = arith.addf %463, %464 : vector<4x4xf32>
    %466 = arith.negf %465 : vector<4x4xf32>
    %467 = math.exp %466 : vector<4x4xf32>
    %cst_37 = arith.constant 1.000000e+00 : f32
    %468 = vector.broadcast %cst_37 : f32 to vector<4x4xf32>
    %469 = arith.addf %468, %467 : vector<4x4xf32>
    %470 = arith.divf %468, %469 : vector<4x4xf32>
    %471 = vector.extract_strided_slice %453 {offsets = [0, 8], sizes = [4, 4], strides = [1, 1]} : vector<4x12xf32> to vector<4x4xf32>
    %472 = vector.extract_strided_slice %454 {offsets = [0, 8], sizes = [4, 4], strides = [1, 1]} : vector<4x12xf32> to vector<4x4xf32>
    %473 = arith.mulf %462, %472 : vector<4x4xf32>
    %474 = arith.addf %471, %473 : vector<4x4xf32>
    %475 = math.tanh %474 : vector<4x4xf32>
    %cst_38 = arith.constant 1.000000e+00 : f32
    %476 = vector.broadcast %cst_38 : f32 to vector<4x4xf32>
    %477 = arith.subf %476, %470 : vector<4x4xf32>
    %478 = arith.mulf %477, %475 : vector<4x4xf32>
    %479 = arith.mulf %470, %376 : vector<4x4xf32>
    %480 = arith.addf %478, %479 : vector<4x4xf32>
    %c4 = arith.constant 4 : index
    %c0_39 = arith.constant 0 : index
    %c0_40 = arith.constant 0 : index
    %481 = vector.load %arg1[%c4, %c0_39, %c0_40] : memref<8x20x4xf32, #tpu.memory_space<vmem>>, vector<1x20x4xf32>
    %482 = vector.shape_cast %481 : vector<1x20x4xf32> to vector<20x4xf32>
    %483 = vector.extract_strided_slice %482 {offsets = [0, 0], sizes = [20, 1], strides = [1, 1]} : vector<20x4xf32> to vector<20x1xf32>
    %484 = vector.extract_strided_slice %480 {offsets = [0, 0], sizes = [1, 4], strides = [1, 1]} : vector<4x4xf32> to vector<1x4xf32>
    %485 = vector.broadcast %483 : vector<20x1xf32> to vector<20x4xf32>
    %486 = vector.broadcast %484 : vector<1x4xf32> to vector<20x4xf32>
    %487 = arith.mulf %485, %486 : vector<20x4xf32>
    %488 = vector.extract_strided_slice %482 {offsets = [0, 1], sizes = [20, 1], strides = [1, 1]} : vector<20x4xf32> to vector<20x1xf32>
    %489 = vector.extract_strided_slice %480 {offsets = [1, 0], sizes = [1, 4], strides = [1, 1]} : vector<4x4xf32> to vector<1x4xf32>
    %490 = vector.broadcast %488 : vector<20x1xf32> to vector<20x4xf32>
    %491 = vector.broadcast %489 : vector<1x4xf32> to vector<20x4xf32>
    %492 = arith.mulf %490, %491 : vector<20x4xf32>
    %493 = arith.addf %487, %492 : vector<20x4xf32>
    %494 = vector.extract_strided_slice %482 {offsets = [0, 2], sizes = [20, 1], strides = [1, 1]} : vector<20x4xf32> to vector<20x1xf32>
    %495 = vector.extract_strided_slice %480 {offsets = [2, 0], sizes = [1, 4], strides = [1, 1]} : vector<4x4xf32> to vector<1x4xf32>
    %496 = vector.broadcast %494 : vector<20x1xf32> to vector<20x4xf32>
    %497 = vector.broadcast %495 : vector<1x4xf32> to vector<20x4xf32>
    %498 = arith.mulf %496, %497 : vector<20x4xf32>
    %499 = arith.addf %493, %498 : vector<20x4xf32>
    %500 = vector.extract_strided_slice %482 {offsets = [0, 3], sizes = [20, 1], strides = [1, 1]} : vector<20x4xf32> to vector<20x1xf32>
    %501 = vector.extract_strided_slice %480 {offsets = [3, 0], sizes = [1, 4], strides = [1, 1]} : vector<4x4xf32> to vector<1x4xf32>
    %502 = vector.broadcast %500 : vector<20x1xf32> to vector<20x4xf32>
    %503 = vector.broadcast %501 : vector<1x4xf32> to vector<20x4xf32>
    %504 = arith.mulf %502, %503 : vector<20x4xf32>
    %505 = arith.addf %499, %504 : vector<20x4xf32>
    %cst_41 = arith.constant dense<0.000000e+00> : vector<20x4xf32>
    %506 = tpu.matmul %2, %505, %cst_41 {dimension_numbers = #tpu.dot_dimension_numbers<[1], [0], [0], [1], [0, 0, 1, 1], [], []>} : vector<20x20xf32>, vector<20x4xf32>, vector<20x4xf32> -> vector<20x4xf32>
    %507 = vector.broadcast %9 : vector<1x4xf32> to vector<20x4xf32>
    %508 = arith.addf %506, %507 : vector<20x4xf32>
    %cst_42 = arith.constant 0.000000e+00 : f32
    %509 = vector.broadcast %cst_42 : f32 to vector<20x4xf32>
    %510 = arith.maximumf %508, %509 : vector<20x4xf32>
    %511 = vector.extract_strided_slice %510 {offsets = [0, 0], sizes = [20, 1], strides = [1, 1]} : vector<20x4xf32> to vector<20x1xf32>
    %512 = vector.extract_strided_slice %7 {offsets = [0, 0], sizes = [1, 1], strides = [1, 1]} : vector<4x1xf32> to vector<1x1xf32>
    %513 = vector.broadcast %512 : vector<1x1xf32> to vector<20x1xf32>
    %514 = arith.mulf %511, %513 : vector<20x1xf32>
    %515 = vector.extract_strided_slice %510 {offsets = [0, 1], sizes = [20, 1], strides = [1, 1]} : vector<20x4xf32> to vector<20x1xf32>
    %516 = vector.extract_strided_slice %7 {offsets = [1, 0], sizes = [1, 1], strides = [1, 1]} : vector<4x1xf32> to vector<1x1xf32>
    %517 = vector.broadcast %516 : vector<1x1xf32> to vector<20x1xf32>
    %518 = arith.mulf %515, %517 : vector<20x1xf32>
    %519 = arith.addf %514, %518 : vector<20x1xf32>
    %520 = vector.extract_strided_slice %510 {offsets = [0, 2], sizes = [20, 1], strides = [1, 1]} : vector<20x4xf32> to vector<20x1xf32>
    %521 = vector.extract_strided_slice %7 {offsets = [2, 0], sizes = [1, 1], strides = [1, 1]} : vector<4x1xf32> to vector<1x1xf32>
    %522 = vector.broadcast %521 : vector<1x1xf32> to vector<20x1xf32>
    %523 = arith.mulf %520, %522 : vector<20x1xf32>
    %524 = arith.addf %519, %523 : vector<20x1xf32>
    %525 = vector.extract_strided_slice %510 {offsets = [0, 3], sizes = [20, 1], strides = [1, 1]} : vector<20x4xf32> to vector<20x1xf32>
    %526 = vector.extract_strided_slice %7 {offsets = [3, 0], sizes = [1, 1], strides = [1, 1]} : vector<4x1xf32> to vector<1x1xf32>
    %527 = vector.broadcast %526 : vector<1x1xf32> to vector<20x1xf32>
    %528 = arith.mulf %525, %527 : vector<20x1xf32>
    %529 = arith.addf %524, %528 : vector<20x1xf32>
    %530 = vector.broadcast %10 : vector<1x1xf32> to vector<20x1xf32>
    %531 = arith.addf %529, %530 : vector<20x1xf32>
    %532 = vector.extract_strided_slice %480 {offsets = [0, 0], sizes = [4, 1], strides = [1, 1]} : vector<4x4xf32> to vector<4x1xf32>
    %533 = vector.extract_strided_slice %6 {offsets = [0, 0], sizes = [1, 24], strides = [1, 1]} : vector<4x24xf32> to vector<1x24xf32>
    %534 = vector.broadcast %532 : vector<4x1xf32> to vector<4x24xf32>
    %535 = vector.broadcast %533 : vector<1x24xf32> to vector<4x24xf32>
    %536 = arith.mulf %534, %535 : vector<4x24xf32>
    %537 = vector.extract_strided_slice %480 {offsets = [0, 1], sizes = [4, 1], strides = [1, 1]} : vector<4x4xf32> to vector<4x1xf32>
    %538 = vector.extract_strided_slice %6 {offsets = [1, 0], sizes = [1, 24], strides = [1, 1]} : vector<4x24xf32> to vector<1x24xf32>
    %539 = vector.broadcast %537 : vector<4x1xf32> to vector<4x24xf32>
    %540 = vector.broadcast %538 : vector<1x24xf32> to vector<4x24xf32>
    %541 = arith.mulf %539, %540 : vector<4x24xf32>
    %542 = arith.addf %536, %541 : vector<4x24xf32>
    %543 = vector.extract_strided_slice %480 {offsets = [0, 2], sizes = [4, 1], strides = [1, 1]} : vector<4x4xf32> to vector<4x1xf32>
    %544 = vector.extract_strided_slice %6 {offsets = [2, 0], sizes = [1, 24], strides = [1, 1]} : vector<4x24xf32> to vector<1x24xf32>
    %545 = vector.broadcast %543 : vector<4x1xf32> to vector<4x24xf32>
    %546 = vector.broadcast %544 : vector<1x24xf32> to vector<4x24xf32>
    %547 = arith.mulf %545, %546 : vector<4x24xf32>
    %548 = arith.addf %542, %547 : vector<4x24xf32>
    %549 = vector.extract_strided_slice %480 {offsets = [0, 3], sizes = [4, 1], strides = [1, 1]} : vector<4x4xf32> to vector<4x1xf32>
    %550 = vector.extract_strided_slice %6 {offsets = [3, 0], sizes = [1, 24], strides = [1, 1]} : vector<4x24xf32> to vector<1x24xf32>
    %551 = vector.broadcast %549 : vector<4x1xf32> to vector<4x24xf32>
    %552 = vector.broadcast %550 : vector<1x24xf32> to vector<4x24xf32>
    %553 = arith.mulf %551, %552 : vector<4x24xf32>
    %554 = arith.addf %548, %553 : vector<4x24xf32>
    %555 = vector.broadcast %8 : vector<1x24xf32> to vector<4x24xf32>
    %556 = arith.addf %554, %555 : vector<4x24xf32>
    %557 = vector.extract_strided_slice %556 {offsets = [0, 0], sizes = [4, 12], strides = [1, 1]} : vector<4x24xf32> to vector<4x12xf32>
    %558 = vector.extract_strided_slice %556 {offsets = [0, 12], sizes = [4, 12], strides = [1, 1]} : vector<4x24xf32> to vector<4x12xf32>
    %559 = vector.extract_strided_slice %557 {offsets = [0, 0], sizes = [4, 4], strides = [1, 1]} : vector<4x12xf32> to vector<4x4xf32>
    %560 = vector.extract_strided_slice %558 {offsets = [0, 0], sizes = [4, 4], strides = [1, 1]} : vector<4x12xf32> to vector<4x4xf32>
    %561 = arith.addf %559, %560 : vector<4x4xf32>
    %562 = arith.negf %561 : vector<4x4xf32>
    %563 = math.exp %562 : vector<4x4xf32>
    %cst_43 = arith.constant 1.000000e+00 : f32
    %564 = vector.broadcast %cst_43 : f32 to vector<4x4xf32>
    %565 = arith.addf %564, %563 : vector<4x4xf32>
    %566 = arith.divf %564, %565 : vector<4x4xf32>
    %567 = vector.extract_strided_slice %557 {offsets = [0, 4], sizes = [4, 4], strides = [1, 1]} : vector<4x12xf32> to vector<4x4xf32>
    %568 = vector.extract_strided_slice %558 {offsets = [0, 4], sizes = [4, 4], strides = [1, 1]} : vector<4x12xf32> to vector<4x4xf32>
    %569 = arith.addf %567, %568 : vector<4x4xf32>
    %570 = arith.negf %569 : vector<4x4xf32>
    %571 = math.exp %570 : vector<4x4xf32>
    %cst_44 = arith.constant 1.000000e+00 : f32
    %572 = vector.broadcast %cst_44 : f32 to vector<4x4xf32>
    %573 = arith.addf %572, %571 : vector<4x4xf32>
    %574 = arith.divf %572, %573 : vector<4x4xf32>
    %575 = vector.extract_strided_slice %557 {offsets = [0, 8], sizes = [4, 4], strides = [1, 1]} : vector<4x12xf32> to vector<4x4xf32>
    %576 = vector.extract_strided_slice %558 {offsets = [0, 8], sizes = [4, 4], strides = [1, 1]} : vector<4x12xf32> to vector<4x4xf32>
    %577 = arith.mulf %566, %576 : vector<4x4xf32>
    %578 = arith.addf %575, %577 : vector<4x4xf32>
    %579 = math.tanh %578 : vector<4x4xf32>
    %cst_45 = arith.constant 1.000000e+00 : f32
    %580 = vector.broadcast %cst_45 : f32 to vector<4x4xf32>
    %581 = arith.subf %580, %574 : vector<4x4xf32>
    %582 = arith.mulf %581, %579 : vector<4x4xf32>
    %583 = arith.mulf %574, %480 : vector<4x4xf32>
    %584 = arith.addf %582, %583 : vector<4x4xf32>
    %c5 = arith.constant 5 : index
    %c0_46 = arith.constant 0 : index
    %c0_47 = arith.constant 0 : index
    %585 = vector.load %arg1[%c5, %c0_46, %c0_47] : memref<8x20x4xf32, #tpu.memory_space<vmem>>, vector<1x20x4xf32>
    %586 = vector.shape_cast %585 : vector<1x20x4xf32> to vector<20x4xf32>
    %587 = vector.extract_strided_slice %586 {offsets = [0, 0], sizes = [20, 1], strides = [1, 1]} : vector<20x4xf32> to vector<20x1xf32>
    %588 = vector.extract_strided_slice %584 {offsets = [0, 0], sizes = [1, 4], strides = [1, 1]} : vector<4x4xf32> to vector<1x4xf32>
    %589 = vector.broadcast %587 : vector<20x1xf32> to vector<20x4xf32>
    %590 = vector.broadcast %588 : vector<1x4xf32> to vector<20x4xf32>
    %591 = arith.mulf %589, %590 : vector<20x4xf32>
    %592 = vector.extract_strided_slice %586 {offsets = [0, 1], sizes = [20, 1], strides = [1, 1]} : vector<20x4xf32> to vector<20x1xf32>
    %593 = vector.extract_strided_slice %584 {offsets = [1, 0], sizes = [1, 4], strides = [1, 1]} : vector<4x4xf32> to vector<1x4xf32>
    %594 = vector.broadcast %592 : vector<20x1xf32> to vector<20x4xf32>
    %595 = vector.broadcast %593 : vector<1x4xf32> to vector<20x4xf32>
    %596 = arith.mulf %594, %595 : vector<20x4xf32>
    %597 = arith.addf %591, %596 : vector<20x4xf32>
    %598 = vector.extract_strided_slice %586 {offsets = [0, 2], sizes = [20, 1], strides = [1, 1]} : vector<20x4xf32> to vector<20x1xf32>
    %599 = vector.extract_strided_slice %584 {offsets = [2, 0], sizes = [1, 4], strides = [1, 1]} : vector<4x4xf32> to vector<1x4xf32>
    %600 = vector.broadcast %598 : vector<20x1xf32> to vector<20x4xf32>
    %601 = vector.broadcast %599 : vector<1x4xf32> to vector<20x4xf32>
    %602 = arith.mulf %600, %601 : vector<20x4xf32>
    %603 = arith.addf %597, %602 : vector<20x4xf32>
    %604 = vector.extract_strided_slice %586 {offsets = [0, 3], sizes = [20, 1], strides = [1, 1]} : vector<20x4xf32> to vector<20x1xf32>
    %605 = vector.extract_strided_slice %584 {offsets = [3, 0], sizes = [1, 4], strides = [1, 1]} : vector<4x4xf32> to vector<1x4xf32>
    %606 = vector.broadcast %604 : vector<20x1xf32> to vector<20x4xf32>
    %607 = vector.broadcast %605 : vector<1x4xf32> to vector<20x4xf32>
    %608 = arith.mulf %606, %607 : vector<20x4xf32>
    %609 = arith.addf %603, %608 : vector<20x4xf32>
    %cst_48 = arith.constant dense<0.000000e+00> : vector<20x4xf32>
    %610 = tpu.matmul %2, %609, %cst_48 {dimension_numbers = #tpu.dot_dimension_numbers<[1], [0], [0], [1], [0, 0, 1, 1], [], []>} : vector<20x20xf32>, vector<20x4xf32>, vector<20x4xf32> -> vector<20x4xf32>
    %611 = vector.broadcast %9 : vector<1x4xf32> to vector<20x4xf32>
    %612 = arith.addf %610, %611 : vector<20x4xf32>
    %cst_49 = arith.constant 0.000000e+00 : f32
    %613 = vector.broadcast %cst_49 : f32 to vector<20x4xf32>
    %614 = arith.maximumf %612, %613 : vector<20x4xf32>
    %615 = vector.extract_strided_slice %614 {offsets = [0, 0], sizes = [20, 1], strides = [1, 1]} : vector<20x4xf32> to vector<20x1xf32>
    %616 = vector.extract_strided_slice %7 {offsets = [0, 0], sizes = [1, 1], strides = [1, 1]} : vector<4x1xf32> to vector<1x1xf32>
    %617 = vector.broadcast %616 : vector<1x1xf32> to vector<20x1xf32>
    %618 = arith.mulf %615, %617 : vector<20x1xf32>
    %619 = vector.extract_strided_slice %614 {offsets = [0, 1], sizes = [20, 1], strides = [1, 1]} : vector<20x4xf32> to vector<20x1xf32>
    %620 = vector.extract_strided_slice %7 {offsets = [1, 0], sizes = [1, 1], strides = [1, 1]} : vector<4x1xf32> to vector<1x1xf32>
    %621 = vector.broadcast %620 : vector<1x1xf32> to vector<20x1xf32>
    %622 = arith.mulf %619, %621 : vector<20x1xf32>
    %623 = arith.addf %618, %622 : vector<20x1xf32>
    %624 = vector.extract_strided_slice %614 {offsets = [0, 2], sizes = [20, 1], strides = [1, 1]} : vector<20x4xf32> to vector<20x1xf32>
    %625 = vector.extract_strided_slice %7 {offsets = [2, 0], sizes = [1, 1], strides = [1, 1]} : vector<4x1xf32> to vector<1x1xf32>
    %626 = vector.broadcast %625 : vector<1x1xf32> to vector<20x1xf32>
    %627 = arith.mulf %624, %626 : vector<20x1xf32>
    %628 = arith.addf %623, %627 : vector<20x1xf32>
    %629 = vector.extract_strided_slice %614 {offsets = [0, 3], sizes = [20, 1], strides = [1, 1]} : vector<20x4xf32> to vector<20x1xf32>
    %630 = vector.extract_strided_slice %7 {offsets = [3, 0], sizes = [1, 1], strides = [1, 1]} : vector<4x1xf32> to vector<1x1xf32>
    %631 = vector.broadcast %630 : vector<1x1xf32> to vector<20x1xf32>
    %632 = arith.mulf %629, %631 : vector<20x1xf32>
    %633 = arith.addf %628, %632 : vector<20x1xf32>
    %634 = vector.broadcast %10 : vector<1x1xf32> to vector<20x1xf32>
    %635 = arith.addf %633, %634 : vector<20x1xf32>
    %636 = vector.extract_strided_slice %584 {offsets = [0, 0], sizes = [4, 1], strides = [1, 1]} : vector<4x4xf32> to vector<4x1xf32>
    %637 = vector.extract_strided_slice %6 {offsets = [0, 0], sizes = [1, 24], strides = [1, 1]} : vector<4x24xf32> to vector<1x24xf32>
    %638 = vector.broadcast %636 : vector<4x1xf32> to vector<4x24xf32>
    %639 = vector.broadcast %637 : vector<1x24xf32> to vector<4x24xf32>
    %640 = arith.mulf %638, %639 : vector<4x24xf32>
    %641 = vector.extract_strided_slice %584 {offsets = [0, 1], sizes = [4, 1], strides = [1, 1]} : vector<4x4xf32> to vector<4x1xf32>
    %642 = vector.extract_strided_slice %6 {offsets = [1, 0], sizes = [1, 24], strides = [1, 1]} : vector<4x24xf32> to vector<1x24xf32>
    %643 = vector.broadcast %641 : vector<4x1xf32> to vector<4x24xf32>
    %644 = vector.broadcast %642 : vector<1x24xf32> to vector<4x24xf32>
    %645 = arith.mulf %643, %644 : vector<4x24xf32>
    %646 = arith.addf %640, %645 : vector<4x24xf32>
    %647 = vector.extract_strided_slice %584 {offsets = [0, 2], sizes = [4, 1], strides = [1, 1]} : vector<4x4xf32> to vector<4x1xf32>
    %648 = vector.extract_strided_slice %6 {offsets = [2, 0], sizes = [1, 24], strides = [1, 1]} : vector<4x24xf32> to vector<1x24xf32>
    %649 = vector.broadcast %647 : vector<4x1xf32> to vector<4x24xf32>
    %650 = vector.broadcast %648 : vector<1x24xf32> to vector<4x24xf32>
    %651 = arith.mulf %649, %650 : vector<4x24xf32>
    %652 = arith.addf %646, %651 : vector<4x24xf32>
    %653 = vector.extract_strided_slice %584 {offsets = [0, 3], sizes = [4, 1], strides = [1, 1]} : vector<4x4xf32> to vector<4x1xf32>
    %654 = vector.extract_strided_slice %6 {offsets = [3, 0], sizes = [1, 24], strides = [1, 1]} : vector<4x24xf32> to vector<1x24xf32>
    %655 = vector.broadcast %653 : vector<4x1xf32> to vector<4x24xf32>
    %656 = vector.broadcast %654 : vector<1x24xf32> to vector<4x24xf32>
    %657 = arith.mulf %655, %656 : vector<4x24xf32>
    %658 = arith.addf %652, %657 : vector<4x24xf32>
    %659 = vector.broadcast %8 : vector<1x24xf32> to vector<4x24xf32>
    %660 = arith.addf %658, %659 : vector<4x24xf32>
    %661 = vector.extract_strided_slice %660 {offsets = [0, 0], sizes = [4, 12], strides = [1, 1]} : vector<4x24xf32> to vector<4x12xf32>
    %662 = vector.extract_strided_slice %660 {offsets = [0, 12], sizes = [4, 12], strides = [1, 1]} : vector<4x24xf32> to vector<4x12xf32>
    %663 = vector.extract_strided_slice %661 {offsets = [0, 0], sizes = [4, 4], strides = [1, 1]} : vector<4x12xf32> to vector<4x4xf32>
    %664 = vector.extract_strided_slice %662 {offsets = [0, 0], sizes = [4, 4], strides = [1, 1]} : vector<4x12xf32> to vector<4x4xf32>
    %665 = arith.addf %663, %664 : vector<4x4xf32>
    %666 = arith.negf %665 : vector<4x4xf32>
    %667 = math.exp %666 : vector<4x4xf32>
    %cst_50 = arith.constant 1.000000e+00 : f32
    %668 = vector.broadcast %cst_50 : f32 to vector<4x4xf32>
    %669 = arith.addf %668, %667 : vector<4x4xf32>
    %670 = arith.divf %668, %669 : vector<4x4xf32>
    %671 = vector.extract_strided_slice %661 {offsets = [0, 4], sizes = [4, 4], strides = [1, 1]} : vector<4x12xf32> to vector<4x4xf32>
    %672 = vector.extract_strided_slice %662 {offsets = [0, 4], sizes = [4, 4], strides = [1, 1]} : vector<4x12xf32> to vector<4x4xf32>
    %673 = arith.addf %671, %672 : vector<4x4xf32>
    %674 = arith.negf %673 : vector<4x4xf32>
    %675 = math.exp %674 : vector<4x4xf32>
    %cst_51 = arith.constant 1.000000e+00 : f32
    %676 = vector.broadcast %cst_51 : f32 to vector<4x4xf32>
    %677 = arith.addf %676, %675 : vector<4x4xf32>
    %678 = arith.divf %676, %677 : vector<4x4xf32>
    %679 = vector.extract_strided_slice %661 {offsets = [0, 8], sizes = [4, 4], strides = [1, 1]} : vector<4x12xf32> to vector<4x4xf32>
    %680 = vector.extract_strided_slice %662 {offsets = [0, 8], sizes = [4, 4], strides = [1, 1]} : vector<4x12xf32> to vector<4x4xf32>
    %681 = arith.mulf %670, %680 : vector<4x4xf32>
    %682 = arith.addf %679, %681 : vector<4x4xf32>
    %683 = math.tanh %682 : vector<4x4xf32>
    %cst_52 = arith.constant 1.000000e+00 : f32
    %684 = vector.broadcast %cst_52 : f32 to vector<4x4xf32>
    %685 = arith.subf %684, %678 : vector<4x4xf32>
    %686 = arith.mulf %685, %683 : vector<4x4xf32>
    %687 = arith.mulf %678, %584 : vector<4x4xf32>
    %688 = arith.addf %686, %687 : vector<4x4xf32>
    %c6 = arith.constant 6 : index
    %c0_53 = arith.constant 0 : index
    %c0_54 = arith.constant 0 : index
    %689 = vector.load %arg1[%c6, %c0_53, %c0_54] : memref<8x20x4xf32, #tpu.memory_space<vmem>>, vector<1x20x4xf32>
    %690 = vector.shape_cast %689 : vector<1x20x4xf32> to vector<20x4xf32>
    %691 = vector.extract_strided_slice %690 {offsets = [0, 0], sizes = [20, 1], strides = [1, 1]} : vector<20x4xf32> to vector<20x1xf32>
    %692 = vector.extract_strided_slice %688 {offsets = [0, 0], sizes = [1, 4], strides = [1, 1]} : vector<4x4xf32> to vector<1x4xf32>
    %693 = vector.broadcast %691 : vector<20x1xf32> to vector<20x4xf32>
    %694 = vector.broadcast %692 : vector<1x4xf32> to vector<20x4xf32>
    %695 = arith.mulf %693, %694 : vector<20x4xf32>
    %696 = vector.extract_strided_slice %690 {offsets = [0, 1], sizes = [20, 1], strides = [1, 1]} : vector<20x4xf32> to vector<20x1xf32>
    %697 = vector.extract_strided_slice %688 {offsets = [1, 0], sizes = [1, 4], strides = [1, 1]} : vector<4x4xf32> to vector<1x4xf32>
    %698 = vector.broadcast %696 : vector<20x1xf32> to vector<20x4xf32>
    %699 = vector.broadcast %697 : vector<1x4xf32> to vector<20x4xf32>
    %700 = arith.mulf %698, %699 : vector<20x4xf32>
    %701 = arith.addf %695, %700 : vector<20x4xf32>
    %702 = vector.extract_strided_slice %690 {offsets = [0, 2], sizes = [20, 1], strides = [1, 1]} : vector<20x4xf32> to vector<20x1xf32>
    %703 = vector.extract_strided_slice %688 {offsets = [2, 0], sizes = [1, 4], strides = [1, 1]} : vector<4x4xf32> to vector<1x4xf32>
    %704 = vector.broadcast %702 : vector<20x1xf32> to vector<20x4xf32>
    %705 = vector.broadcast %703 : vector<1x4xf32> to vector<20x4xf32>
    %706 = arith.mulf %704, %705 : vector<20x4xf32>
    %707 = arith.addf %701, %706 : vector<20x4xf32>
    %708 = vector.extract_strided_slice %690 {offsets = [0, 3], sizes = [20, 1], strides = [1, 1]} : vector<20x4xf32> to vector<20x1xf32>
    %709 = vector.extract_strided_slice %688 {offsets = [3, 0], sizes = [1, 4], strides = [1, 1]} : vector<4x4xf32> to vector<1x4xf32>
    %710 = vector.broadcast %708 : vector<20x1xf32> to vector<20x4xf32>
    %711 = vector.broadcast %709 : vector<1x4xf32> to vector<20x4xf32>
    %712 = arith.mulf %710, %711 : vector<20x4xf32>
    %713 = arith.addf %707, %712 : vector<20x4xf32>
    %cst_55 = arith.constant dense<0.000000e+00> : vector<20x4xf32>
    %714 = tpu.matmul %2, %713, %cst_55 {dimension_numbers = #tpu.dot_dimension_numbers<[1], [0], [0], [1], [0, 0, 1, 1], [], []>} : vector<20x20xf32>, vector<20x4xf32>, vector<20x4xf32> -> vector<20x4xf32>
    %715 = vector.broadcast %9 : vector<1x4xf32> to vector<20x4xf32>
    %716 = arith.addf %714, %715 : vector<20x4xf32>
    %cst_56 = arith.constant 0.000000e+00 : f32
    %717 = vector.broadcast %cst_56 : f32 to vector<20x4xf32>
    %718 = arith.maximumf %716, %717 : vector<20x4xf32>
    %719 = vector.extract_strided_slice %718 {offsets = [0, 0], sizes = [20, 1], strides = [1, 1]} : vector<20x4xf32> to vector<20x1xf32>
    %720 = vector.extract_strided_slice %7 {offsets = [0, 0], sizes = [1, 1], strides = [1, 1]} : vector<4x1xf32> to vector<1x1xf32>
    %721 = vector.broadcast %720 : vector<1x1xf32> to vector<20x1xf32>
    %722 = arith.mulf %719, %721 : vector<20x1xf32>
    %723 = vector.extract_strided_slice %718 {offsets = [0, 1], sizes = [20, 1], strides = [1, 1]} : vector<20x4xf32> to vector<20x1xf32>
    %724 = vector.extract_strided_slice %7 {offsets = [1, 0], sizes = [1, 1], strides = [1, 1]} : vector<4x1xf32> to vector<1x1xf32>
    %725 = vector.broadcast %724 : vector<1x1xf32> to vector<20x1xf32>
    %726 = arith.mulf %723, %725 : vector<20x1xf32>
    %727 = arith.addf %722, %726 : vector<20x1xf32>
    %728 = vector.extract_strided_slice %718 {offsets = [0, 2], sizes = [20, 1], strides = [1, 1]} : vector<20x4xf32> to vector<20x1xf32>
    %729 = vector.extract_strided_slice %7 {offsets = [2, 0], sizes = [1, 1], strides = [1, 1]} : vector<4x1xf32> to vector<1x1xf32>
    %730 = vector.broadcast %729 : vector<1x1xf32> to vector<20x1xf32>
    %731 = arith.mulf %728, %730 : vector<20x1xf32>
    %732 = arith.addf %727, %731 : vector<20x1xf32>
    %733 = vector.extract_strided_slice %718 {offsets = [0, 3], sizes = [20, 1], strides = [1, 1]} : vector<20x4xf32> to vector<20x1xf32>
    %734 = vector.extract_strided_slice %7 {offsets = [3, 0], sizes = [1, 1], strides = [1, 1]} : vector<4x1xf32> to vector<1x1xf32>
    %735 = vector.broadcast %734 : vector<1x1xf32> to vector<20x1xf32>
    %736 = arith.mulf %733, %735 : vector<20x1xf32>
    %737 = arith.addf %732, %736 : vector<20x1xf32>
    %738 = vector.broadcast %10 : vector<1x1xf32> to vector<20x1xf32>
    %739 = arith.addf %737, %738 : vector<20x1xf32>
    %740 = vector.extract_strided_slice %688 {offsets = [0, 0], sizes = [4, 1], strides = [1, 1]} : vector<4x4xf32> to vector<4x1xf32>
    %741 = vector.extract_strided_slice %6 {offsets = [0, 0], sizes = [1, 24], strides = [1, 1]} : vector<4x24xf32> to vector<1x24xf32>
    %742 = vector.broadcast %740 : vector<4x1xf32> to vector<4x24xf32>
    %743 = vector.broadcast %741 : vector<1x24xf32> to vector<4x24xf32>
    %744 = arith.mulf %742, %743 : vector<4x24xf32>
    %745 = vector.extract_strided_slice %688 {offsets = [0, 1], sizes = [4, 1], strides = [1, 1]} : vector<4x4xf32> to vector<4x1xf32>
    %746 = vector.extract_strided_slice %6 {offsets = [1, 0], sizes = [1, 24], strides = [1, 1]} : vector<4x24xf32> to vector<1x24xf32>
    %747 = vector.broadcast %745 : vector<4x1xf32> to vector<4x24xf32>
    %748 = vector.broadcast %746 : vector<1x24xf32> to vector<4x24xf32>
    %749 = arith.mulf %747, %748 : vector<4x24xf32>
    %750 = arith.addf %744, %749 : vector<4x24xf32>
    %751 = vector.extract_strided_slice %688 {offsets = [0, 2], sizes = [4, 1], strides = [1, 1]} : vector<4x4xf32> to vector<4x1xf32>
    %752 = vector.extract_strided_slice %6 {offsets = [2, 0], sizes = [1, 24], strides = [1, 1]} : vector<4x24xf32> to vector<1x24xf32>
    %753 = vector.broadcast %751 : vector<4x1xf32> to vector<4x24xf32>
    %754 = vector.broadcast %752 : vector<1x24xf32> to vector<4x24xf32>
    %755 = arith.mulf %753, %754 : vector<4x24xf32>
    %756 = arith.addf %750, %755 : vector<4x24xf32>
    %757 = vector.extract_strided_slice %688 {offsets = [0, 3], sizes = [4, 1], strides = [1, 1]} : vector<4x4xf32> to vector<4x1xf32>
    %758 = vector.extract_strided_slice %6 {offsets = [3, 0], sizes = [1, 24], strides = [1, 1]} : vector<4x24xf32> to vector<1x24xf32>
    %759 = vector.broadcast %757 : vector<4x1xf32> to vector<4x24xf32>
    %760 = vector.broadcast %758 : vector<1x24xf32> to vector<4x24xf32>
    %761 = arith.mulf %759, %760 : vector<4x24xf32>
    %762 = arith.addf %756, %761 : vector<4x24xf32>
    %763 = vector.broadcast %8 : vector<1x24xf32> to vector<4x24xf32>
    %764 = arith.addf %762, %763 : vector<4x24xf32>
    %765 = vector.extract_strided_slice %764 {offsets = [0, 0], sizes = [4, 12], strides = [1, 1]} : vector<4x24xf32> to vector<4x12xf32>
    %766 = vector.extract_strided_slice %764 {offsets = [0, 12], sizes = [4, 12], strides = [1, 1]} : vector<4x24xf32> to vector<4x12xf32>
    %767 = vector.extract_strided_slice %765 {offsets = [0, 0], sizes = [4, 4], strides = [1, 1]} : vector<4x12xf32> to vector<4x4xf32>
    %768 = vector.extract_strided_slice %766 {offsets = [0, 0], sizes = [4, 4], strides = [1, 1]} : vector<4x12xf32> to vector<4x4xf32>
    %769 = arith.addf %767, %768 : vector<4x4xf32>
    %770 = arith.negf %769 : vector<4x4xf32>
    %771 = math.exp %770 : vector<4x4xf32>
    %cst_57 = arith.constant 1.000000e+00 : f32
    %772 = vector.broadcast %cst_57 : f32 to vector<4x4xf32>
    %773 = arith.addf %772, %771 : vector<4x4xf32>
    %774 = arith.divf %772, %773 : vector<4x4xf32>
    %775 = vector.extract_strided_slice %765 {offsets = [0, 4], sizes = [4, 4], strides = [1, 1]} : vector<4x12xf32> to vector<4x4xf32>
    %776 = vector.extract_strided_slice %766 {offsets = [0, 4], sizes = [4, 4], strides = [1, 1]} : vector<4x12xf32> to vector<4x4xf32>
    %777 = arith.addf %775, %776 : vector<4x4xf32>
    %778 = arith.negf %777 : vector<4x4xf32>
    %779 = math.exp %778 : vector<4x4xf32>
    %cst_58 = arith.constant 1.000000e+00 : f32
    %780 = vector.broadcast %cst_58 : f32 to vector<4x4xf32>
    %781 = arith.addf %780, %779 : vector<4x4xf32>
    %782 = arith.divf %780, %781 : vector<4x4xf32>
    %783 = vector.extract_strided_slice %765 {offsets = [0, 8], sizes = [4, 4], strides = [1, 1]} : vector<4x12xf32> to vector<4x4xf32>
    %784 = vector.extract_strided_slice %766 {offsets = [0, 8], sizes = [4, 4], strides = [1, 1]} : vector<4x12xf32> to vector<4x4xf32>
    %785 = arith.mulf %774, %784 : vector<4x4xf32>
    %786 = arith.addf %783, %785 : vector<4x4xf32>
    %787 = math.tanh %786 : vector<4x4xf32>
    %cst_59 = arith.constant 1.000000e+00 : f32
    %788 = vector.broadcast %cst_59 : f32 to vector<4x4xf32>
    %789 = arith.subf %788, %782 : vector<4x4xf32>
    %790 = arith.mulf %789, %787 : vector<4x4xf32>
    %791 = arith.mulf %782, %688 : vector<4x4xf32>
    %792 = arith.addf %790, %791 : vector<4x4xf32>
    %c7 = arith.constant 7 : index
    %c0_60 = arith.constant 0 : index
    %c0_61 = arith.constant 0 : index
    %793 = vector.load %arg1[%c7, %c0_60, %c0_61] : memref<8x20x4xf32, #tpu.memory_space<vmem>>, vector<1x20x4xf32>
    %794 = vector.shape_cast %793 : vector<1x20x4xf32> to vector<20x4xf32>
    %795 = vector.extract_strided_slice %794 {offsets = [0, 0], sizes = [20, 1], strides = [1, 1]} : vector<20x4xf32> to vector<20x1xf32>
    %796 = vector.extract_strided_slice %792 {offsets = [0, 0], sizes = [1, 4], strides = [1, 1]} : vector<4x4xf32> to vector<1x4xf32>
    %797 = vector.broadcast %795 : vector<20x1xf32> to vector<20x4xf32>
    %798 = vector.broadcast %796 : vector<1x4xf32> to vector<20x4xf32>
    %799 = arith.mulf %797, %798 : vector<20x4xf32>
    %800 = vector.extract_strided_slice %794 {offsets = [0, 1], sizes = [20, 1], strides = [1, 1]} : vector<20x4xf32> to vector<20x1xf32>
    %801 = vector.extract_strided_slice %792 {offsets = [1, 0], sizes = [1, 4], strides = [1, 1]} : vector<4x4xf32> to vector<1x4xf32>
    %802 = vector.broadcast %800 : vector<20x1xf32> to vector<20x4xf32>
    %803 = vector.broadcast %801 : vector<1x4xf32> to vector<20x4xf32>
    %804 = arith.mulf %802, %803 : vector<20x4xf32>
    %805 = arith.addf %799, %804 : vector<20x4xf32>
    %806 = vector.extract_strided_slice %794 {offsets = [0, 2], sizes = [20, 1], strides = [1, 1]} : vector<20x4xf32> to vector<20x1xf32>
    %807 = vector.extract_strided_slice %792 {offsets = [2, 0], sizes = [1, 4], strides = [1, 1]} : vector<4x4xf32> to vector<1x4xf32>
    %808 = vector.broadcast %806 : vector<20x1xf32> to vector<20x4xf32>
    %809 = vector.broadcast %807 : vector<1x4xf32> to vector<20x4xf32>
    %810 = arith.mulf %808, %809 : vector<20x4xf32>
    %811 = arith.addf %805, %810 : vector<20x4xf32>
    %812 = vector.extract_strided_slice %794 {offsets = [0, 3], sizes = [20, 1], strides = [1, 1]} : vector<20x4xf32> to vector<20x1xf32>
    %813 = vector.extract_strided_slice %792 {offsets = [3, 0], sizes = [1, 4], strides = [1, 1]} : vector<4x4xf32> to vector<1x4xf32>
    %814 = vector.broadcast %812 : vector<20x1xf32> to vector<20x4xf32>
    %815 = vector.broadcast %813 : vector<1x4xf32> to vector<20x4xf32>
    %816 = arith.mulf %814, %815 : vector<20x4xf32>
    %817 = arith.addf %811, %816 : vector<20x4xf32>
    %cst_62 = arith.constant dense<0.000000e+00> : vector<20x4xf32>
    %818 = tpu.matmul %2, %817, %cst_62 {dimension_numbers = #tpu.dot_dimension_numbers<[1], [0], [0], [1], [0, 0, 1, 1], [], []>} : vector<20x20xf32>, vector<20x4xf32>, vector<20x4xf32> -> vector<20x4xf32>
    %819 = vector.broadcast %9 : vector<1x4xf32> to vector<20x4xf32>
    %820 = arith.addf %818, %819 : vector<20x4xf32>
    %cst_63 = arith.constant 0.000000e+00 : f32
    %821 = vector.broadcast %cst_63 : f32 to vector<20x4xf32>
    %822 = arith.maximumf %820, %821 : vector<20x4xf32>
    %823 = vector.extract_strided_slice %822 {offsets = [0, 0], sizes = [20, 1], strides = [1, 1]} : vector<20x4xf32> to vector<20x1xf32>
    %824 = vector.extract_strided_slice %7 {offsets = [0, 0], sizes = [1, 1], strides = [1, 1]} : vector<4x1xf32> to vector<1x1xf32>
    %825 = vector.broadcast %824 : vector<1x1xf32> to vector<20x1xf32>
    %826 = arith.mulf %823, %825 : vector<20x1xf32>
    %827 = vector.extract_strided_slice %822 {offsets = [0, 1], sizes = [20, 1], strides = [1, 1]} : vector<20x4xf32> to vector<20x1xf32>
    %828 = vector.extract_strided_slice %7 {offsets = [1, 0], sizes = [1, 1], strides = [1, 1]} : vector<4x1xf32> to vector<1x1xf32>
    %829 = vector.broadcast %828 : vector<1x1xf32> to vector<20x1xf32>
    %830 = arith.mulf %827, %829 : vector<20x1xf32>
    %831 = arith.addf %826, %830 : vector<20x1xf32>
    %832 = vector.extract_strided_slice %822 {offsets = [0, 2], sizes = [20, 1], strides = [1, 1]} : vector<20x4xf32> to vector<20x1xf32>
    %833 = vector.extract_strided_slice %7 {offsets = [2, 0], sizes = [1, 1], strides = [1, 1]} : vector<4x1xf32> to vector<1x1xf32>
    %834 = vector.broadcast %833 : vector<1x1xf32> to vector<20x1xf32>
    %835 = arith.mulf %832, %834 : vector<20x1xf32>
    %836 = arith.addf %831, %835 : vector<20x1xf32>
    %837 = vector.extract_strided_slice %822 {offsets = [0, 3], sizes = [20, 1], strides = [1, 1]} : vector<20x4xf32> to vector<20x1xf32>
    %838 = vector.extract_strided_slice %7 {offsets = [3, 0], sizes = [1, 1], strides = [1, 1]} : vector<4x1xf32> to vector<1x1xf32>
    %839 = vector.broadcast %838 : vector<1x1xf32> to vector<20x1xf32>
    %840 = arith.mulf %837, %839 : vector<20x1xf32>
    %841 = arith.addf %836, %840 : vector<20x1xf32>
    %842 = vector.broadcast %10 : vector<1x1xf32> to vector<20x1xf32>
    %843 = arith.addf %841, %842 : vector<20x1xf32>
    %c0_64 = arith.constant 0 : index
    %c0_65 = arith.constant 0 : index
    %844 = vector.load %arg7[%c0_64, %c0_65] : memref<4x4xf32, #tpu.memory_space<vmem>>, vector<4x4xf32>
    tpu.vector_store %arg7[%c0_64, %c0_65], %792 {strides = array<i32>} : memref<4x4xf32, #tpu.memory_space<vmem>>, vector<4x4xf32>,
    %c3_i32 = arith.constant 3 : i32
    %845 = arith.cmpi eq, %arg0, %c3_i32 : i32
    %846 = arith.extui %845 : i1 to i32
    %c0_i32_66 = arith.constant 0 : i32
    %847 = arith.cmpi ne, %846, %c0_i32_66 : i32
    scf.if %847 {
      %c0_69 = arith.constant 0 : index
      %c0_70 = arith.constant 0 : index
      %851 = vector.load %arg6[%c0_69, %c0_70] : memref<4x4xf32, #tpu.memory_space<vmem>>, vector<4x4xf32>
      tpu.vector_store %arg6[%c0_69, %c0_70], %792 {strides = array<i32>} : memref<4x4xf32, #tpu.memory_space<vmem>>, vector<4x4xf32>,
    } else {
    }
    %848 = tpu.concatenate %115, %219, %323, %427, %531, %635, %739, %843 in 1 : vector<20x1xf32>, vector<20x1xf32>, vector<20x1xf32>, vector<20x1xf32>, vector<20x1xf32>, vector<20x1xf32>, vector<20x1xf32>, vector<20x1xf32> -> vector<20x8xf32>
    %849 = tpu.transpose %848, [1, 0] : vector<20x8xf32> -> vector<8x20xf32>
    %c0_67 = arith.constant 0 : index
    %c0_68 = arith.constant 0 : index
    %850 = vector.load %arg5[%c0_67, %c0_68] : memref<8x20xf32, #tpu.memory_space<vmem>>, vector<8x20xf32>
    tpu.vector_store %arg5[%c0_67, %c0_68], %849 {strides = array<i32>} : memref<8x20xf32, #tpu.memory_space<vmem>>, vector<8x20xf32>,
    return
  }
  func.func @transform_0(%arg0: i32) -> (i32, i32, i32) {
    %c0_i32 = arith.constant 0 : i32
    %c0_i32_0 = arith.constant 0 : i32
    %c0_i32_1 = arith.constant 0 : i32
    return %arg0, %c0_i32, %c0_i32_0 : i32, i32, i32
  }
  func.func @transform_1(%arg0: i32) -> (i32, i32) {
    %c0_i32 = arith.constant 0 : i32
    %c0_i32_0 = arith.constant 0 : i32
    %c0_i32_1 = arith.constant 0 : i32
    return %c0_i32, %c0_i32_0 : i32, i32
  }
  func.func @transform_2(%arg0: i32) -> (i32, i32) {
    %c0_i32 = arith.constant 0 : i32
    %c0_i32_0 = arith.constant 0 : i32
    %c0_i32_1 = arith.constant 0 : i32
    return %c0_i32, %c0_i32_0 : i32, i32
  }
  func.func @transform_3(%arg0: i32) -> (i32, i32) {
    %c0_i32 = arith.constant 0 : i32
    %c0_i32_0 = arith.constant 0 : i32
    %c0_i32_1 = arith.constant 0 : i32
    return %c0_i32, %c0_i32_0 : i32, i32
  }
  func.func @transform_4(%arg0: i32) -> (i32, i32) {
    %c0_i32 = arith.constant 0 : i32
    %c0_i32_0 = arith.constant 0 : i32
    return %arg0, %c0_i32 : i32, i32
  }
  func.func @transform_5(%arg0: i32) -> (i32, i32) {
    %c0_i32 = arith.constant 0 : i32
    %c0_i32_0 = arith.constant 0 : i32
    %c0_i32_1 = arith.constant 0 : i32
    return %c0_i32, %c0_i32_0 : i32, i32
  }
}

</mosaic_0001>

<bundles_post_ra>
// kernel: evolvegcno_rollout.1
= control target key start
LH: loop header
LB: loop body
LE: loop exit
PB: predicated region body
PF: predicated region fallthrough
CT: control target
= control target key end

     0   :  { %11 = vsyncpa [#allocation4], 0  ;;  %s3532_s18 = smov 0   ;;  %s4901_s0 = inlined_call_operand.vmem [shape: f32[32,20,4], index: 0, kind: input, shape index: {}]   ;;  %s4902_s1 = inlined_call_operand.vmem [shape: f32[20,20], index: 1, kind: input, shape index: {}]   ;;  %s4903_s2 = inlined_call_operand.vmem [shape: f32[4,29], index: 2, kind: input, shape index: {}]   ;;  %s4904_s3 = inlined_call_operand.vmem [shape: f32[1,29], index: 3, kind: input, shape index: {}]   ;;  %s4905_s4 = inlined_call_operand.vmem [shape: f32[32,20], index: 4, kind: output, shape index: {0}]   ;;  %s4906_s5 = inlined_call_operand.hbm [shape: f32[4,4], index: 5, kind: output, shape index: {1}]  }
   0x1 LB: > { %s3538_s19 = sadd.s32 4294967295, %s3468_s18   ;;  %p2951_p0 = scmp.ge.s32.totalorder %s3468_s18, 1  ;;  %s3468_s18 = sphi %s3532_s18, %s17_s18  }
   0x2   : > { %p188_p1 = scmp.lt.s32.totalorder %s3468_s18, 5 }
   0x4   : > { %p189_p2 = pnand %p2951_p0, %p188_p1 }
   0x6   : > { %192 = sbr.rel (%p189_p2) target bundleno = 6104 (0x17d8), region = 36 }
   0xd   : > { %s2952_s20 = sshll.u32 %s3538_s19, 3  ;;  %p223_p3 = scmp.lt.s32.totalorder %s3538_s19, 3  ;;  %v227_v0 = vld [vmem:[%s4903_s2] sm:$0xf]  ;;  %v3560_v3 = vld [vmem:[%s4902_s1 + $0x8] sm:$0xff] }
   0xe   : > { %v3550_v1 = vld [vmem:[%s4904_s3] ss:$0 sm:$0xff]  ;;  %p217_p4 = scmp.lt.s32.totalorder %s2952_s20, 31  ;;  %4946 = vst [vmem:[#allocation7_spill] sm:$0xff] %v3560_v3  ;;  %v3565_v4 = vld [vmem:[%s4902_s1 + $0x10] sm:$0xf] }
   0xf   : > { %v3555_v2 = vld [vmem:[%s4902_s1] sm:$0xff]  ;;  %4947 = vst [vmem:[#allocation8_spill] sm:$0xff] %v3565_v4  ;;  %s224_s6 = scalar_select %p223_p3, %s3538_s19, 3 }
  0x10   : > { %4945 = vst [vmem:[#allocation6_spill] sm:$0xff] %v3555_v2  ;;  %s5036_s20 = smov (!%p217_p4, %s2952_s20), 31  ;;  %p2955_p5 = scmp.ne.s32.totalorder %s3538_s19, 0 }
  0x11   : > { %s2954_s7 = sshll.u32 %s224_s6, 3  ;;  %s3215_s8 = smul.u32 24, %s5036_s20  ;;  %vm236_vm0 = vcmask (!%p2955_p5), 27648  }
  0x12   : > { %s3571_s11 = scalar_lea.vmem %s4905_s4, %s2954_s7  ;;  %235 = sbr.rel (%p2955_p5) target bundleno = 25 (0x19), region = 40  ;;  %237 = vst.msk [vmem:[#allocation2] sm:$0xf] (!%p2955_p5), %vm236_vm0, %v227_v0 }
  0x13   : > { %s3576_s14 = scalar_lea.vmem %s4901_s0, %s3215_s8 }
  0x19 PF: > { %v238_v5 = vld [vmem:[#allocation2] sm:$0xf]  ;;  %v4914_v6 = vmov 0   ;;  %v4917_v7 = vmov 2   ;;  %v4911_v8 = vmov 1   ;;  %v4912_v9 = vmov 3  }
  0x1a   : > { %3262 = vset.pattern.permute.xlu0 %v4914_v6  ;;  %3264 = vset.pattern.permute.xlu1 %v4917_v7  ;;  %s3474_s15 = smov 4   ;;  %v244_v10 = vlaneseq  ;;  %s3475_s16 = smov 108   ;;  %v3478_v43 = vmov 8   ;;  %v3479_v44 = vmov 9   ;;  %v3481_v52 = vmov 10  }
  0x1b   : > { %241 = vperm.xlu0 %3262, %v238_v5   ;;  %260 = vperm.xlu1 %3264, %v238_v5   ;;  %s3476_s17 = smov 116   ;;  %s3477_s20 = smov 8   ;;  %v3482_v53 = vmov 11   ;;  %vm3484_vm1 = vmmov 0   ;;  %vm435_vm2 = vcmask 1043456   ;;  %vm425_vm3 = vcmask 162816  }
  0x1c   : > { %v245_v11 = vshrl.u32 %v244_v10, 7  ;;  %s3480_s21 = smov 124   ;;  %s3486_s22 = smov 120   ;;  %vm2718_vm4 = vcmask 27648  }
  0x1d   : > { %s3487_s23 = smov 104   ;;  %s3488_s24 = smov 100  }
  0x1e   : > { %v3585_v12 = vsub.s32 0, %v245_v11  ;;  %v3587_v13 = vsub.s32 1, %v245_v11  ;;  %v3589_v15 = vsub.s32 2, %v245_v11  ;;  %v3591_v17 = vsub.s32 3, %v245_v11  ;;  %s3489_s25 = smov 101   ;;  %s3490_s26 = smov 127  }
  0x1f   : > { %3263 = vset.pattern.permute.xlu0 %v4911_v8  ;;  %3265 = vset.pattern.permute.xlu1 %v4912_v9  ;;  %s3491_s27 = smov 102   ;;  %s3492_s28 = smov 126  }
  0x20   : > { %250 = vperm.xlu0 %3263, %v238_v5   ;;  %270 = vperm.xlu1 %3265, %v238_v5   ;;  %4948 = vst [vmem:[#allocation9_spill] sm:$0xff] %v3585_v12  ;;  %4949 = vst [vmem:[#allocation10_spill] sm:$0xff] %v3587_v13  ;;  %v3594_v18 = vrot.slane %v227_v0, %v3585_v12  ;;  %v3597_v19 = vrot.slane %v227_v0, %v3587_v13  ;;  %s3493_s29 = smov 103   ;;  %s3494_s30 = smov 125  }
  0x21   : > { %4950 = vst [vmem:[#allocation11_spill] sm:$0xff] %v3589_v15  ;;  %4951 = vst [vmem:[#allocation12_spill] sm:$0xff] %v3591_v17  ;;  %v3600_v20 = vrot.slane %v227_v0, %v3589_v15  ;;  %v3603_v21 = vrot.slane %v227_v0, %v3591_v17  ;;  %p3018_p6 = scmp.ne.s32.totalorder %s3538_s19, 3 }
  0x24   : > { %284 = vrot.lane.b32.xlu1 %v3550_v1, %s3474_s15  ;;  %3267 = vset.pattern.permute.xlu0 %v3479_v44 }
  0x25   : > { %3266 = vset.pattern.permute.xlu1 %v3478_v43 }
  0x9a   : > { %v242_v14 = vpop.permute.xlu0 %241  ;;  %v261_v16 = vpop.permute.xlu1 %260 }
  0x9b   : > { %v248_v24 = vmul.f32 %v3594_v18, %v242_v14  ;;  %v267_v26 = vmul.f32 %v3600_v20, %v261_v16 }
  0x9f   : > { %v251_v22 = vpop.permute.xlu0 %250  ;;  %v271_v23 = vpop.permute.xlu1 %270 }
  0xa0   : > { %v257_v25 = vmul.f32 %v3597_v19, %v251_v22  ;;  %v277_v28 = vmul.f32 %v3603_v21, %v271_v23 }
  0xa2   : > { %v258_v27 = vadd.f32 %v257_v25, %v248_v24 }
  0xa3   : > { %v3609_v30 = vpop.permute.xlu1 %284 }
  0xa4   : > { %v268_v29 = vadd.f32 %v267_v26, %v258_v27 }
  0xa6   : > { %v278_v31 = vadd.f32 %v277_v28, %v268_v29 }
  0xa8   : > { %v287_v32 = vadd.f32 %v3609_v30, %v278_v31 }
  0xaa   : > { %299 = vrot.lane.b32.xlu1 %v287_v32, %s3475_s16  ;;  %289 = vrot.lane.b32.xlu0 %v287_v32, %s3476_s17 }
 0x11c   : > { %v290_v33 = vpop.permute.xlu0 %289  ;;  %v300_v39 = vpop.permute.xlu1 %299 }
 0x11d   : > { %v292_v34 = vadd.f32 %v290_v33, %v287_v32 }
 0x11f   : > { %v2957_v35 = vmul.f32 -1.442695, %v292_v34 }
 0x121   : > { %3384 = vpow2.f32 %v2957_v35 }
 0x12b   : > { %v3385_v36 = vpop.eup %3384 }
 0x12c   : > { %v296_v37 = vadd.f32 1.0, %v3385_v36 }
 0x12e   : > { %3386 = vrcp.f32 %v296_v37 }
 0x138   : > { %v3387_v38 = vpop.eup %3386 }
 0x139   : > { %v302_v40 = vmul.f32 %v3387_v38, %v300_v39  ;;  %v309_v47 = vsub.f32 1.0, %v3387_v38 }
 0x13b   : > { %304 = vrot.lane.b32.xlu0 %v302_v40, %s3477_s20 }
 0x13f   : > { %315 = vrot.lane.b32.xlu0 %v238_v5, %s3477_s20 }
 0x1ad   : > { %v305_v41 = vpop.permute.xlu0 %304 }
 0x1ae   : > { %v307_v42 = vadd.f32 %v305_v41, %v287_v32 }
 0x1b0   : > { %3388 = vtanh.f32 %v307_v42 }
 0x1b1   : > { %v316_v46 = vpop.permute.xlu0 %315 }
 0x1b2   : > { %v318_v49 = vmul.f32 %v3387_v38, %v316_v46 }
 0x1ba   : > { %v3389_v45 = vpop.eup %3388 }
 0x1bb   : > { %311 = vrot.lane.b32.xlu1 %v3389_v45, %s3480_s21 }
 0x22d   : > { %v312_v48 = vpop.permute.xlu1 %311 }
 0x22e   : > { %v314_v50 = vmul.f32 %v312_v48, %v309_v47 }
 0x230   : > { %v3619_v51 = vadd.f32 %v318_v49, %v314_v50 }
 0x232   : > { %607 = vperm.xlu0 %3267, %v3619_v51   ;;  %602 = vperm.xlu1 %3266, %v3619_v51  }
 0x236   : > { %3268 = vset.pattern.permute.xlu1 %v3481_v52  ;;  %3270 = vset.pattern.permute.xlu0 %v3478_v43 }
 0x237   : > { %613 = vperm.xlu1 %3268, %v3619_v51  }
 0x23b   : > { %3269 = vset.pattern.permute.xlu1 %v3482_v53 }
 0x23c   : > { %619 = vperm.xlu1 %3269, %v3619_v51  }
 0x240   : > { %3271 = vset.pattern.permute.xlu1 %v3479_v44 }
 0x2b1   : > { %v603_v54 = vpop.permute.xlu1 %602  ;;  %v608_v55 = vpop.permute.xlu0 %607 }
 0x2b2   : > { %v610_v56 = vmul.f32 %v608_v55, %v3597_v19  ;;  %v605_v57 = vmul.f32 %v603_v54, %v3594_v18 }
 0x2b4   : > { %v611_v60 = vadd.f32 %v610_v56, %v605_v57 }
 0x2b6   : > { %v614_v58 = vpop.permute.xlu1 %613 }
 0x2b7   : > { %v616_v59 = vmul.f32 %v614_v58, %v3600_v20 }
 0x2b9   : > { %v617_v62 = vadd.f32 %v616_v59, %v611_v60 }
 0x2bb   : > { %v620_v61 = vpop.permute.xlu1 %619 }
 0x2bc   : > { %v622_v63 = vmul.f32 %v620_v61, %v3603_v21 }
 0x2be   : > { %v623_v0 = vadd.f32 %v622_v63, %v617_v62 }
 0x2c0   : > { %v624_v5 = vadd.f32 %v623_v0, %v3609_v30 }
 0x2c2   : > { %636 = vrot.lane.b32.xlu1 %v624_v5, %s3475_s16  ;;  %626 = vrot.lane.b32.xlu0 %v624_v5, %s3476_s17 }
 0x334   : > { %v627_v10 = vpop.permute.xlu0 %626  ;;  %v637_v24 = vpop.permute.xlu1 %636 }
 0x335   : > { %v629_v11 = vadd.f32 %v627_v10, %v624_v5 }
 0x337   : > { %v2962_v14 = vmul.f32 -1.442695, %v629_v11 }
 0x339   : > { %3390 = vpow2.f32 %v2962_v14 }
 0x343   : > { %v3391_v16 = vpop.eup %3390 }
 0x344   : > { %v633_v22 = vadd.f32 1.0, %v3391_v16 }
 0x346   : > { %3392 = vrcp.f32 %v633_v22 }
 0x350   : > { %v3393_v23 = vpop.eup %3392 }
 0x351   : > { %v639_v25 = vmul.f32 %v3393_v23, %v637_v24  ;;  %v646_v29 = vsub.f32 1.0, %v3393_v23  ;;  %v652_v32 = vmul.f32 %v3393_v23, %v3619_v51 }
 0x353   : > { %641 = vrot.lane.b32.xlu0 %v639_v25, %s3477_s20 }
 0x3c5   : > { %v642_v26 = vpop.permute.xlu0 %641 }
 0x3c6   : > { %v644_v27 = vadd.f32 %v642_v26, %v624_v5 }
 0x3c8   : > { %3394 = vtanh.f32 %v644_v27 }
 0x3d2   : > { %v3395_v28 = vpop.eup %3394 }
 0x3d3   : > { %648 = vrot.lane.b32.xlu1 %v3395_v28, %s3480_s21 }
 0x445   : > { %v649_v31 = vpop.permute.xlu1 %648 }
 0x446   : > { %v651_v33 = vmul.f32 %v649_v31, %v646_v29 }
 0x448   : > { %v3639_v34 = vadd.f32 %v652_v32, %v651_v33 }
 0x44a   : > { %909 = vperm.xlu1 %3271, %v3639_v34   ;;  %904 = vperm.xlu0 %3270, %v3639_v34  }
 0x44e   : > { %3272 = vset.pattern.permute.xlu1 %v3481_v52  ;;  %3273 = vset.pattern.permute.xlu0 %v3482_v53 }
 0x44f   : > { %915 = vperm.xlu1 %3272, %v3639_v34   ;;  %921 = vperm.xlu0 %3273, %v3639_v34  }
 0x453   : > { %3275 = vset.pattern.permute.xlu1 %v3479_v44  ;;  %3274 = vset.pattern.permute.xlu0 %v3478_v43 }
 0x4c9   : > { %v910_v35 = vpop.permute.xlu1 %909  ;;  %v905_v36 = vpop.permute.xlu0 %904 }
 0x4ca   : > { %v912_v37 = vmul.f32 %v910_v35, %v3597_v19  ;;  %v907_v38 = vmul.f32 %v905_v36, %v3594_v18 }
 0x4cc   : > { %v913_v41 = vadd.f32 %v912_v37, %v907_v38 }
 0x4ce   : > { %v916_v39 = vpop.permute.xlu1 %915  ;;  %v922_v40 = vpop.permute.xlu0 %921 }
 0x4cf   : > { %v918_v42 = vmul.f32 %v916_v39, %v3600_v20  ;;  %v924_v46 = vmul.f32 %v922_v40, %v3603_v21 }
 0x4d1   : > { %v919_v45 = vadd.f32 %v918_v42, %v913_v41 }
 0x4d3   : > { %v925_v47 = vadd.f32 %v924_v46, %v919_v45 }
 0x4d5   : > { %v926_v48 = vadd.f32 %v925_v47, %v3609_v30 }
 0x4d7   : > { %928 = vrot.lane.b32.xlu1 %v926_v48, %s3476_s17 }
 0x4db   : > { %938 = vrot.lane.b32.xlu1 %v926_v48, %s3475_s16 }
 0x549   : > { %v929_v49 = vpop.permute.xlu1 %928 }
 0x54a   : > { %v931_v50 = vadd.f32 %v929_v49, %v926_v48 }
 0x54c   : > { %v2970_v54 = vmul.f32 -1.442695, %v931_v50 }
 0x54d   : > { %v939_v58 = vpop.permute.xlu1 %938 }
 0x54e   : > { %3396 = vpow2.f32 %v2970_v54 }
 0x558   : > { %v3397_v55 = vpop.eup %3396 }
 0x559   : > { %v935_v56 = vadd.f32 1.0, %v3397_v55 }
 0x55b   : > { %3398 = vrcp.f32 %v935_v56 }
 0x565   : > { %v3399_v57 = vpop.eup %3398 }
 0x566   : > { %v941_v59 = vmul.f32 %v3399_v57, %v939_v58  ;;  %v948_v63 = vsub.f32 1.0, %v3399_v57  ;;  %v954_v5 = vmul.f32 %v3399_v57, %v3639_v34 }
 0x568   : > { %943 = vrot.lane.b32.xlu0 %v941_v59, %s3477_s20 }
 0x5da   : > { %v944_v60 = vpop.permute.xlu0 %943 }
 0x5db   : > { %v946_v61 = vadd.f32 %v944_v60, %v926_v48 }
 0x5dd   : > { %3400 = vtanh.f32 %v946_v61 }
 0x5e7   : > { %v3401_v62 = vpop.eup %3400 }
 0x5e8   : > { %950 = vrot.lane.b32.xlu1 %v3401_v62, %s3480_s21 }
 0x65a   : > { %v951_v0 = vpop.permute.xlu1 %950 }
 0x65b   : > { %v953_v10 = vmul.f32 %v951_v0, %v948_v63 }
 0x65d   : > { %v3659_v11 = vadd.f32 %v954_v5, %v953_v10 }
 0x65f   : > { %1211 = vperm.xlu1 %3275, %v3659_v11   ;;  %1206 = vperm.xlu0 %3274, %v3659_v11  }
 0x663   : > { %3276 = vset.pattern.permute.xlu1 %v3481_v52  ;;  %3277 = vset.pattern.permute.xlu0 %v3482_v53 }
 0x664   : > { %1217 = vperm.xlu1 %3276, %v3659_v11   ;;  %1223 = vperm.xlu0 %3277, %v3659_v11  }
 0x668   : > { %3279 = vset.pattern.permute.xlu1 %v3479_v44  ;;  %3278 = vset.pattern.permute.xlu0 %v3478_v43 }
 0x6de   : > { %v1212_v14 = vpop.permute.xlu1 %1211  ;;  %v1207_v16 = vpop.permute.xlu0 %1206 }
 0x6df   : > { %v1214_v22 = vmul.f32 %v1212_v14, %v3597_v19  ;;  %v1209_v23 = vmul.f32 %v1207_v16, %v3594_v18 }
 0x6e1   : > { %v1215_v26 = vadd.f32 %v1214_v22, %v1209_v23 }
 0x6e3   : > { %v1218_v24 = vpop.permute.xlu1 %1217  ;;  %v1224_v25 = vpop.permute.xlu0 %1223 }
 0x6e4   : > { %v1220_v27 = vmul.f32 %v1218_v24, %v3600_v20  ;;  %v1226_v29 = vmul.f32 %v1224_v25, %v3603_v21 }
 0x6e6   : > { %v1221_v28 = vadd.f32 %v1220_v27, %v1215_v26 }
 0x6e8   : > { %v1227_v31 = vadd.f32 %v1226_v29, %v1221_v28 }
 0x6ea   : > { %v1228_v32 = vadd.f32 %v1227_v31, %v3609_v30 }
 0x6ec   : > { %1230 = vrot.lane.b32.xlu1 %v1228_v32, %s3476_s17 }
 0x6f0   : > { %1240 = vrot.lane.b32.xlu1 %v1228_v32, %s3475_s16 }
 0x75e   : > { %v1231_v33 = vpop.permute.xlu1 %1230 }
 0x75f   : > { %v1233_v35 = vadd.f32 %v1231_v33, %v1228_v32 }
 0x761   : > { %v2978_v36 = vmul.f32 -1.442695, %v1233_v35 }
 0x762   : > { %v1241_v40 = vpop.permute.xlu1 %1240 }
 0x763   : > { %3402 = vpow2.f32 %v2978_v36 }
 0x76d   : > { %v3403_v37 = vpop.eup %3402 }
 0x76e   : > { %v1237_v38 = vadd.f32 1.0, %v3403_v37 }
 0x770   : > { %3404 = vrcp.f32 %v1237_v38 }
 0x77a   : > { %v3405_v39 = vpop.eup %3404 }
 0x77b   : > { %v1243_v41 = vmul.f32 %v3405_v39, %v1241_v40  ;;  %v1250_v47 = vsub.f32 1.0, %v3405_v39  ;;  %v1256_v49 = vmul.f32 %v3405_v39, %v3659_v11 }
 0x77d   : > { %1245 = vrot.lane.b32.xlu0 %v1243_v41, %s3477_s20 }
 0x7ef   : > { %v1246_v42 = vpop.permute.xlu0 %1245 }
 0x7f0   : > { %v1248_v45 = vadd.f32 %v1246_v42, %v1228_v32 }
 0x7f2   : > { %3406 = vtanh.f32 %v1248_v45 }
 0x7fc   : > { %v3407_v46 = vpop.eup %3406 }
 0x7fd   : > { %1252 = vrot.lane.b32.xlu1 %v3407_v46, %s3480_s21 }
 0x86f   : > { %v1253_v48 = vpop.permute.xlu1 %1252 }
 0x870   : > { %v1255_v50 = vmul.f32 %v1253_v48, %v1250_v47 }
 0x872   : > { %v3679_v54 = vadd.f32 %v1256_v49, %v1255_v50 }
 0x874   : > { %1513 = vperm.xlu1 %3279, %v3679_v54   ;;  %1508 = vperm.xlu0 %3278, %v3679_v54  }
 0x878   : > { %3280 = vset.pattern.permute.xlu1 %v3481_v52  ;;  %3281 = vset.pattern.permute.xlu0 %v3482_v53 }
 0x879   : > { %1519 = vperm.xlu1 %3280, %v3679_v54   ;;  %1525 = vperm.xlu0 %3281, %v3679_v54  }
 0x87d   : > { %3283 = vset.pattern.permute.xlu1 %v3479_v44  ;;  %3282 = vset.pattern.permute.xlu0 %v3478_v43 }
 0x8f3   : > { %v1514_v55 = vpop.permute.xlu1 %1513  ;;  %v1509_v56 = vpop.permute.xlu0 %1508 }
 0x8f4   : > { %v1516_v57 = vmul.f32 %v1514_v55, %v3597_v19  ;;  %v1511_v58 = vmul.f32 %v1509_v56, %v3594_v18 }
 0x8f6   : > { %v1517_v61 = vadd.f32 %v1516_v57, %v1511_v58 }
 0x8f8   : > { %v1520_v59 = vpop.permute.xlu1 %1519  ;;  %v1526_v60 = vpop.permute.xlu0 %1525 }
 0x8f9   : > { %v1522_v62 = vmul.f32 %v1520_v59, %v3600_v20  ;;  %v1528_v0 = vmul.f32 %v1526_v60, %v3603_v21 }
 0x8fb   : > { %v1523_v63 = vadd.f32 %v1522_v62, %v1517_v61 }
 0x8fd   : > { %v1529_v5 = vadd.f32 %v1528_v0, %v1523_v63 }
 0x8ff   : > { %v1530_v10 = vadd.f32 %v1529_v5, %v3609_v30 }
 0x901   : > { %1532 = vrot.lane.b32.xlu1 %v1530_v10, %s3476_s17 }
 0x905   : > { %1542 = vrot.lane.b32.xlu1 %v1530_v10, %s3475_s16 }
 0x973   : > { %v1533_v14 = vpop.permute.xlu1 %1532 }
 0x974   : > { %v1535_v16 = vadd.f32 %v1533_v14, %v1530_v10 }
 0x976   : > { %v2986_v22 = vmul.f32 -1.442695, %v1535_v16 }
 0x977   : > { %v1543_v26 = vpop.permute.xlu1 %1542 }
 0x978   : > { %3408 = vpow2.f32 %v2986_v22 }
 0x982   : > { %v3409_v23 = vpop.eup %3408 }
 0x983   : > { %v1539_v24 = vadd.f32 1.0, %v3409_v23 }
 0x985   : > { %3410 = vrcp.f32 %v1539_v24 }
 0x98f   : > { %v3411_v25 = vpop.eup %3410 }
 0x990   : > { %v1545_v27 = vmul.f32 %v3411_v25, %v1543_v26  ;;  %v1552_v32 = vsub.f32 1.0, %v3411_v25  ;;  %v1558_v35 = vmul.f32 %v3411_v25, %v3679_v54 }
 0x992   : > { %1547 = vrot.lane.b32.xlu0 %v1545_v27, %s3477_s20 }
 0xa04   : > { %v1548_v28 = vpop.permute.xlu0 %1547 }
 0xa05   : > { %v1550_v29 = vadd.f32 %v1548_v28, %v1530_v10 }
 0xa07   : > { %3412 = vtanh.f32 %v1550_v29 }
 0xa11   : > { %v3413_v31 = vpop.eup %3412 }
 0xa12   : > { %1554 = vrot.lane.b32.xlu1 %v3413_v31, %s3480_s21 }
 0xa84   : > { %v1555_v33 = vpop.permute.xlu1 %1554 }
 0xa85   : > { %v1557_v36 = vmul.f32 %v1555_v33, %v1552_v32 }
 0xa87   : > { %v3699_v37 = vadd.f32 %v1558_v35, %v1557_v36 }
 0xa89   : > { %1815 = vperm.xlu1 %3283, %v3699_v37   ;;  %1810 = vperm.xlu0 %3282, %v3699_v37  }
 0xa8d   : > { %3284 = vset.pattern.permute.xlu1 %v3481_v52  ;;  %3285 = vset.pattern.permute.xlu0 %v3482_v53 }
 0xa8e   : > { %1821 = vperm.xlu1 %3284, %v3699_v37   ;;  %1827 = vperm.xlu0 %3285, %v3699_v37  }
 0xa92   : > { %3287 = vset.pattern.permute.xlu1 %v3479_v44  ;;  %3286 = vset.pattern.permute.xlu0 %v3478_v43 }
 0xb08   : > { %v1816_v38 = vpop.permute.xlu1 %1815  ;;  %v1811_v39 = vpop.permute.xlu0 %1810 }
 0xb09   : > { %v1818_v40 = vmul.f32 %v1816_v38, %v3597_v19  ;;  %v1813_v41 = vmul.f32 %v1811_v39, %v3594_v18 }
 0xb0b   : > { %v1819_v46 = vadd.f32 %v1818_v40, %v1813_v41 }
 0xb0d   : > { %v1822_v42 = vpop.permute.xlu1 %1821  ;;  %v1828_v45 = vpop.permute.xlu0 %1827 }
 0xb0e   : > { %v1824_v47 = vmul.f32 %v1822_v42, %v3600_v20  ;;  %v1830_v49 = vmul.f32 %v1828_v45, %v3603_v21 }
 0xb10   : > { %v1825_v48 = vadd.f32 %v1824_v47, %v1819_v46 }
 0xb12   : > { %v1831_v50 = vadd.f32 %v1830_v49, %v1825_v48 }
 0xb14   : > { %v1832_v55 = vadd.f32 %v1831_v50, %v3609_v30 }
 0xb16   : > { %1834 = vrot.lane.b32.xlu1 %v1832_v55, %s3476_s17 }
 0xb1a   : > { %1844 = vrot.lane.b32.xlu1 %v1832_v55, %s3475_s16 }
 0xb88   : > { %v1835_v56 = vpop.permute.xlu1 %1834 }
 0xb89   : > { %v1837_v57 = vadd.f32 %v1835_v56, %v1832_v55 }
 0xb8b   : > { %v2994_v58 = vmul.f32 -1.442695, %v1837_v57 }
 0xb8c   : > { %v1845_v62 = vpop.permute.xlu1 %1844 }
 0xb8d   : > { %3414 = vpow2.f32 %v2994_v58 }
 0xb97   : > { %v3415_v59 = vpop.eup %3414 }
 0xb98   : > { %v1841_v60 = vadd.f32 1.0, %v3415_v59 }
 0xb9a   : > { %3416 = vrcp.f32 %v1841_v60  ;;  %v320_v60 = vld [vmem:[%s3576_s14] sm:$0xff] }
 0xba4   : > { %v3417_v61 = vpop.eup %3416 }
 0xba5   : > { %v1847_v63 = vmul.f32 %v3417_v61, %v1845_v62  ;;  %v1854_v14 = vsub.f32 1.0, %v3417_v61  ;;  %v1860_v22 = vmul.f32 %v3417_v61, %v3699_v37  ;;  %v321_v61 = vld [vmem:[%s3576_s14 + $0x8] sm:$0xff]  ;;  %v322_v62 = vld [vmem:[%s3576_s14 + $0x10] sm:$0xf] }
 0xba7   : > { %1849 = vrot.lane.b32.xlu0 %v1847_v63, %s3477_s20 }
 0xc19   : > { %v1850_v0 = vpop.permute.xlu0 %1849 }
 0xc1a   : > { %v1852_v5 = vadd.f32 %v1850_v0, %v1832_v55 }
 0xc1c   : > { %3418 = vtanh.f32 %v1852_v5 }
 0xc26   : > { %v3419_v10 = vpop.eup %3418 }
 0xc27   : > { %1856 = vrot.lane.b32.xlu1 %v3419_v10, %s3480_s21 }
 0xc99   : > { %v1857_v16 = vpop.permute.xlu1 %1856 }
 0xc9a   : > { %v1859_v23 = vmul.f32 %v1857_v16, %v1854_v14 }
 0xc9c   : > { %v3719_v24 = vadd.f32 %v1860_v22, %v1859_v23 }
 0xc9e   : > { %2117 = vperm.xlu1 %3287, %v3719_v24   ;;  %2112 = vperm.xlu0 %3286, %v3719_v24  }
 0xca2   : > { %3288 = vset.pattern.permute.xlu1 %v3481_v52  ;;  %3289 = vset.pattern.permute.xlu0 %v3482_v53 }
 0xca3   : > { %2123 = vperm.xlu1 %3288, %v3719_v24   ;;  %2129 = vperm.xlu0 %3289, %v3719_v24  }
 0xca7   : > { %3291 = vset.pattern.permute.xlu1 %v3479_v44  ;;  %3290 = vset.pattern.permute.xlu0 %v3478_v43 }
 0xd1d   : > { %v2118_v25 = vpop.permute.xlu1 %2117  ;;  %v2113_v26 = vpop.permute.xlu0 %2112 }
 0xd1e   : > { %v2120_v27 = vmul.f32 %v2118_v25, %v3597_v19  ;;  %v2115_v28 = vmul.f32 %v2113_v26, %v3594_v18  ;;  %v341_v26 = vrot.slane %v3619_v51, %v3585_v12 }
 0xd20   : > { %v2121_v32 = vadd.f32 %v2120_v27, %v2115_v28 }
 0xd22   : > { %v2124_v29 = vpop.permute.xlu1 %2123  ;;  %v2130_v31 = vpop.permute.xlu0 %2129 }
 0xd23   : > { %v2126_v33 = vmul.f32 %v2124_v29, %v3600_v20  ;;  %v2132_v36 = vmul.f32 %v2130_v31, %v3603_v21  ;;  %v360_v29 = vrot.slane %v3619_v51, %v3587_v13 }
 0xd25   : > { %v2127_v35 = vadd.f32 %v2126_v33, %v2121_v32  ;;  %v382_v33 = vrot.slane %v3619_v51, %v3589_v15 }
 0xd27   : > { %v2133_v38 = vadd.f32 %v2132_v36, %v2127_v35  ;;  %v4907_v35 = vmov 0.0|0.0  }
 0xd28   : > { %3191 = vmatprep.subr.bf16.mxu0 %v4907_v35  ;;  %3194 = vmatprep.subr.bf16.mxu1 %v4907_v35 }
 0xd29   : > { %v2134_v39 = vadd.f32 %v2133_v38, %v3609_v30 }
 0xd2b   : > { %2136 = vrot.lane.b32.xlu1 %v2134_v39, %s3476_s17 }
 0xd2f   : > { %2146 = vrot.lane.b32.xlu1 %v2134_v39, %s3475_s16 }
 0xd9d   : > { %v2137_v43 = vpop.permute.xlu1 %2136 }
 0xd9e   : > { %v2139_v44 = vadd.f32 %v2137_v43, %v2134_v39 }
 0xda0   : > { %v3002_v40 = vmul.f32 -1.442695, %v2139_v44 }
 0xda1   : > { %v2147_v46 = vpop.permute.xlu1 %2146 }
 0xda2   : > { %3420 = vpow2.f32 %v3002_v40 }
 0xdac   : > { %v3421_v41 = vpop.eup %3420 }
 0xdad   : > { %v2143_v42 = vadd.f32 1.0, %v3421_v41  ;;  %v404_v41 = vrot.slane %v3619_v51, %v3591_v17 }
 0xdaf   : > { %3422 = vrcp.f32 %v2143_v42 }
 0xdb9   : > { %v3423_v45 = vpop.eup %3422 }
 0xdba   : > { %v2149_v47 = vmul.f32 %v3423_v45, %v2147_v46  ;;  %v2156_v55 = vsub.f32 1.0, %v3423_v45  ;;  %v2162_v57 = vmul.f32 %v3423_v45, %v3719_v24 }
 0xdbc   : > { %2151 = vrot.lane.b32.xlu0 %v2149_v47, %s3477_s20 }
 0xe2e   : > { %v2152_v48 = vpop.permute.xlu0 %2151 }
 0xe2f   : > { %v2154_v49 = vadd.f32 %v2152_v48, %v2134_v39 }
 0xe31   : > { %3424 = vtanh.f32 %v2154_v49 }
 0xe3b   : > { %v3425_v50 = vpop.eup %3424 }
 0xe3c   : > { %2158 = vrot.lane.b32.xlu1 %v3425_v50, %s3480_s21 }
 0xeae   : > { %v2159_v56 = vpop.permute.xlu1 %2158 }
 0xeaf   : > { %v2161_v58 = vmul.f32 %v2159_v56, %v2156_v55 }
 0xeb1   : > { %v3739_v59 = vadd.f32 %v2162_v57, %v2161_v58 }
 0xeb3   : > { %4952 = vst [vmem:[#allocation13_spill] sm:$0xff] %v3739_v59  ;;  %2419 = vperm.xlu1 %3291, %v3739_v59   ;;  %2414 = vperm.xlu0 %3290, %v3739_v59  }
 0xeb7   : > { %3292 = vset.pattern.permute.xlu1 %v3481_v52  ;;  %3293 = vset.pattern.permute.xlu0 %v3482_v53 }
 0xeb8   : > { %2425 = vperm.xlu1 %3292, %v3739_v59   ;;  %2431 = vperm.xlu0 %3293, %v3739_v59  }
 0xebc   : > { %3294 = vset.pattern.permute.xlu1 %v4914_v6  ;;  %3296 = vset.pattern.permute.xlu0 %v4911_v8 }
 0xebd   : > { %325 = vperm.xlu1 %3294, %v320_v60   ;;  %350 = vperm.xlu0 %3296, %v321_v61  }
 0xec1   : > { %330 = vperm.xlu1 %3294, %v321_v61   ;;  %3298 = vset.pattern.permute.xlu0 %v4917_v7 }
 0xec2   : > { %372 = vperm.xlu0 %3298, %v321_v61  }
 0xec5   : > { %3295 = vset.pattern.permute.xlu1 %v4911_v8 }
 0xec6   : > { %346 = vperm.xlu1 %3295, %v320_v60   ;;  %3300 = vset.pattern.permute.xlu0 %v4912_v9 }
 0xec7   : > { %398 = vperm.xlu0 %3300, %v322_v62  }
 0xeca   : > { %354 = vperm.xlu1 %3295, %v322_v62  }
 0xecb   : > { %3301 = vset.pattern.permute.xlu0 %v4914_v6 }
 0xecc   : > { %335 = vperm.xlu0 %3301, %v322_v62  }
 0xece   : > { %3297 = vset.pattern.permute.xlu1 %v4917_v7 }
 0xecf   : > { %368 = vperm.xlu1 %3297, %v320_v60  }
 0xed0   : > { %422 = vrot.lane.b32.xlu0 %v3550_v1, %s3487_s23 }
 0xed3   : > { %376 = vperm.xlu1 %3297, %v322_v62   ;;  %v4909_v62 = vmov 0.0  }
 0xed4   : > { %3077 = vmatprep.mubr.msk.f32.mxu0 %vm3484_vm1, %v4909_v62  ;;  %3092 = vmatprep.mubr.msk.f32.mxu1 %vm3484_vm1, %v4909_v62 }
 0xed5   : > { %529 = vrot.lane.b32.xlu0 %v3597_v19, %s3489_s25 }
 0xed7   : > { %3299 = vset.pattern.permute.xlu1 %v4912_v9 }
 0xed8   : > { %390 = vperm.xlu1 %3299, %v320_v60  }
 0xedc   : > { %394 = vperm.xlu1 %3299, %v321_v61  }
 0xee0   : > { %3307 = vset.pattern.permute.xlu1 %v4914_v6 }
 0xf32   : > { %v3759_v52 = vpop.permute.xlu1 %2419  ;;  %v3763_v63 = vpop.permute.xlu0 %2414 }
 0xf37   : > { %v3761_v53 = vpop.permute.xlu1 %2425  ;;  %v3765_v5 = vpop.permute.xlu0 %2431 }
 0xf3c   : > { %v326_v0 = vpop.permute.xlu1 %325  ;;  %v351_v14 = vpop.permute.xlu0 %350 }
 0xf3d   : > { %v362_v32 = vmul.f32 %v360_v29, %v351_v14  ;;  %v342_v40 = vmul.f32 %v341_v26, %v326_v0 }
 0xf40   : > { %v331_v10 = vpop.permute.xlu1 %330 }
 0xf41   : > { %v373_v23 = vpop.permute.xlu0 %372  ;;  %v343_v31 = vmul.f32 %v341_v26, %v331_v10 }
 0xf42   : > { %v384_v39 = vmul.f32 %v382_v33, %v373_v23 }
 0xf43   : > { %v365_v38 = vadd.f32 %v362_v32, %v343_v31 }
 0xf45   : > { %v347_v16 = vpop.permute.xlu1 %346  ;;  %v387_v48 = vadd.f32 %v384_v39, %v365_v38 }
 0xf46   : > { %v399_v27 = vpop.permute.xlu0 %398  ;;  %v361_v36 = vmul.f32 %v360_v29, %v347_v16 }
 0xf47   : > { %v407_v10 = vmul.f32 %v404_v41, %v399_v27 }
 0xf48   : > { %v364_v45 = vadd.f32 %v361_v36, %v342_v40 }
 0xf49   : > { %v355_v22 = vpop.permute.xlu1 %354 }
 0xf4a   : > { %v363_v50 = vmul.f32 %v360_v29, %v355_v22 }
 0xf4b   : > { %v336_v43 = vpop.permute.xlu0 %335 }
 0xf4c   : > { %v344_v46 = vmul.f32 %v341_v26, %v336_v43 }
 0xf4e   : > { %v369_v25 = vpop.permute.xlu1 %368  ;;  %v366_v58 = vadd.f32 %v363_v50, %v344_v46 }
 0xf4f   : > { %v383_v42 = vmul.f32 %v382_v33, %v369_v25  ;;  %v3802_v27 = vpop.permute.xlu0 %422 }
 0xf50   : > { %4953 = vst [vmem:[#allocation14_spill] sm:$0xff] %v3802_v27 }
 0xf51   : > { %v386_v55 = vadd.f32 %v383_v42, %v364_v45 }
 0xf52   : > { %v377_v28 = vpop.permute.xlu1 %376 }
 0xf53   : > { %v385_v56 = vmul.f32 %v382_v33, %v377_v28  ;;  %v3805_v32 = vpop.permute.xlu0 %529 }
 0xf54   : > { %4954 = vst [vmem:[#allocation15_spill] sm:$0xff] %v3805_v32 }
 0xf55   : > { %v388_v51 = vadd.f32 %v385_v56, %v366_v58 }
 0xf57   : > { %v391_v44 = vpop.permute.xlu1 %390  ;;  %v410_v14 = vadd.f32 %v407_v10, %v388_v51  ;;  %v2422_v51 = vmul.f32 %v3759_v52, %v3597_v19  ;;  %v2965_v19 = vld [vmem:[%s3576_s14 + $0x28] sm:$0xf] }
 0xf58   : > { %v405_v47 = vmul.f32 %v404_v41, %v391_v44 }
 0xf5a   : > { %v408_v60 = vadd.f32 %v405_v47, %v386_v55 }
 0xf5b   : > { %v395_v49 = vpop.permute.xlu1 %394 }
 0xf5c   : > { %v406_v57 = vmul.f32 %v404_v41, %v395_v49 }
 0xf5e   : > { %v409_v61 = vadd.f32 %v406_v57, %v387_v48 }
 0xf60   : > { %v3302_v0 = vpack.i.bf16 %v409_v61, %v408_v60 }
 0xf62   : > { %3303 = vrot.lane.b32.xlu1 %v3302_v0, %s3486_s22  ;;  %v2417_v0 = vmul.f32 %v3763_v63, %v3594_v18 }
 0xf66   : > { %418 = vrot.lane.b32.xlu1 %v410_v14, %s3486_s22  ;;  %v2428_v14 = vmul.f32 %v3761_v53, %v3600_v20 }
 0xf6a   : > { %522 = vrot.lane.b32.xlu1 %v3594_v18, %s3488_s24  ;;  %v2434_v18 = vmul.f32 %v3765_v5, %v3603_v21 }
 0xfd4   : > { %v3304_v16 = vpop.permute.xlu1 %3303 }
 0xfd5   : > { %v3306_v22 = vunpack.i.h.bf16 %v3304_v16  ;;  %v3305_v23 = vunpack.i.l.bf16 %v3304_v16  ;;  %v2423_v16 = vadd.f32 %v2422_v51, %v2417_v0 }
 0xfd7   : > { %v3192_v25 = vpack.c.bf16 %v3306_v22, %v3305_v23  ;;  %v2964_v22 = vld [vmem:[%s3576_s14 + $0x20] sm:$0xff]  ;;  %v2963_v23 = vld [vmem:[%s3576_s14 + $0x18] sm:$0xff] }
 0xfd8   : > { %v419_v26 = vpop.permute.xlu1 %418 }
 0xfd9   : > { %3193 = vmatpush3.bf16.msra.mxu0 %v3192_v25  ;;  %v2429_v25 = vadd.f32 %v2428_v14, %v2423_v16 }
 0xfda   : > { %3075 = vmatprep.subr.mxu0 %v4909_v62 }
 0xfdb   : > { %v2435_v52 = vadd.f32 %v2434_v18, %v2429_v25 }
 0xfdd   : > { %3076 = vmatpush3.msk.msra.mxu0 %vm435_vm2, %v419_v26 }
 0xfde   : > { %3078 = vmatmul.mubr.msk.f32.vlgmr.msra.gmra.mrb[0].mxu0 %vm425_vm3, %v3555_v2  ;;  %3197 = vmatprep.subr.bf16.mxu0 %v4907_v35 }
 0xfdf   : > { %3080 = vmatprep.mubr.msk.f32.mxu0 %vm3484_vm1, %v4909_v62 }
 0xfe2   : > { %3081 = vmatmul.mubr.msk.f32.gmra.mrb[2].mxu0 %vm425_vm3, %v3560_v3 }
 0xfe3   : > { %3083 = vmatprep.mubr.msk.f32.mxu0 %vm3484_vm1, %v4909_v62 }
 0xfe6   : > { %3084 = vmatmul.mubr.msk.f32.gmra.mrb[4].mxu0 %vm425_vm3, %v3565_v4 }
 0xfe7   : > { %3107 = vmatprep.mubr.msk.f32.mxu0 %vm3484_vm1, %v4909_v62 }
0x10b1   : > { %v504_v28 = vpop.f32.mrb[0].mxu0 }
0x10b2   : > { %v505_v29 = vadd.f32 %v504_v28, %v3802_v27  ;;  %v3079_v31 = vpop.f32.mrb[1].mxu0 }
0x10b4   : > { %v3807_v33 = vmax.f32 %v505_v29, 0.0 }
0x10b5   : > { %v509_v36 = vpop.f32.mrb[2].mxu0 }
0x10b6   : > { %v510_v38 = vadd.f32 %v509_v36, %v3802_v27  ;;  %v3082_v39 = vpop.f32.mrb[3].mxu0  ;;  %v532_v43 = vmul.f32 %v3805_v32, %v3807_v33 }
0x10b8   : > { %v3812_v44 = vmax.f32 %v510_v38, 0.0  ;;  %538 = vrot.lane.b32.xlu1 %v532_v43, %s3490_s26 }
0x10b9   : > { %v514_v40 = vpop.f32.mrb[4].mxu0 }
0x10ba   : > { %v515_v41 = vadd.f32 %v514_v40, %v3802_v27  ;;  %v533_v42 = vmul.f32 %v3805_v32, %v3812_v44  ;;  %v3085_v45 = vpop.f32.mrb[5].mxu0 }
0x10bc   : > { %v3818_v46 = vmax.f32 %v515_v41, 0.0  ;;  %540 = vrot.lane.b32.xlu0 %v533_v42, %s3490_s26 }
0x10be   : > { %v534_v47 = vmul.f32 %v3805_v32, %v3818_v46 }
0x10c0   : > { %551 = vrot.lane.b32.xlu0 %v3600_v20, %s3491_s27  ;;  %542 = vrot.lane.b32.xlu1 %v534_v47, %s3490_s26  ;;  %v3863_v20 = vadd.f32 %v2435_v52, %v3609_v30  ;;  %v717_v52 = vrot.slane %v3639_v34, %v3589_v15 }
0x112e   : > { %v541_v48 = vpop.permute.xlu0 %540 }
0x1132   : > { %v3825_v49 = vpop.permute.xlu0 %551 }
0x1133   : > { %4955 = vst [vmem:[#allocation16_spill] sm:$0xff] %v3825_v49  ;;  %v555_v50 = vmul.f32 %v3825_v49, %v3812_v44  ;;  %v554_v55 = vmul.f32 %v3825_v49, %v3807_v33  ;;  %v556_v56 = vmul.f32 %v3825_v49, %v3818_v46 }
0x1135   : > { %562 = vrot.lane.b32.xlu0 %v555_v50, %s3492_s28  ;;  %560 = vrot.lane.b32.xlu1 %v554_v55, %s3492_s28 }
0x1139   : > { %573 = vrot.lane.b32.xlu0 %v3603_v21, %s3493_s29  ;;  %564 = vrot.lane.b32.xlu1 %v556_v56, %s3492_s28 }
0x11a7   : > { %v563_v57 = vpop.permute.xlu0 %562 }
0x11ab   : > { %v3837_v58 = vpop.permute.xlu0 %573 }
0x11ac   : > { %4956 = vst [vmem:[#allocation17_spill] sm:$0xff] %v3837_v58  ;;  %v577_v60 = vmul.f32 %v3837_v58, %v3812_v44  ;;  %v576_v61 = vmul.f32 %v3837_v58, %v3807_v33  ;;  %v578_v10 = vmul.f32 %v3837_v58, %v3818_v46 }
0x11ae   : > { %584 = vrot.lane.b32.xlu0 %v577_v60, %s3494_s30  ;;  %582 = vrot.lane.b32.xlu1 %v576_v61, %s3494_s30 }
0x11b2   : > { %594 = vrot.lane.b32.xlu0 %v3550_v1, %s3488_s24  ;;  %586 = vrot.lane.b32.xlu1 %v578_v10, %s3494_s30  ;;  %v3875_v1 = vpop.permute.xlu1 %522 }
0x11b3   : > { %4957 = vst [vmem:[#allocation18_spill] sm:$0xff] %v3875_v1  ;;  %v525_v5 = vmul.f32 %v3875_v1, %v3807_v33  ;;  %v526_v26 = vmul.f32 %v3875_v1, %v3812_v44  ;;  %v527_v31 = vmul.f32 %v3875_v1, %v3818_v46 }
0x11b5   : > { %v548_v29 = vadd.f32 %v541_v48, %v526_v26 }
0x11b6   : > { %665 = vperm.xlu0 %3301, %v2964_v22   ;;  %660 = vperm.xlu1 %3307, %v2963_v23   ;;  %v539_v21 = vpop.permute.xlu1 %538 }
0x11b7   : > { %v547_v28 = vadd.f32 %v539_v21, %v525_v5  ;;  %v570_v43 = vadd.f32 %v563_v57, %v548_v29  ;;  %v739_v29 = vrot.slane %v3639_v34, %v3591_v17 }
0x11ba   : > { %3309 = vset.pattern.permute.xlu0 %v4917_v7  ;;  %670 = vperm.xlu1 %3307, %v2965_v19   ;;  %v543_v30 = vpop.permute.xlu1 %542 }
0x11bb   : > { %703 = vperm.xlu0 %3309, %v2963_v23   ;;  %v549_v39 = vadd.f32 %v543_v30, %v527_v31 }
0x11be   : > { %3308 = vset.pattern.permute.xlu1 %v4911_v8  ;;  %v561_v53 = vpop.permute.xlu1 %560 }
0x11bf   : > { %2448 = vrot.lane.b32.xlu0 %v3863_v20, %s3475_s16  ;;  %685 = vperm.xlu1 %3308, %v2964_v22   ;;  %v569_v40 = vadd.f32 %v561_v53, %v547_v28 }
0x11c0   : > { %3311 = vset.pattern.permute.xlu0 %v4912_v9 }
0x11c2   : > { %v565_v63 = vpop.permute.xlu1 %564 }
0x11c3   : > { %725 = vperm.xlu0 %3311, %v2963_v23   ;;  %689 = vperm.xlu1 %3308, %v2965_v19   ;;  %v571_v41 = vadd.f32 %v565_v63, %v549_v39 }
0x11c7   : > { %3312 = vset.pattern.permute.xlu0 %v4911_v8  ;;  %3310 = vset.pattern.permute.xlu1 %v4917_v7 }
0x11c8   : > { %681 = vperm.xlu0 %3312, %v2963_v23   ;;  %707 = vperm.xlu1 %3310, %v2964_v22   ;;  %v676_v23 = vrot.slane %v3639_v34, %v3585_v12 }
0x11cc   : > { %711 = vperm.xlu1 %3310, %v2965_v19  }
0x11d0   : > { %2438 = vrot.lane.b32.xlu1 %v3863_v20, %s3476_s17 }
0x11d1   : > { %3313 = vset.pattern.permute.xlu1 %v4912_v9 }
0x11d4   : > { %729 = vperm.xlu1 %3313, %v2964_v22   ;;  %v695_v22 = vrot.slane %v3639_v34, %v3587_v13  ;;  %v3909_v34 = vld [vmem:[%s3576_s14 + $0x30] sm:$0xff] }
0x11d8   : > { %733 = vperm.xlu1 %3313, %v2965_v19  }
0x11dc   : > { %3319 = vset.pattern.permute.xlu1 %v4914_v6 }
0x1220   : > { %v585_v36 = vpop.permute.xlu0 %584  ;;  %v583_v38 = vpop.permute.xlu1 %582 }
0x1221   : > { %v592_v42 = vadd.f32 %v585_v36, %v570_v43  ;;  %v591_v45 = vadd.f32 %v583_v38, %v569_v40 }
0x1224   : > { %v3883_v47 = vpop.permute.xlu0 %594  ;;  %v587_v50 = vpop.permute.xlu1 %586 }
0x1225   : > { %4958 = vst [vmem:[#allocation19_spill] sm:$0xff] %v3883_v47  ;;  %v3886_v33 = vadd.f32 %v3883_v47, %v591_v45  ;;  %v3889_v44 = vadd.f32 %v3883_v47, %v592_v42  ;;  %v593_v48 = vadd.f32 %v587_v50, %v571_v41 }
0x1227   : > { %4959 = vst [vmem:[#allocation20_spill] sm:$0xff] %v3886_v33  ;;  %4960 = vst [vmem:[#allocation21_spill] sm:$0xff] %v3889_v44  ;;  %v3892_v46 = vadd.f32 %v3883_v47, %v593_v48 }
0x1229   : > { %4961 = vst [vmem:[#allocation22_spill] sm:$0xff] %v3892_v46 }
0x1235   : > { %v666_v55 = vpop.permute.xlu0 %665  ;;  %v661_v56 = vpop.permute.xlu1 %660 }
0x1236   : > { %v677_v19 = vmul.f32 %v676_v23, %v661_v56  ;;  %v678_v63 = vmul.f32 %v676_v23, %v666_v55 }
0x1239   : > { %v671_v57 = vpop.permute.xlu1 %670 }
0x123a   : > { %v704_v60 = vpop.permute.xlu0 %703  ;;  %v679_v38 = vmul.f32 %v676_v23, %v671_v57  ;;  %v3915_v57 = vld [vmem:[%s3576_s14 + $0x38] sm:$0xff]  ;;  %v3951_v23 = vld [vmem:[%s3576_s14 + $0x60] sm:$0xff] }
0x123b   : > { %v718_v5 = vmul.f32 %v717_v52, %v704_v60 }
0x123e   : > { %v3894_v61 = vpop.permute.xlu0 %2448  ;;  %v686_v51 = vpop.permute.xlu1 %685 }
0x123f   : > { %v697_v21 = vmul.f32 %v695_v22, %v686_v51 }
0x1241   : > { %v700_v28 = vadd.f32 %v697_v21, %v678_v63  ;;  %v3967_v21 = vld [vmem:[%s3576_s14 + $0x80] sm:$0xff] }
0x1242   : > { %v726_v0 = vpop.permute.xlu0 %725  ;;  %v690_v10 = vpop.permute.xlu1 %689 }
0x1243   : > { %v698_v31 = vmul.f32 %v695_v22, %v690_v10  ;;  %v740_v43 = vmul.f32 %v739_v29, %v726_v0  ;;  %v3919_v0 = vld [vmem:[%s3576_s14 + $0x50] sm:$0xff]  ;;  %v3928_v10 = vld [vmem:[%s3576_s14 + $0x48] sm:$0xff] }
0x1245   : > { %v701_v45 = vadd.f32 %v698_v31, %v679_v38  ;;  %v3978_v31 = vld [vmem:[%s3576_s14 + $0x70] sm:$0xf] }
0x1247   : > { %v682_v14 = vpop.permute.xlu0 %681  ;;  %v708_v16 = vpop.permute.xlu1 %707 }
0x1248   : > { %v696_v25 = vmul.f32 %v695_v22, %v682_v14  ;;  %v719_v26 = vmul.f32 %v717_v52, %v708_v16  ;;  %v3936_v16 = vld [vmem:[%s3576_s14 + $0x40] sm:$0xf]  ;;  %v3941_v22 = vld [vmem:[%s3576_s14 + $0x58] sm:$0xf] }
0x124a   : > { %v699_v30 = vadd.f32 %v696_v25, %v677_v19  ;;  %v722_v40 = vadd.f32 %v719_v26, %v700_v28  ;;  %v3956_v25 = vld [vmem:[%s3576_s14 + $0x68] sm:$0xff] }
0x124b   : > { %v712_v18 = vpop.permute.xlu1 %711 }
0x124c   : > { %v721_v36 = vadd.f32 %v718_v5, %v699_v30  ;;  %v720_v41 = vmul.f32 %v717_v52, %v712_v18  ;;  %v2995_v18 = vld [vmem:[%s3576_s14 + $0x78] sm:$0xff] }
0x124e   : > { %v743_v48 = vadd.f32 %v740_v43, %v721_v36  ;;  %v723_v56 = vadd.f32 %v720_v41, %v701_v45 }
0x124f   : > { %v3902_v53 = vpop.permute.xlu1 %2438 }
0x1250   : > { %v2441_v19 = vadd.f32 %v3902_v53, %v3863_v20 }
0x1252   : > { %v3010_v52 = vmul.f32 -1.442695, %v2441_v19 }
0x1253   : > { %v730_v39 = vpop.permute.xlu1 %729 }
0x1254   : > { %v741_v42 = vmul.f32 %v739_v29, %v730_v39  ;;  %3426 = vpow2.f32 %v3010_v52  ;;  %v3998_v39 = vld [vmem:[%s3576_s14 + $0x88] sm:$0xf] }
0x1256   : > { %v744_v50 = vadd.f32 %v741_v42, %v722_v40  ;;  %v4019_v42 = vld [vmem:[%s3576_s14 + $0x90] sm:$0xff] }
0x1257   : > { %v734_v55 = vpop.permute.xlu1 %733 }
0x1258   : > { %v742_v60 = vmul.f32 %v739_v29, %v734_v55  ;;  %v3314_v51 = vpack.i.bf16 %v744_v50, %v743_v48  ;;  %v4030_v48 = vld [vmem:[%s3576_s14 + $0x98] sm:$0xff] }
0x125a   : > { %v745_v14 = vadd.f32 %v742_v60, %v723_v56  ;;  %3315 = vrot.lane.b32.xlu0 %v3314_v51, %s3486_s22  ;;  %v4036_v56 = vld [vmem:[%s3576_s14 + $0xb0] sm:$0xff] }
0x125c   : > { %753 = vrot.lane.b32.xlu1 %v745_v14, %s3486_s22 }
0x125e   : > { %v3427_v30 = vpop.eup %3426 }
0x125f   : > { %v2445_v63 = vadd.f32 1.0, %v3427_v30 }
0x1260   : > { %962 = vperm.xlu1 %3319, %v3909_v34  }
0x1261   : > { %3428 = vrcp.f32 %v2445_v63 }
0x1264   : > { %3320 = vset.pattern.permute.xlu1 %v4911_v8 }
0x1265   : > { %983 = vperm.xlu1 %3320, %v3909_v34  }
0x1269   : > { %987 = vperm.xlu1 %3320, %v3915_v57  }
0x126b   : > { %v3983_v36 = vpop.eup %3428 }
0x126c   : > { %4962 = vst [vmem:[#allocation23_spill] sm:$0xff] %v3983_v36  ;;  %v2451_v38 = vmul.f32 %v3983_v36, %v3894_v61 }
0x126d   : > { %3321 = vset.pattern.permute.xlu1 %v4914_v6 }
0x126e   : > { %1269 = vperm.xlu1 %3321, %v3919_v0  }
0x1272   : > { %3322 = vset.pattern.permute.xlu1 %v4911_v8 }
0x1273   : > { %1289 = vperm.xlu1 %3322, %v3919_v0  }
0x1277   : > { %3323 = vset.pattern.permute.xlu1 %v4917_v7 }
0x1278   : > { %1005 = vperm.xlu1 %3323, %v3909_v34  }
0x127c   : > { %1307 = vperm.xlu1 %3323, %v3928_v10  }
0x1280   : > { %1311 = vperm.xlu1 %3323, %v3919_v0  }
0x1284   : > { %3324 = vset.pattern.permute.xlu1 %v4912_v9 }
0x1285   : > { %1031 = vperm.xlu1 %3324, %v3915_v57  }
0x1289   : > { %1329 = vperm.xlu1 %3324, %v3928_v10  }
0x128d   : > { %3325 = vset.pattern.permute.xlu1 %v4914_v6 }
0x128e   : > { %972 = vperm.xlu1 %3325, %v3936_v16  }
0x1292   : > { %1274 = vperm.xlu1 %3325, %v3941_v22  }
0x1296   : > { %3326 = vset.pattern.permute.xlu1 %v4911_v8 }
0x1297   : > { %1293 = vperm.xlu1 %3326, %v3941_v22  }
0x129b   : > { %3327 = vset.pattern.permute.xlu1 %v4917_v7 }
0x129c   : > { %1315 = vperm.xlu1 %3327, %v3941_v22  }
0x12a0   : > { %3328 = vset.pattern.permute.xlu1 %v4912_v9 }
0x12a1   : > { %1035 = vperm.xlu1 %3328, %v3936_v16  }
0x12a5   : > { %3329 = vset.pattern.permute.xlu1 %v4914_v6 }
0x12a6   : > { %1566 = vperm.xlu1 %3329, %v3951_v23  }
0x12aa   : > { %1571 = vperm.xlu1 %3329, %v3956_v25  }
0x12ae   : > { %3331 = vset.pattern.permute.xlu1 %v4911_v8 }
0x12af   : > { %1591 = vperm.xlu1 %3331, %v3956_v25  }
0x12b3   : > { %3332 = vset.pattern.permute.xlu1 %v4914_v6 }
0x12b4   : > { %1868 = vperm.xlu1 %3332, %v2995_v18  }
0x12b8   : > { %3333 = vset.pattern.permute.xlu1 %v4911_v8 }
0x12b9   : > { %1889 = vperm.xlu1 %3333, %v2995_v18  }
0x12bd   : > { %1893 = vperm.xlu1 %3333, %v3967_v21  }
0x12c1   : > { %3334 = vset.pattern.permute.xlu1 %v4917_v7 }
0x12c2   : > { %1613 = vperm.xlu1 %3334, %v3956_v25  }
0x12c6   : > { %1911 = vperm.xlu1 %3334, %v2995_v18  }
0x12ca   : > { %3335 = vset.pattern.permute.xlu1 %v4912_v9 }
0x12cb   : > { %1631 = vperm.xlu1 %3335, %v3951_v23  }
0x12cc   : > { %v3316_v53 = vpop.permute.xlu0 %3315 }
0x12cd   : > { %v3318_v5 = vunpack.i.h.bf16 %v3316_v53  ;;  %v3317_v26 = vunpack.i.l.bf16 %v3316_v53  ;;  %v4067_v53 = vld [vmem:[%s3576_s14 + $0xa0] sm:$0xf] }
0x12ce   : > { %v754_v29 = vpop.permute.xlu1 %753 }
0x12cf   : > { %1933 = vperm.xlu1 %3335, %v2995_v18   ;;  %v3195_v28 = vpack.c.bf16 %v3318_v5, %v3317_v26  ;;  %v4051_v18 = vld [vmem:[%s3576_s14 + $0xa8] sm:$0xff]  ;;  %v3013_v26 = vld [vmem:[%s3576_s14 + $0xb8] sm:$0xf] }
0x12d1   : > { %3196 = vmatpush3.bf16.msra.mxu1 %v3195_v28 }
0x12d2   : > { %3090 = vmatprep.subr.mxu1 %v4909_v62 }
0x12d3   : > { %1937 = vperm.xlu1 %3335, %v3967_v21  }
0x12d5   : > { %3091 = vmatpush3.msk.msra.mxu1 %vm435_vm2, %v754_v29 }
0x12d6   : > { %3093 = vmatmul.mubr.msk.f32.vlgmr.msra.gmra.mrb[0].mxu1 %vm425_vm3, %v3555_v2  ;;  %3200 = vmatprep.subr.bf16.mxu1 %v4907_v35 }
0x12d7   : > { %3336 = vset.pattern.permute.xlu1 %v4911_v8  ;;  %3095 = vmatprep.mubr.msk.f32.mxu1 %vm3484_vm1, %v4909_v62 }
0x12d8   : > { %1595 = vperm.xlu1 %3336, %v3978_v31  }
0x12da   : > { %3096 = vmatmul.mubr.msk.f32.gmra.mrb[2].mxu1 %vm425_vm3, %v3560_v3  ;;  %v4965_v3 = vmov 3  }
0x12db   : > { %3098 = vmatprep.mubr.msk.f32.mxu1 %vm3484_vm1, %v4909_v62 }
0x12dc   : > { %2453 = vrot.lane.b32.xlu1 %v2451_v38, %s3477_s20 }
0x12dd   : > { %3337 = vset.pattern.permute.xlu1 %v4914_v6 }
0x12de   : > { %3099 = vmatmul.mubr.msk.f32.gmra.mrb[4].mxu1 %vm425_vm3, %v3565_v4 }
0x12df   : > { %v4002_v43 = vpop.permute.xlu1 %962  ;;  %3122 = vmatprep.mubr.msk.f32.mxu1 %vm3484_vm1, %v4909_v62 }
0x12e0   : > { %1878 = vperm.xlu1 %3337, %v3998_v39  }
0x12e4   : > { %3338 = vset.pattern.permute.xlu1 %v4917_v7  ;;  %v4008_v61 = vpop.permute.xlu1 %983 }
0x12e5   : > { %1617 = vperm.xlu1 %3338, %v3978_v31  }
0x12e8   : > { %v4011_v40 = vpop.permute.xlu1 %987 }
0x12e9   : > { %1919 = vperm.xlu1 %3338, %v3998_v39  }
0x12ed   : > { %3339 = vset.pattern.permute.xlu1 %v4912_v9  ;;  %v4015_v41 = vpop.permute.xlu1 %1269 }
0x12ee   : > { %1941 = vperm.xlu1 %3339, %v3998_v39  }
0x12f2   : > { %3340 = vset.pattern.permute.xlu1 %v4914_v6  ;;  %v4022_v45 = vpop.permute.xlu1 %1289 }
0x12f3   : > { %2170 = vperm.xlu1 %3340, %v4019_v42  }
0x12f7   : > { %3341 = vset.pattern.permute.xlu1 %v4911_v8  ;;  %v4026_v50 = vpop.permute.xlu1 %1005 }
0x12f8   : > { %2191 = vperm.xlu1 %3341, %v4019_v42  }
0x12fb   : > { %v4032_v55 = vpop.permute.xlu1 %1307 }
0x12fc   : > { %2195 = vperm.xlu1 %3341, %v4030_v48  }
0x12ff   : > { %v4038_v60 = vpop.permute.xlu1 %1311 }
0x1300   : > { %3342 = vset.pattern.permute.xlu1 %v4914_v6 }
0x1301   : > { %2477 = vperm.xlu1 %3342, %v4036_v56  }
0x1304   : > { %v4042_v51 = vpop.permute.xlu1 %1031 }
0x1305   : > { %3343 = vset.pattern.permute.xlu1 %v4911_v8 }
0x1306   : > { %2497 = vperm.xlu1 %3343, %v4036_v56  }
0x1308   : > { %v4046_v14 = vpop.permute.xlu1 %1329 }
0x130a   : > { %3344 = vset.pattern.permute.xlu1 %v4917_v7 }
0x130b   : > { %2217 = vperm.xlu1 %3344, %v4030_v48  }
0x130d   : > { %v4053_v19 = vpop.permute.xlu1 %972 }
0x130f   : > { %2515 = vperm.xlu1 %3344, %v4051_v18  }
0x1311   : > { %v4056_v52 = vpop.permute.xlu1 %1274 }
0x1313   : > { %3346 = vset.pattern.permute.xlu1 %v4912_v9 }
0x1314   : > { %2235 = vperm.xlu1 %3346, %v4019_v42  }
0x1316   : > { %v4060_v30 = vpop.permute.xlu1 %1293 }
0x1318   : > { %2537 = vperm.xlu1 %3346, %v4051_v18  }
0x131b   : > { %v4063_v63 = vpop.permute.xlu1 %1315 }
0x131c   : > { %2541 = vperm.xlu1 %3346, %v4036_v56  }
0x1320   : > { %3349 = vset.pattern.permute.xlu1 %v4911_v8  ;;  %v4070_v5 = vpop.permute.xlu1 %1035 }
0x1321   : > { %2199 = vperm.xlu1 %3349, %v4067_v53  }
0x1325   : > { %v4074_v28 = vpop.permute.xlu1 %1566  ;;  %3350 = vset.pattern.permute.xlu1 %v4914_v6 }
0x1326   : > { %2482 = vperm.xlu1 %3350, %v3013_v26  }
0x1329   : > { %v4077_v29 = vpop.permute.xlu1 %1571 }
0x132a   : > { %3351 = vset.pattern.permute.xlu1 %v4917_v7 }
0x132e   : > { %v4080_v38 = vpop.permute.xlu1 %1591 }
0x1333   : > { %v4082_v35 = vpop.permute.xlu1 %1868 }
0x1338   : > { %v4084_v62 = vpop.permute.xlu1 %1889 }
0x133c   : > { %v4086_v8 = vpop.permute.xlu1 %1893 }
0x1341   : > { %v4088_v9 = vpop.permute.xlu1 %1613 }
0x1345   : > { %v4090_v46 = vpop.permute.xlu1 %1911 }
0x134a   : > { %v4092_v44 = vpop.permute.xlu1 %1631 }
0x134e   : > { %v4094_v6 = vpop.permute.xlu1 %1933 }
0x134f   : > { %4963 = vst [vmem:[#allocation24_spill] sm:$0xff] %v4094_v6 }
0x1352   : > { %v4096_v33 = vpop.permute.xlu1 %1937 }
0x1353   : > { %4964 = vst [vmem:[#allocation25_spill] sm:$0xff] %v4096_v33 }
0x1357   : > { %v4098_v47 = vpop.permute.xlu1 %1595 }
0x135b   : > { %v2454_v7 = vpop.permute.xlu1 %2453 }
0x135c   : > { %v2456_v1 = vadd.f32 %v2454_v7, %v3863_v20 }
0x135e   : > { %3430 = vtanh.f32 %v2456_v1 }
0x1368   : > { %v3431_v4 = vpop.eup %3430 }
0x1369   : > { %2460 = vrot.lane.b32.xlu1 %v3431_v4, %s3480_s21 }
0x136d   : > { %2221 = vperm.xlu1 %3351, %v4067_v53  }
0x1371   : > { %2523 = vperm.xlu1 %3351, %v3013_v26  }
0x1375   : > { %3353 = vset.pattern.permute.xlu1 %v4965_v3 }
0x1376   : > { %2545 = vperm.xlu1 %3353, %v3013_v26  }
0x13a9   : > { %v825_v2 = vpop.f32.mrb[0].mxu1 }
0x13aa   : > { %v826_v58 = vadd.f32 %v825_v2, %v3802_v27  ;;  %v3094_v49 = vpop.f32.mrb[1].mxu1  ;;  %v4969_v2 = vmov 2   ;;  %v1299_v27 = vrot.slane %v3679_v54, %v3587_v13 }
0x13ab   : > { %v4970_v49 = vmov 0  }
0x13ac   : > { %v4105_v36 = vmax.f32 %v826_v58, 0.0  ;;  %v4971_v58 = vmov 1  }
0x13ad   : > { %v4107_v33 = vpop.f32.mrb[2].mxu1 }
0x13ae   : > { %4966 = vst [vmem:[#allocation26_spill] sm:$0xff] %v4105_v36  ;;  %4967 = vst [vmem:[#allocation27_spill] sm:$0xff] %v4107_v33  ;;  %v845_v7 = vmul.f32 %v4105_v36, %v3805_v32  ;;  %v3097_v20 = vpop.f32.mrb[3].mxu1  ;;  %v997_v33 = vrot.slane %v3659_v11, %v3587_v13 }
0x13b0   : > { %851 = vrot.lane.b32.xlu0 %v845_v7, %s3490_s26  ;;  %v999_v6 = vmul.f32 %v997_v33, %v4011_v40 }
0x13b1   : > { %v4112_v4 = vpop.f32.mrb[4].mxu1 }
0x13b2   : > { %4968 = vst [vmem:[#allocation28_spill] sm:$0xff] %v4112_v4  ;;  %v3100_v1 = vpop.f32.mrb[5].mxu1  ;;  %v978_v4 = vrot.slane %v3659_v11, %v3585_v12 }
0x13b4   : > { %1285 = vperm.xlu0 %3312, %v3928_v10  }
0x13b8   : > { %991 = vperm.xlu0 %3312, %v3936_v16  }
0x13bc   : > { %1587 = vperm.xlu0 %3312, %v3951_v23  }
0x13c0   : > { %3330 = vset.pattern.permute.xlu0 %v4969_v2 }
0x13c1   : > { %1009 = vperm.xlu0 %3330, %v3915_v57  }
0x13c5   : > { %1013 = vperm.xlu0 %3330, %v3936_v16  }
0x13c9   : > { %1609 = vperm.xlu0 %3330, %v3951_v23  }
0x13cd   : > { %1915 = vperm.xlu0 %3330, %v3967_v21  }
0x13d1   : > { %2213 = vperm.xlu0 %3330, %v4019_v42  }
0x13d5   : > { %2519 = vperm.xlu0 %3330, %v4036_v56  }
0x13d9   : > { %3345 = vset.pattern.permute.xlu0 %v4965_v3 }
0x13da   : > { %1027 = vperm.xlu0 %3345, %v3909_v34   ;;  %v4144_v34 = vpop.permute.xlu1 %1878 }
0x13db   : > { %4972 = vst [vmem:[#allocation29_spill] sm:$0xff] %v4144_v34  ;;  %v1301_v34 = vmul.f32 %v1299_v27, %v4022_v45 }
0x13de   : > { %1333 = vperm.xlu0 %3345, %v3919_v0  }
0x13e2   : > { %1337 = vperm.xlu0 %3345, %v3941_v22  }
0x13e6   : > { %1635 = vperm.xlu0 %3345, %v3956_v25  }
0x13ea   : > { %1639 = vperm.xlu0 %3345, %v3978_v31  }
0x13ee   : > { %2239 = vperm.xlu0 %3345, %v4030_v48  }
0x13f2   : > { %3347 = vset.pattern.permute.xlu0 %v4970_v49 }
0x13f3   : > { %967 = vperm.xlu0 %3347, %v3915_v57   ;;  %v4146_v57 = vpop.permute.xlu1 %1617 }
0x13f4   : > { %4973 = vst [vmem:[#allocation30_spill] sm:$0xff] %v4146_v57  ;;  %v4247_v57 = vrot.slane %v3719_v24, %v3587_v13 }
0x13f7   : > { %1264 = vperm.xlu0 %3347, %v3928_v10   ;;  %v4150_v10 = vpop.permute.xlu1 %1919 }
0x13f8   : > { %4975 = vst [vmem:[#allocation32_spill] sm:$0xff] %v4150_v10  ;;  %v1041_v10 = vrot.slane %v3659_v11, %v3591_v17 }
0x13fb   : > { %1873 = vperm.xlu0 %3347, %v3967_v21   ;;  %v4154_v22 = vpop.permute.xlu1 %1941 }
0x13fc   : > { %4976 = vst [vmem:[#allocation33_spill] sm:$0xff] %v4154_v22  ;;  %v1019_v22 = vrot.slane %v3659_v11, %v3589_v15  ;;  %v4229_v11 = vrot.slane %v3699_v37, %v3589_v15 }
0x13ff   : > { %1576 = vperm.xlu0 %3347, %v3978_v31   ;;  %v4160_v21 = vpop.permute.xlu1 %2170 }
0x1400   : > { %4977 = vst [vmem:[#allocation34_spill] sm:$0xff] %v4160_v21  ;;  %v4243_v21 = vrot.slane %v3719_v24, %v3585_v12 }
0x1403   : > { %2175 = vperm.xlu0 %3347, %v4030_v48   ;;  %v4164_v31 = vpop.permute.xlu1 %2191 }
0x1404   : > { %4978 = vst [vmem:[#allocation35_spill] sm:$0xff] %v4164_v31  ;;  %v4266_v31 = vrot.slane %v3739_v59, %v3587_v13 }
0x1407   : > { %2472 = vperm.xlu0 %3347, %v4051_v18   ;;  %v4170_v48 = vpop.permute.xlu1 %2195 }
0x1408   : > { %4979 = vst [vmem:[#allocation36_spill] sm:$0xff] %v4170_v48  ;;  %v4225_v48 = vrot.slane %v3699_v37, %v3587_v13 }
0x140a   : > { %v1603_v13 = vmul.f32 %v4225_v48, %v4080_v38  ;;  %v1904_v38 = vmul.f32 %v4247_v57, %v4084_v62 }
0x140b   : > { %2180 = vperm.xlu0 %3347, %v4067_v53  }
0x140f   : > { %3348 = vset.pattern.permute.xlu0 %v4971_v58 }
0x1410   : > { %1897 = vperm.xlu0 %3348, %v3998_v39  }
0x1414   : > { %2493 = vperm.xlu0 %3348, %v4051_v18   ;;  %v4174_v18 = vpop.permute.xlu1 %2477 }
0x1415   : > { %4980 = vst [vmem:[#allocation37_spill] sm:$0xff] %v4174_v18  ;;  %v998_v18 = vmul.f32 %v997_v33, %v4008_v61  ;;  %v4233_v61 = vrot.slane %v3699_v37, %v3591_v17 }
0x1418   : > { %2501 = vperm.xlu0 %3348, %v3013_v26   ;;  %v4178_v26 = vpop.permute.xlu1 %2497 }
0x1419   : > { %4982 = vst [vmem:[#allocation39_spill] sm:$0xff] %v4178_v26 }
0x141c   : > { %3352 = vset.pattern.permute.xlu0 %v4965_v3  ;;  %v4182_v20 = vpop.permute.xlu1 %2217 }
0x141d   : > { %2243 = vperm.xlu0 %3352, %v4067_v53   ;;  %4984 = vst [vmem:[#allocation41_spill] sm:$0xff] %v4182_v20  ;;  %v979_v20 = vmul.f32 %v978_v4, %v4002_v43 }
0x1420   : > { %v4186_v49 = vpop.permute.xlu1 %2515 }
0x1421   : > { %4985 = vst [vmem:[#allocation42_spill] sm:$0xff] %v4186_v49  ;;  %v1280_v49 = vrot.slane %v3679_v54, %v3585_v12 }
0x1422   : > { %v4148_v0 = vpop.permute.xlu0 %851 }
0x1423   : > { %4974 = vst [vmem:[#allocation31_spill] sm:$0xff] %v4148_v0  ;;  %v1282_v45 = vmul.f32 %v1280_v49, %v4015_v41  ;;  %v4255_v41 = vrot.slane %v3719_v24, %v3591_v17 }
0x1424   : > { %v4190_v0 = vpop.permute.xlu1 %2235 }
0x1425   : > { %4987 = vst [vmem:[#allocation44_spill] sm:$0xff] %v4190_v0  ;;  %v4216_v0 = vrot.slane %v3679_v54, %v3591_v17 }
0x1428   : > { %v4210_v26 = vpop.permute.xlu1 %2537 }
0x1429   : > { %4989 = vst [vmem:[#allocation46_spill] sm:$0xff] %v4210_v26  ;;  %v1020_v26 = vmul.f32 %v1019_v22, %v4026_v50  ;;  %v1001_v50 = vadd.f32 %v998_v18, %v979_v20 }
0x142c   : > { %v4272_v18 = vpop.permute.xlu1 %2541 }
0x1433   : > { %v4152_v16 = vpop.permute.xlu0 %1285 }
0x1437   : > { %v4156_v23 = vpop.permute.xlu0 %991 }
0x143b   : > { %v4158_v25 = vpop.permute.xlu0 %1587 }
0x1440   : > { %v4162_v3 = vpop.permute.xlu0 %1009 }
0x1444   : > { %v4166_v39 = vpop.permute.xlu0 %1013 }
0x1448   : > { %v4168_v42 = vpop.permute.xlu0 %1609 }
0x144c   : > { %v4172_v56 = vpop.permute.xlu0 %1915 }
0x1450   : > { %v4176_v53 = vpop.permute.xlu0 %2213 }
0x1451   : > { %4981 = vst [vmem:[#allocation38_spill] sm:$0xff] %v4176_v53  ;;  %v1302_v53 = vmul.f32 %v1299_v27, %v4060_v30  ;;  %v1283_v30 = vmul.f32 %v1280_v49, %v4056_v52 }
0x1453   : > { %v1305_v20 = vadd.f32 %v1302_v53, %v1283_v30  ;;  %v1646_v30 = vmul.f32 %v4233_v61, %v4092_v44 }
0x1454   : > { %v4180_v7 = vpop.permute.xlu0 %2519 }
0x1455   : > { %4983 = vst [vmem:[#allocation40_spill] sm:$0xff] %v4180_v7  ;;  %v1321_v7 = vrot.slane %v3679_v54, %v3589_v15 }
0x1457   : > { %v1323_v43 = vmul.f32 %v1321_v7, %v4038_v60  ;;  %v1304_v60 = vadd.f32 %v1301_v34, %v1282_v45  ;;  %v1023_v34 = vadd.f32 %v1020_v26, %v1001_v50  ;;  %v1322_v52 = vmul.f32 %v1321_v7, %v4032_v55 }
0x1458   : > { %v1043_v45 = vmul.f32 %v1041_v10, %v4042_v51  ;;  %v1044_v26 = vmul.f32 %v1041_v10, %v4070_v5  ;;  %v1000_v55 = vmul.f32 %v997_v33, %v4156_v23  ;;  %v1021_v51 = vmul.f32 %v1019_v22, %v4162_v3  ;;  %v4295_v23 = vpop.permute.xlu1 %2199 }
0x1459   : > { %v1028_v1 = vpop.permute.xlu0 %1027  ;;  %v1022_v5 = vmul.f32 %v1019_v22, %v4166_v39 }
0x145d   : > { %v4184_v2 = vpop.permute.xlu0 %1333 }
0x1461   : > { %v4188_v58 = vpop.permute.xlu0 %1337 }
0x1462   : > { %4986 = vst [vmem:[#allocation43_spill] sm:$0xff] %v4188_v58  ;;  %v4262_v58 = vrot.slane %v3739_v59, %v3585_v12 }
0x1465   : > { %v4192_v36 = vpop.permute.xlu0 %1635 }
0x1469   : > { %v4194_v32 = vpop.permute.xlu0 %1639 }
0x146a   : > { %4988 = vst [vmem:[#allocation45_spill] sm:$0xff] %v4194_v32  ;;  %v4220_v32 = vrot.slane %v3699_v37, %v3585_v12  ;;  %v4251_v37 = vrot.slane %v3719_v24, %v3589_v15  ;;  %v4270_v24 = vrot.slane %v3739_v59, %v3589_v15  ;;  %v1344_v12 = vmul.f32 %v4216_v0, %v4046_v14 }
0x146b   : > { %v981_v15 = vmul.f32 %v978_v4, %v4053_v19  ;;  %v1602_v19 = vmul.f32 %v4225_v48, %v4158_v25 }
0x146c   : > { %v1584_v53 = vmul.f32 %v4220_v32, %v4077_v29  ;;  %v1583_v14 = vmul.f32 %v4220_v32, %v4074_v28  ;;  %v1300_v29 = vmul.f32 %v1299_v27, %v4152_v16  ;;  %v1624_v28 = vmul.f32 %v4229_v11, %v4168_v42 }
0x146d   : > { %v4235_v54 = vpop.permute.xlu0 %2239  ;;  %v1003_v62 = vadd.f32 %v1000_v55, %v981_v15  ;;  %v1905_v27 = vmul.f32 %v4247_v57, %v4086_v8 }
0x146e   : > { %4990 = vst [vmem:[#allocation47_spill] sm:$0xff] %v4235_v54  ;;  %v1324_v54 = vmul.f32 %v1321_v7, %v4063_v63  ;;  %v1326_v63 = vadd.f32 %v1323_v43, %v1304_v60  ;;  %v1042_v7 = vmul.f32 %v1041_v10, %v1028_v1  ;;  %v1606_v33 = vadd.f32 %v1603_v13, %v1584_v53 }
0x146f   : > { %v1345_v13 = vmul.f32 %v4216_v0, %v4184_v2  ;;  %v1605_v16 = vadd.f32 %v1602_v19, %v1583_v14  ;;  %v1926_v2 = vmul.f32 %v4251_v37, %v4090_v46  ;;  %v4992_v46 = vld [vmem:[#allocation43_spill] sm:$0xff] }
0x1470   : > { %v4281_v59 = vadd.f32 %v1324_v54, %v1305_v20  ;;  %v1045_v25 = vadd.f32 %v1042_v7, %v1023_v34  ;;  %v4308_v54 = vpop.permute.xlu1 %2482  ;;  %v1927_v34 = vmul.f32 %v4251_v37, %v4172_v56 }
0x1471   : > { %v1627_v8 = vadd.f32 %v1624_v28, %v1605_v16  ;;  %v1348_v20 = vadd.f32 %v1345_v13, %v1326_v63 }
0x1472   : > { %v968_v40 = vpop.permute.xlu0 %967 }
0x1473   : > { %v980_v17 = vmul.f32 %v978_v4, %v968_v40 }
0x1475   : > { %v1002_v43 = vadd.f32 %v999_v6, %v980_v17  ;;  %v1885_v6 = vmul.f32 %v4243_v21, %v4082_v35  ;;  %v1625_v17 = vmul.f32 %v4229_v11, %v4088_v9  ;;  %v1647_v9 = vmul.f32 %v4233_v61, %v4192_v36 }
0x1476   : > { %v1265_v4 = vpop.permute.xlu0 %1264  ;;  %v1604_v36 = vmul.f32 %v4225_v48, %v4098_v47  ;;  %v4995_v47 = vld [vmem:[#allocation30_spill] sm:$0xff] }
0x1477   : > { %v1024_v3 = vadd.f32 %v1021_v51, %v1002_v43  ;;  %v1281_v10 = vmul.f32 %v1280_v49, %v1265_v4  ;;  %v1907_v1 = vadd.f32 %v1904_v38, %v1885_v6  ;;  %v1025_v49 = vadd.f32 %v1022_v5, %v1003_v62  ;;  %v4994_v38 = vld [vmem:[#allocation25_spill] sm:$0xff]  ;;  %v4996_v5 = vld [vmem:[#allocation34_spill] sm:$0xff]  ;;  %v4997_v4 = vld [vmem:[#allocation23_spill] sm:$0xff] }
0x1478   : > { %v1628_v60 = vadd.f32 %v1625_v17, %v1606_v33  ;;  %v1346_v51 = vmul.f32 %v4216_v0, %v4992_v46  ;;  %v1949_v19 = vmul.f32 %v4255_v41, %v4994_v38  ;;  %v1626_v48 = vmul.f32 %v4229_v11, %v4995_v47  ;;  %v2461_v33 = vpop.permute.xlu1 %2460  ;;  %v4999_v62 = vld [vmem:[#allocation36_spill] sm:$0xff]  ;;  %v5009_v47 = vld [vmem:[#allocation11_spill] sm:$0xff] }
0x1479   : > { %v1046_v22 = vadd.f32 %v1043_v45, %v1024_v3  ;;  %v1303_v39 = vadd.f32 %v1300_v29, %v1281_v10  ;;  %v1047_v53 = vadd.f32 %v1044_v26, %v1025_v49  ;;  %v2187_v26 = vmul.f32 %v4262_v58, %v4996_v5  ;;  %v4998_v3 = vld [vmem:[#allocation38_spill] sm:$0xff]  ;;  %v5000_v49 = vld [vmem:[#allocation41_spill] sm:$0xff] }
0x147a   : > { %v1874_v35 = vpop.permute.xlu0 %1873  ;;  %v1650_v7 = vadd.f32 %v1647_v9, %v1628_v60  ;;  %v2458_v0 = vsub.f32 1.0, %v4997_v4  ;;  %v1649_v29 = vadd.f32 %v1646_v30, %v1627_v8  ;;  %v1929_v6 = vadd.f32 %v1926_v2, %v1907_v1  ;;  %v5001_v9 = vld [vmem:[#allocation12_spill] sm:$0xff]  ;;  %v5003_v60 = vld [vmem:[#allocation45_spill] sm:$0xff] }
0x147b   : > { %v1325_v15 = vadd.f32 %v1322_v52, %v1303_v39  ;;  %v1886_v42 = vmul.f32 %v4243_v21, %v1874_v35  ;;  %v3354_v50 = vpack.i.bf16 %v1046_v22, %v1045_v25  ;;  %v4991_v52 = vld [vmem:[#allocation35_spill] sm:$0xff]  ;;  %v2207_v11 = vmul.f32 %v4266_v31, %v4999_v62  ;;  %v5004_v30 = vld [vmem:[#allocation44_spill] sm:$0xff]  ;;  %v5010_v5 = vld [vmem:[#allocation37_spill] sm:$0xff] }
0x147c   : > { %v2206_v55 = vmul.f32 %v4266_v31, %v4991_v52  ;;  %v1349_v28 = vadd.f32 %v1346_v51, %v4281_v59  ;;  %v3364_v13 = vpack.i.bf16 %v1650_v7, %v1649_v29  ;;  %v2229_v35 = vmul.f32 %v4270_v24, %v5000_v49  ;;  %v5006_v7 = vld [vmem:[#allocation9_spill] sm:$0xff]  ;;  %v2222_v38 = vpop.permute.xlu1 %2221  ;;  %v5012_v29 = vld [vmem:[#allocation32_spill] sm:$0xff]  ;;  %v5015_v49 = vld [vmem:[#allocation42_spill] sm:$0xff] }
0x147d   : > { %v1347_v40 = vadd.f32 %v1344_v12, %v1325_v15  ;;  %v1908_v45 = vadd.f32 %v1905_v27, %v1886_v42  ;;  %3355 = vrot.lane.b32.xlu1 %v3354_v50, %s3486_s22  ;;  %v4993_v12 = vld [vmem:[#allocation24_spill] sm:$0xff]  ;;  %v5002_v15 = vld [vmem:[#allocation13_spill] sm:$0xff]  ;;  %v2463_v1 = vmul.f32 %v2461_v33, %v2458_v0  ;;  %v1648_v2 = vmul.f32 %v4233_v61, %v5003_v60 }
0x147e   : > { %v1577_v44 = vpop.permute.xlu0 %1576  ;;  %v1948_v14 = vmul.f32 %v4255_v41, %v4993_v12  ;;  %v2209_v17 = vadd.f32 %v2206_v55, %v2187_v26  ;;  %v4348_v42 = vrot.slane %v5002_v15, %v5001_v9  ;;  %v5008_v12 = vld [vmem:[#allocation29_spill] sm:$0xff] }
0x147f   : > { %v1930_v43 = vadd.f32 %v1927_v34, %v1908_v45  ;;  %v1585_v56 = vmul.f32 %v4220_v32, %v1577_v44  ;;  %v3359_v63 = vpack.i.bf16 %v1348_v20, %v1347_v40  ;;  %v2228_v32 = vmul.f32 %v4270_v24, %v4998_v3  ;;  %v5005_v40 = vld [vmem:[#allocation47_spill] sm:$0xff] }
0x1480   : > { %v1951_v16 = vadd.f32 %v1948_v14, %v1929_v6  ;;  %v2250_v8 = vmul.f32 %v4348_v42, %v5004_v30  ;;  %v2464_v34 = vmul.f32 %v4997_v4, %v5002_v15  ;;  %v2251_v45 = vmul.f32 %v4348_v42, %v5005_v40  ;;  %v5011_v4 = vld [vmem:[#allocation39_spill] sm:$0xff]  ;;  %v5017_v40 = vld [vmem:[#allocation14_spill] sm:$0xff] }
0x1481   : > { %v1607_v10 = vadd.f32 %v1604_v36, %v1585_v56  ;;  %3360 = vrot.lane.b32.xlu0 %v3359_v63, %s3486_s22  ;;  %1055 = vrot.lane.b32.xlu1 %v1047_v53, %s3486_s22  ;;  %v1952_v22 = vadd.f32 %v1949_v19, %v1930_v43  ;;  %v2231_v50 = vadd.f32 %v2228_v32, %v2209_v17  ;;  %v5007_v56 = vld [vmem:[#allocation10_spill] sm:$0xff]  ;;  %v5013_v32 = vld [vmem:[#allocation40_spill] sm:$0xff]  ;;  %v5014_v17 = vld [vmem:[#allocation33_spill] sm:$0xff] }
0x1482   : > { %v2176_v25 = vpop.permute.xlu0 %2175  ;;  %v4360_v53 = vadd.f32 %v2464_v34, %v2463_v1  ;;  %v1887_v14 = vmul.f32 %v4243_v21, %v5008_v12  ;;  %v1928_v3 = vmul.f32 %v4251_v37, %v5012_v29  ;;  %v1950_v21 = vmul.f32 %v4255_v41, %v5014_v17 }
0x1483   : > { %v1629_v39 = vadd.f32 %v1626_v48, %v1607_v10  ;;  %v2188_v27 = vmul.f32 %v4262_v58, %v2176_v25  ;;  %v3369_v55 = vpack.i.bf16 %v1952_v22, %v1951_v16  ;;  %v2253_v61 = vadd.f32 %v2250_v8, %v2231_v50  ;;  %v5016_v50 = vld [vmem:[#allocation46_spill] sm:$0xff] }
0x1484   : > { %v2488_v43 = vrot.slane %v4360_v53, %v5006_v7  ;;  %v2507_v63 = vrot.slane %v4360_v53, %v5007_v56  ;;  %v2529_v48 = vrot.slane %v4360_v53, %v5009_v47  ;;  %v2551_v62 = vrot.slane %v4360_v53, %v5001_v9 }
0x1485   : > { %v2210_v59 = vadd.f32 %v2207_v11, %v2188_v27  ;;  %1357 = vrot.lane.b32.xlu0 %v1349_v28, %s3486_s22  ;;  %3365 = vrot.lane.b32.xlu1 %v3364_v13, %s3486_s22  ;;  %v1651_v36 = vadd.f32 %v1648_v2, %v1629_v39  ;;  %v2524_v39 = vpop.permute.xlu1 %2523  ;;  %v2208_v15 = vmul.f32 %v4266_v31, %v4295_v23  ;;  %v5019_v23 = vld [vmem:[#allocation28_spill] sm:$0xff] }
0x1486   : > { %v2473_v20 = vpop.permute.xlu0 %2472  ;;  %v2490_v26 = vmul.f32 %v2488_v43, %v5010_v5  ;;  %v2509_v0 = vmul.f32 %v2507_v63, %v5011_v4  ;;  %v2531_v10 = vmul.f32 %v2529_v48, %v5013_v32  ;;  %v2553_v41 = vmul.f32 %v2551_v62, %v4272_v18  ;;  %v5023_v5 = vld [vmem:[#allocation17_spill] sm:$0xff] }
0x1487   : > { %v2232_v52 = vadd.f32 %v2229_v35, %v2210_v59  ;;  %v2489_v25 = vmul.f32 %v2488_v43, %v2473_v20  ;;  %v2530_v35 = vmul.f32 %v2529_v48, %v5015_v49  ;;  %v2552_v60 = vmul.f32 %v2551_v62, %v5016_v50 }
0x1488   : > { %v2512_v28 = vadd.f32 %v2509_v0, %v2490_v26  ;;  %v2491_v2 = vmul.f32 %v2488_v43, %v4308_v54  ;;  %v2532_v30 = vmul.f32 %v2529_v48, %v2524_v39  ;;  %v2230_v31 = vmul.f32 %v4270_v24, %v2222_v38  ;;  %v5020_v24 = vld [vmem:[#allocation15_spill] sm:$0xff]  ;;  %v5022_v38 = vld [vmem:[#allocation26_spill] sm:$0xff] }
0x1489   : > { %v2254_v46 = vadd.f32 %v2251_v45, %v2232_v52  ;;  %3370 = vrot.lane.b32.xlu0 %v3369_v55, %s3486_s22  ;;  %1659 = vrot.lane.b32.xlu1 %v1651_v36, %s3486_s22  ;;  %v5018_v45 = vld [vmem:[#allocation27_spill] sm:$0xff]  ;;  %v2546_v18 = vpop.permute.xlu1 %2545  ;;  %v836_v52 = vadd.f32 %v5019_v23, %v5017_v40  ;;  %v881_v26 = vmul.f32 %v5022_v38, %v5023_v5  ;;  %v5025_v39 = vld [vmem:[#allocation6_spill] sm:$0xff] }
0x148a   : > { %v2181_v51 = vpop.permute.xlu0 %2180  ;;  %v2534_v27 = vadd.f32 %v2531_v10, %v2512_v28  ;;  %v831_v36 = vadd.f32 %v5018_v45, %v5017_v40 }
0x148b   : > { %v3374_v44 = vpack.i.bf16 %v2254_v46, %v2253_v61  ;;  %v4400_v56 = vmax.f32 %v836_v52, 0.0 }
0x148c   : > { %v2556_v8 = vadd.f32 %v2553_v41, %v2534_v27  ;;  %v4398_v7 = vmax.f32 %v831_v36, 0.0  ;;  %v5026_v27 = vmov 0.0|0.0   ;;  %v5029_v36 = vld [vmem:[#allocation18_spill] sm:$0xff] }
0x148d   : > { %3375 = vrot.lane.b32.xlu1 %v3374_v44, %s3486_s22  ;;  %v2554_v44 = vmul.f32 %v2551_v62, %v2546_v18  ;;  %v883_v0 = vmul.f32 %v4400_v56, %v5023_v5  ;;  %v5024_v62 = vmov 0.0   ;;  %v844_v23 = vmul.f32 %v4400_v56, %v5029_v36 }
0x148e   : > { %v846_v12 = vmul.f32 %v4398_v7, %v5020_v24  ;;  %v882_v4 = vmul.f32 %v4398_v7, %v5023_v5  ;;  %v842_v52 = vmul.f32 %v5022_v38, %v5029_v36 }
0x148f   : > { %v1898_v19 = vpop.permute.xlu0 %1897 }
0x1490   : > { %v1906_v33 = vmul.f32 %v4247_v57, %v1898_v19  ;;  %v2189_v57 = vmul.f32 %v4262_v58, %v2181_v51 }
0x1492   : > { %v1909_v6 = vadd.f32 %v1906_v33, %v1887_v14  ;;  %v2211_v58 = vadd.f32 %v2208_v15, %v2189_v57  ;;  %v847_v14 = vmul.f32 %v4400_v56, %v5020_v24  ;;  %v5027_v15 = vld [vmem:[#allocation7_spill] sm:$0xff] }
0x1493   : > { %v2494_v11 = vpop.permute.xlu0 %2493 }
0x1494   : > { %v1931_v13 = vadd.f32 %v1928_v3, %v1909_v6  ;;  %v2508_v22 = vmul.f32 %v2507_v63, %v2494_v11  ;;  %v2233_v46 = vadd.f32 %v2230_v31, %v2211_v58  ;;  %v843_v31 = vmul.f32 %v4398_v7, %v5029_v36 }
0x1496   : > { %v1953_v16 = vadd.f32 %v1950_v21, %v1931_v13  ;;  %v2511_v37 = vadd.f32 %v2508_v22, %v2489_v25 }
0x1497   : > { %v2502_v1 = vpop.permute.xlu0 %2501 }
0x1498   : > { %v2533_v9 = vadd.f32 %v2530_v35, %v2511_v37  ;;  %v2510_v59 = vmul.f32 %v2507_v63, %v2502_v1  ;;  %1961 = vrot.lane.b32.xlu0 %v1953_v16, %s3486_s22 }
0x149a   : > { %v2555_v34 = vadd.f32 %v2552_v60, %v2533_v9  ;;  %v2513_v20 = vadd.f32 %v2510_v59, %v2491_v2  ;;  %v5028_v60 = vld [vmem:[#allocation8_spill] sm:$0xff] }
0x149c   : > { %v2535_v55 = vadd.f32 %v2532_v30, %v2513_v20  ;;  %v2244_v61 = vpop.permute.xlu0 %2243  ;;  %v3379_v54 = vpack.i.bf16 %v2556_v8, %v2555_v34 }
0x149d   : > { %v2252_v51 = vmul.f32 %v4348_v42, %v2244_v61  ;;  %v5021_v42 = vld [vmem:[#allocation16_spill] sm:$0xff] }
0x149e   : > { %3380 = vrot.lane.b32.xlu0 %v3379_v54, %s3486_s22  ;;  %v2557_v63 = vadd.f32 %v2554_v44, %v2535_v55  ;;  %v863_v19 = vmul.f32 %v5022_v38, %v5021_v42  ;;  %v864_v47 = vmul.f32 %v4398_v7, %v5021_v42  ;;  %v865_v48 = vmul.f32 %v4400_v56, %v5021_v42 }
0x149f   : > { %v2255_v43 = vadd.f32 %v2252_v51, %v2233_v46  ;;  %v5030_v46 = vld [vmem:[#allocation31_spill] sm:$0xff] }
0x14a0   : > { %v860_v51 = vadd.f32 %v5030_v46, %v842_v52 }
0x14a1   : > { %2263 = vrot.lane.b32.xlu1 %v2255_v43, %s3486_s22 }
0x14a2   : > { %2565 = vrot.lane.b32.xlu0 %v2557_v63, %s3486_s22 }
0x14a5   : > { %853 = vrot.lane.b32.xlu1 %v846_v12, %s3490_s26 }
0x14a6   : > { %855 = vrot.lane.b32.xlu0 %v847_v14, %s3490_s26 }
0x14a9   : > { %869 = vrot.lane.b32.xlu1 %v863_v19, %s3492_s28  ;;  %v5031_v19 = vld [vmem:[#allocation19_spill] sm:$0xff] }
0x14aa   : > { %871 = vrot.lane.b32.xlu0 %v864_v47, %s3492_s28 }
0x14ad   : > { %873 = vrot.lane.b32.xlu1 %v865_v48, %s3492_s28 }
0x14ae   : > { %887 = vrot.lane.b32.xlu0 %v881_v26, %s3494_s30 }
0x14b1   : > { %889 = vrot.lane.b32.xlu1 %v882_v4, %s3494_s30 }
0x14b2   : > { %891 = vrot.lane.b32.xlu0 %v883_v0, %s3494_s30 }
0x14ef   : > { %v3356_v33 = vpop.permute.xlu1 %3355 }
0x14f0   : > { %v3358_v29 = vunpack.i.h.bf16 %v3356_v33  ;;  %v3357_v3 = vunpack.i.l.bf16 %v3356_v33 }
0x14f2   : > { %v3198_v32 = vpack.c.bf16 %v3358_v29, %v3357_v3 }
0x14f3   : > { %v3361_v10 = vpop.permute.xlu0 %3360  ;;  %v1056_v6 = vpop.permute.xlu1 %1055 }
0x14f4   : > { %v3363_v17 = vunpack.i.h.bf16 %v3361_v10  ;;  %v3362_v21 = vunpack.i.l.bf16 %v3361_v10  ;;  %3199 = vmatpush3.bf16.msra.mxu0 %v3198_v32 }
0x14f5   : > { %3105 = vmatprep.subr.mxu0 %v5024_v62 }
0x14f6   : > { %v3201_v11 = vpack.c.bf16 %v3363_v17, %v3362_v21 }
0x14f7   : > { %v1358_v28 = vpop.permute.xlu0 %1357  ;;  %v3366_v25 = vpop.permute.xlu1 %3365 }
0x14f8   : > { %v3368_v13 = vunpack.i.h.bf16 %v3366_v25  ;;  %v3367_v22 = vunpack.i.l.bf16 %v3366_v25  ;;  %3106 = vmatpush3.msk.msra.mxu0 %vm435_vm2, %v1056_v6  ;;  %3202 = vmatpush3.bf16.msra.mxu1 %v3201_v11 }
0x14f9   : > { %3108 = vmatmul.mubr.msk.f32.vlgmr.msra.gmra.mrb[6].mxu0 %vm425_vm3, %v5025_v39  ;;  %3120 = vmatprep.subr.mxu1 %v5024_v62 }
0x14fa   : > { %v3204_v57 = vpack.c.bf16 %v3368_v13, %v3367_v22  ;;  %3203 = vmatprep.subr.bf16.mxu0 %v5026_v27  ;;  %3110 = vmatprep.mubr.msk.f32.mxu0 %vm3484_vm1, %v5024_v62 }
0x14fb   : > { %v3371_v16 = vpop.permute.xlu0 %3370  ;;  %v1660_v37 = vpop.permute.xlu1 %1659 }
0x14fc   : > { %v3373_v49 = vunpack.i.h.bf16 %v3371_v16  ;;  %v3372_v35 = vunpack.i.l.bf16 %v3371_v16  ;;  %3121 = vmatpush3.msk.msra.mxu1 %vm435_vm2, %v1358_v28  ;;  %3205 = vmatpush3.bf16.msra.mxu0 %v3204_v57 }
0x14fd   : > { %3111 = vmatmul.mubr.msk.f32.gmra.mrb[8].mxu0 %vm425_vm3, %v5027_v15  ;;  %3123 = vmatmul.mubr.msk.f32.vlgmr.msra.gmra.mrb[6].mxu1 %vm425_vm3, %v5025_v39 }
0x14fe   : > { %v3207_v41 = vpack.c.bf16 %v3373_v49, %v3372_v35  ;;  %3206 = vmatprep.subr.bf16.mxu1 %v5026_v27  ;;  %3135 = vmatprep.subr.mxu0 %v5024_v62 }
0x14ff   : > { %v3376_v1 = vpop.permute.xlu1 %3375  ;;  %3113 = vmatprep.mubr.msk.f32.mxu0 %vm3484_vm1, %v5024_v62  ;;  %3125 = vmatprep.mubr.msk.f32.mxu1 %vm3484_vm1, %v5024_v62 }
0x1500   : > { %v3378_v9 = vunpack.i.h.bf16 %v3376_v1  ;;  %v3377_v50 = vunpack.i.l.bf16 %v3376_v1  ;;  %3136 = vmatpush3.msk.msra.mxu0 %vm435_vm2, %v1660_v37  ;;  %3208 = vmatpush3.bf16.msra.mxu1 %v3207_v41 }
0x1501   : > { %3114 = vmatmul.mubr.msk.f32.gmra.mrb[10].mxu0 %vm425_vm3, %v5028_v60  ;;  %3126 = vmatmul.mubr.msk.f32.gmra.mrb[8].mxu1 %vm425_vm3, %v5027_v15 }
0x1502   : > { %v3210_v2 = vpack.c.bf16 %v3378_v9, %v3377_v50  ;;  %3128 = vmatprep.mubr.msk.f32.mxu1 %vm3484_vm1, %v5024_v62  ;;  %3137 = vmatprep.mubr.msk.f32.mxu0 %vm3484_vm1, %v5024_v62 }
0x1503   : > { %3209 = vmatprep.subr.bf16.mxu0 %v5026_v27  ;;  %3150 = vmatprep.subr.mxu1 %v5024_v62 }
0x1505   : > { %3129 = vmatmul.mubr.msk.f32.gmra.mrb[10].mxu1 %vm425_vm3, %v5028_v60  ;;  %3138 = vmatmul.mubr.msk.f32.vlgmr.msra.gmra.mrb[12].mxu0 %vm425_vm3, %v5025_v39 }
0x1506   : > { %3211 = vmatpush3.bf16.msra.mxu0 %v3210_v2  ;;  %3140 = vmatprep.mubr.msk.f32.mxu0 %vm3484_vm1, %v5024_v62 }
0x1507   : > { %3152 = vmatprep.mubr.msk.f32.mxu1 %vm3484_vm1, %v5024_v62  ;;  %3165 = vmatprep.subr.mxu0 %v5024_v62 }
0x1509   : > { %3141 = vmatmul.mubr.msk.f32.gmra.mrb[14].mxu0 %vm425_vm3, %v5027_v15 }
0x150a   : > { %v1962_v59 = vpop.permute.xlu0 %1961  ;;  %3143 = vmatprep.mubr.msk.f32.mxu0 %vm3484_vm1, %v5024_v62 }
0x150b   : > { %3151 = vmatpush3.msk.msra.mxu1 %vm435_vm2, %v1962_v59 }
0x150c   : > { %3153 = vmatmul.mubr.msk.f32.vlgmr.msra.gmra.mrb[12].mxu1 %vm425_vm3, %v5025_v39  ;;  %3212 = vmatprep.subr.bf16.mxu1 %v5026_v27 }
0x150d   : > { %3144 = vmatmul.mubr.msk.f32.gmra.mrb[16].mxu0 %vm425_vm3, %v5028_v60  ;;  %3155 = vmatprep.mubr.msk.f32.mxu1 %vm3484_vm1, %v5024_v62 }
0x150e   : > { %3167 = vmatprep.mubr.msk.f32.mxu0 %vm3484_vm1, %v5024_v62 }
0x1510   : > { %3156 = vmatmul.mubr.msk.f32.gmra.mrb[14].mxu1 %vm425_vm3, %v5027_v15  ;;  %v3381_v58 = vpop.permute.xlu0 %3380 }
0x1511   : > { %v3383_v30 = vunpack.i.h.bf16 %v3381_v58  ;;  %v3382_v8 = vunpack.i.l.bf16 %v3381_v58  ;;  %3158 = vmatprep.mubr.msk.f32.mxu1 %vm3484_vm1, %v5024_v62 }
0x1513   : > { %v3213_v34 = vpack.c.bf16 %v3383_v30, %v3382_v8  ;;  %v2264_v20 = vpop.permute.xlu1 %2263 }
0x1514   : > { %3159 = vmatmul.mubr.msk.f32.gmra.mrb[16].mxu1 %vm425_vm3, %v5028_v60  ;;  %v2566_v45 = vpop.permute.xlu0 %2565  ;;  %3166 = vmatpush3.msk.msra.mxu0 %vm435_vm2, %v2264_v20 }
0x1515   : > { %3168 = vmatmul.mubr.msk.f32.vlgmr.msra.gmra.mrb[18].mxu0 %vm425_vm3, %v5025_v39  ;;  %3214 = vmatpush3.bf16.msra.mxu1 %v3213_v34 }
0x1516   : > { %3180 = vmatprep.subr.mxu1 %v5024_v62  ;;  %3170 = vmatprep.mubr.msk.f32.mxu0 %vm3484_vm1, %v5024_v62 }
0x1517   : > { %v854_v18 = vpop.permute.xlu1 %853  ;;  %3182 = vmatprep.mubr.msk.f32.mxu1 %vm3484_vm1, %v5024_v62 }
0x1518   : > { %v861_v55 = vadd.f32 %v854_v18, %v843_v31  ;;  %v856_v61 = vpop.permute.xlu0 %855 }
0x1519   : > { %v862_v54 = vadd.f32 %v856_v61, %v844_v23  ;;  %3171 = vmatmul.mubr.msk.f32.gmra.mrb[20].mxu0 %vm425_vm3, %v5027_v15  ;;  %3181 = vmatpush3.msk.msra.mxu1 %vm435_vm2, %v2566_v45 }
0x151a   : > { %3183 = vmatmul.mubr.msk.f32.vlgmr.msra.gmra.mrb[18].mxu1 %vm425_vm3, %v5025_v39  ;;  %3173 = vmatprep.mubr.msk.f32.mxu0 %vm3484_vm1, %v5024_v62 }
0x151b   : > { %v870_v44 = vpop.permute.xlu1 %869  ;;  %3185 = vmatprep.mubr.msk.f32.mxu1 %vm3484_vm1, %v5024_v62 }
0x151c   : > { %v878_v7 = vadd.f32 %v870_v44, %v860_v51  ;;  %v872_v43 = vpop.permute.xlu0 %871 }
0x151d   : > { %v879_v56 = vadd.f32 %v872_v43, %v861_v55  ;;  %3174 = vmatmul.mubr.msk.f32.gmra.mrb[22].mxu0 %vm425_vm3, %v5028_v60 }
0x151e   : > { %3186 = vmatmul.mubr.msk.f32.gmra.mrb[20].mxu1 %vm425_vm3, %v5027_v15 }
0x151f   : > { %v874_v63 = vpop.permute.xlu1 %873  ;;  %3188 = vmatprep.mubr.msk.f32.mxu1 %vm3484_vm1, %v5024_v62 }
0x1520   : > { %v880_v12 = vadd.f32 %v874_v63, %v862_v54  ;;  %v888_v14 = vpop.permute.xlu0 %887 }
0x1521   : > { %v896_v38 = vadd.f32 %v888_v14, %v878_v7 }
0x1522   : > { %3189 = vmatmul.mubr.msk.f32.gmra.mrb[22].mxu1 %vm425_vm3, %v5028_v60 }
0x1523   : > { %v4520_v47 = vadd.f32 %v896_v38, %v5031_v19  ;;  %v890_v48 = vpop.permute.xlu1 %889 }
0x1524   : > { %v897_v26 = vadd.f32 %v890_v48, %v879_v56  ;;  %v892_v4 = vpop.permute.xlu0 %891 }
0x1525   : > { %v898_v0 = vadd.f32 %v892_v4, %v880_v12 }
0x1526   : > { %v4523_v33 = vadd.f32 %v897_v26, %v5031_v19 }
0x1527   : > { %v4526_v29 = vadd.f32 %v898_v0, %v5031_v19 }
0x15cc   : > { %v1127_v3 = vpop.f32.mrb[6].mxu0 }
0x15cd   : > { %v1128_v32 = vadd.f32 %v1127_v3, %v5017_v40  ;;  %v3109_v10 = vpop.f32.mrb[7].mxu0 }
0x15cf   : > { %v4529_v6 = vmax.f32 %v1128_v32, 0.0 }
0x15d0   : > { %v1132_v17 = vpop.f32.mrb[8].mxu0  ;;  %v1429_v21 = vpop.f32.mrb[6].mxu1 }
0x15d1   : > { %v1133_v62 = vadd.f32 %v1132_v17, %v5017_v40  ;;  %v3124_v11 = vpop.f32.mrb[7].mxu1  ;;  %v1147_v28 = vmul.f32 %v4529_v6, %v5020_v24  ;;  %v3112_v25 = vpop.f32.mrb[9].mxu0  ;;  %v1165_v41 = vmul.f32 %v4529_v6, %v5021_v42  ;;  %v1430_v2 = vadd.f32 %v1429_v21, %v5017_v40 }
0x15d2   : > { %v1183_v45 = vmul.f32 %v4529_v6, %v5023_v5 }
0x15d3   : > { %v4534_v13 = vmax.f32 %v1133_v62, 0.0  ;;  %1153 = vrot.lane.b32.xlu1 %v1147_v28, %s3490_s26  ;;  %v4558_v31 = vmax.f32 %v1430_v2, 0.0 }
0x15d4   : > { %v1137_v22 = vpop.f32.mrb[10].mxu0  ;;  %v1434_v39 = vpop.f32.mrb[8].mxu1 }
0x15d5   : > { %v1138_v57 = vadd.f32 %v1137_v22, %v5017_v40  ;;  %v3127_v27 = vpop.f32.mrb[9].mxu1  ;;  %v1148_v16 = vmul.f32 %v4534_v13, %v5020_v24  ;;  %v3115_v37 = vpop.f32.mrb[11].mxu0  ;;  %v1166_v58 = vmul.f32 %v4534_v13, %v5021_v42  ;;  %v1435_v18 = vadd.f32 %v1434_v39, %v5017_v40 }
0x15d6   : > { %v1184_v52 = vmul.f32 %v4534_v13, %v5023_v5  ;;  %v1449_v44 = vmul.f32 %v4558_v31, %v5020_v24  ;;  %v1467_v0 = vmul.f32 %v4558_v31, %v5021_v42  ;;  %v1485_v11 = vmul.f32 %v4558_v31, %v5023_v5 }
0x15d7   : > { %v4540_v49 = vmax.f32 %v1138_v57, 0.0  ;;  %1155 = vrot.lane.b32.xlu0 %v1148_v16, %s3490_s26  ;;  %v4566_v46 = vmax.f32 %v1435_v18, 0.0 }
0x15d8   : > { %v1439_v35 = vpop.f32.mrb[10].mxu1  ;;  %v1731_v15 = vpop.f32.mrb[12].mxu0 }
0x15d9   : > { %v1149_v1 = vmul.f32 %v4540_v49, %v5020_v24  ;;  %v3139_v9 = vpop.f32.mrb[13].mxu0  ;;  %v3130_v50 = vpop.f32.mrb[11].mxu1  ;;  %v1167_v59 = vmul.f32 %v4540_v49, %v5021_v42  ;;  %v1440_v23 = vadd.f32 %v1439_v35, %v5017_v40  ;;  %v1185_v7 = vmul.f32 %v4540_v49, %v5023_v5 }
0x15da   : > { %v1450_v14 = vmul.f32 %v4566_v46, %v5020_v24  ;;  %v1468_v4 = vmul.f32 %v4566_v46, %v5021_v42  ;;  %v1732_v17 = vadd.f32 %v1731_v15, %v5017_v40  ;;  %v1486_v39 = vmul.f32 %v4566_v46, %v5023_v5 }
0x15db   : > { %1171 = vrot.lane.b32.xlu0 %v1165_v41, %s3492_s28  ;;  %1157 = vrot.lane.b32.xlu1 %v1149_v1, %s3490_s26  ;;  %v4568_v51 = vmax.f32 %v1440_v23, 0.0 }
0x15dc   : > { %v1736_v60 = vpop.f32.mrb[14].mxu0  ;;  %v4602_v57 = vmax.f32 %v1732_v17, 0.0 }
0x15dd   : > { %v3142_v30 = vpop.f32.mrb[15].mxu0  ;;  %v1451_v12 = vmul.f32 %v4568_v51, %v5020_v24  ;;  %v1737_v21 = vadd.f32 %v1736_v60, %v5017_v40  ;;  %v1469_v28 = vmul.f32 %v4568_v51, %v5021_v42  ;;  %v1487_v35 = vmul.f32 %v4568_v51, %v5023_v5 }
0x15de   : > { %v1751_v9 = vmul.f32 %v4602_v57, %v5020_v24 }
0x15df   : > { %v2033_v8 = vpop.f32.mrb[12].mxu1  ;;  %1175 = vrot.lane.b32.xlu0 %v1167_v59, %s3492_s28  ;;  %1173 = vrot.lane.b32.xlu1 %v1166_v58, %s3492_s28  ;;  %v4604_v27 = vmax.f32 %v1737_v21, 0.0  ;;  %v1769_v58 = vmul.f32 %v4602_v57, %v5021_v42 }
0x15e0   : > { %v1741_v34 = vpop.f32.mrb[16].mxu0  ;;  %v3154_v20 = vpop.f32.mrb[13].mxu1  ;;  %v2034_v41 = vadd.f32 %v2033_v8, %v5017_v40 }
0x15e1   : > { %v3145_v55 = vpop.f32.mrb[17].mxu0  ;;  %v1742_v16 = vadd.f32 %v1741_v34, %v5017_v40  ;;  %v1752_v50 = vmul.f32 %v4604_v27, %v5020_v24  ;;  %v1770_v34 = vmul.f32 %v4604_v27, %v5021_v42 }
0x15e2   : > { %v4623_v2 = vmax.f32 %v2034_v41, 0.0 }
0x15e3   : > { %v2038_v61 = vpop.f32.mrb[14].mxu1  ;;  %1191 = vrot.lane.b32.xlu0 %v1184_v52, %s3494_s30  ;;  %1189 = vrot.lane.b32.xlu1 %v1183_v45, %s3494_s30  ;;  %v4614_v1 = vmax.f32 %v1742_v16, 0.0 }
0x15e4   : > { %v3157_v54 = vpop.f32.mrb[15].mxu1  ;;  %v2039_v60 = vadd.f32 %v2038_v61, %v5017_v40  ;;  %v2053_v23 = vmul.f32 %v4623_v2, %v5020_v24 }
0x15e5   : > { %v1753_v30 = vmul.f32 %v4614_v1, %v5020_v24 }
0x15e6   : > { %v4632_v8 = vmax.f32 %v2039_v60, 0.0 }
0x15e7   : > { %v2043_v43 = vpop.f32.mrb[16].mxu1  ;;  %1455 = vrot.lane.b32.xlu0 %v1449_v44, %s3490_s26  ;;  %1193 = vrot.lane.b32.xlu1 %v1185_v7, %s3494_s30 }
0x15e8   : > { %v2335_v56 = vpop.f32.mrb[18].mxu0  ;;  %v3160_v63 = vpop.f32.mrb[17].mxu1  ;;  %v2044_v59 = vadd.f32 %v2043_v43, %v5017_v40  ;;  %v2054_v52 = vmul.f32 %v4632_v8, %v5020_v24 }
0x15e9   : > { %v3169_v38 = vpop.f32.mrb[19].mxu0  ;;  %v2336_v45 = vadd.f32 %v2335_v56, %v5017_v40  ;;  %v2071_v63 = vmul.f32 %v4623_v2, %v5021_v42 }
0x15ea   : > { %v4636_v20 = vmax.f32 %v2044_v59, 0.0  ;;  %v1771_v38 = vmul.f32 %v4614_v1, %v5021_v42 }
0x15eb   : > { %1459 = vrot.lane.b32.xlu0 %v1451_v12, %s3490_s26  ;;  %1457 = vrot.lane.b32.xlu1 %v1450_v14, %s3490_s26  ;;  %v4646_v55 = vmax.f32 %v2336_v45, 0.0 }
0x15ec   : > { %v2340_v48 = vpop.f32.mrb[20].mxu0  ;;  %v2055_v44 = vmul.f32 %v4636_v20, %v5020_v24  ;;  %v2073_v14 = vmul.f32 %v4636_v20, %v5021_v42  ;;  %v2091_v21 = vmul.f32 %v4636_v20, %v5023_v5 }
0x15ed   : > { %v4582_v26 = vpop.f32.mrb[18].mxu1  ;;  %v3172_v3 = vpop.f32.mrb[21].mxu0  ;;  %v2341_v18 = vadd.f32 %v2340_v48, %v5017_v40  ;;  %v2355_v43 = vmul.f32 %v4646_v55, %v5020_v24  ;;  %v2391_v41 = vmul.f32 %v4646_v55, %v5023_v5 }
0x15ee   : > { %v3184_v32 = vpop.f32.mrb[19].mxu1  ;;  %v2373_v3 = vmul.f32 %v4646_v55, %v5021_v42  ;;  %v2638_v17 = vadd.f32 %v4582_v26, %v5017_v40 }
0x15ef   : > { %1475 = vrot.lane.b32.xlu0 %v1468_v4, %s3492_s28  ;;  %1473 = vrot.lane.b32.xlu1 %v1467_v0, %s3492_s28  ;;  %v4648_v61 = vmax.f32 %v2341_v18, 0.0  ;;  %v2072_v4 = vmul.f32 %v4632_v8, %v5021_v42  ;;  %v1788_v0 = vmul.f32 %v4604_v27, %v5023_v5  ;;  %v2089_v32 = vmul.f32 %v4623_v2, %v5023_v5 }
0x15f0   : > { %v2345_v10 = vpop.f32.mrb[22].mxu0  ;;  %v1145_v18 = vmul.f32 %v4534_v13, %v5029_v36 }
0x15f1   : > { %v4592_v62 = vpop.f32.mrb[20].mxu1  ;;  %v3175_v25 = vpop.f32.mrb[23].mxu0  ;;  %v2346_v54 = vadd.f32 %v2345_v10, %v5017_v40  ;;  %v2356_v56 = vmul.f32 %v4648_v61, %v5020_v24  ;;  %v2374_v48 = vmul.f32 %v4648_v61, %v5021_v42 }
0x15f2   : > { %v3187_v22 = vpop.f32.mrb[21].mxu1  ;;  %v2392_v25 = vmul.f32 %v4648_v61, %v5023_v5  ;;  %v2643_v16 = vadd.f32 %v4592_v62, %v5017_v40 }
0x15f3   : > { %1491 = vrot.lane.b32.xlu0 %v1485_v11, %s3494_s30  ;;  %1477 = vrot.lane.b32.xlu1 %v1469_v28, %s3492_s28  ;;  %v4655_v7 = vmax.f32 %v2346_v54, 0.0  ;;  %v1787_v11 = vmul.f32 %v4602_v57, %v5023_v5  ;;  %v4701_v28 = vmax.f32 %v2638_v17, 0.0  ;;  %v1789_v22 = vmul.f32 %v4614_v1, %v5023_v5 }
0x15f5   : > { %v4607_v37 = vpop.f32.mrb[22].mxu1  ;;  %v2357_v12 = vmul.f32 %v4655_v7, %v5020_v24  ;;  %v2375_v10 = vmul.f32 %v4655_v7, %v5021_v42  ;;  %v2657_v26 = vmul.f32 %v4701_v28, %v5020_v24  ;;  %v2693_v62 = vmul.f32 %v4701_v28, %v5023_v5 }
0x15f6   : > { %v3190_v15 = vpop.f32.mrb[23].mxu1 }
0x15f7   : > { %1495 = vrot.lane.b32.xlu0 %v1487_v35, %s3494_s30  ;;  %1493 = vrot.lane.b32.xlu1 %v1486_v39, %s3494_s30  ;;  %v2090_v39 = vmul.f32 %v4632_v8, %v5023_v5  ;;  %v2648_v35 = vadd.f32 %v4607_v37, %v5017_v40  ;;  %v2675_v15 = vmul.f32 %v4701_v28, %v5021_v42 }
0x15f8   : > { %v2393_v40 = vmul.f32 %v4655_v7, %v5023_v5 }
0x15fb   : > { %1757 = vrot.lane.b32.xlu1 %v1751_v9, %s3490_s26  ;;  %1759 = vrot.lane.b32.xlu0 %v1752_v50, %s3490_s26  ;;  %v4725_v9 = vmax.f32 %v2643_v16, 0.0  ;;  %v4727_v50 = vmax.f32 %v2648_v35, 0.0 }
0x15fd   : > { %v2659_v37 = vmul.f32 %v4727_v50, %v5020_v24  ;;  %v2658_v60 = vmul.f32 %v4725_v9, %v5020_v24  ;;  %v2677_v59 = vmul.f32 %v4727_v50, %v5021_v42  ;;  %v2694_v24 = vmul.f32 %v4725_v9, %v5023_v5 }
0x15ff   : > { %1775 = vrot.lane.b32.xlu0 %v1769_v58, %s3492_s28  ;;  %1761 = vrot.lane.b32.xlu1 %v1753_v30, %s3490_s26  ;;  %v2676_v58 = vmul.f32 %v4725_v9, %v5021_v42  ;;  %v2695_v30 = vmul.f32 %v4727_v50, %v5023_v5  ;;  %v1144_v42 = vmul.f32 %v4529_v6, %v5029_v36 }
0x1600   : > { %v1146_v5 = vmul.f32 %v4540_v49, %v5029_v36  ;;  %v1446_v49 = vmul.f32 %v4558_v31, %v5029_v36 }
0x1603   : > { %2059 = vrot.lane.b32.xlu0 %v2053_v23, %s3490_s26  ;;  %1777 = vrot.lane.b32.xlu1 %v1770_v34, %s3492_s28 }
0x1607   : > { %2063 = vrot.lane.b32.xlu0 %v2055_v44, %s3490_s26  ;;  %2061 = vrot.lane.b32.xlu1 %v2054_v52, %s3490_s26 }
0x160b   : > { %2361 = vrot.lane.b32.xlu1 %v2355_v43, %s3490_s26  ;;  %2363 = vrot.lane.b32.xlu0 %v2356_v56, %s3490_s26 }
0x160f   : > { %2077 = vrot.lane.b32.xlu0 %v2071_v63, %s3492_s28  ;;  %2365 = vrot.lane.b32.xlu1 %v2357_v12, %s3490_s26 }
0x1613   : > { %2081 = vrot.lane.b32.xlu0 %v2073_v14, %s3492_s28  ;;  %1779 = vrot.lane.b32.xlu1 %v1771_v38, %s3492_s28 }
0x1617   : > { %2381 = vrot.lane.b32.xlu0 %v2374_v48, %s3492_s28  ;;  %2079 = vrot.lane.b32.xlu1 %v2072_v4, %s3492_s28 }
0x161b   : > { %1795 = vrot.lane.b32.xlu0 %v1788_v0, %s3494_s30  ;;  %2379 = vrot.lane.b32.xlu1 %v2373_v3, %s3492_s28 }
0x161f   : > { %2095 = vrot.lane.b32.xlu0 %v2089_v32, %s3494_s30  ;;  %2383 = vrot.lane.b32.xlu1 %v2375_v10, %s3492_s28 }
0x1623   : > { %2099 = vrot.lane.b32.xlu0 %v2091_v21, %s3494_s30  ;;  %1793 = vrot.lane.b32.xlu1 %v1787_v11, %s3494_s30  ;;  %v1448_v11 = vmul.f32 %v4568_v51, %v5029_v36 }
0x1627   : > { %2399 = vrot.lane.b32.xlu0 %v2392_v25, %s3494_s30  ;;  %1797 = vrot.lane.b32.xlu1 %v1789_v22, %s3494_s30  ;;  %v1447_v25 = vmul.f32 %v4566_v46, %v5029_v36 }
0x162b   : > { %2663 = vrot.lane.b32.xlu0 %v2657_v26, %s3490_s26  ;;  %2097 = vrot.lane.b32.xlu1 %v2090_v39, %s3494_s30 }
0x162f   : > { %2681 = vrot.lane.b32.xlu0 %v2675_v15, %s3492_s28  ;;  %2397 = vrot.lane.b32.xlu1 %v2391_v41, %s3494_s30 }
0x1633   : > { %2699 = vrot.lane.b32.xlu0 %v2693_v62, %s3494_s30  ;;  %2401 = vrot.lane.b32.xlu1 %v2393_v40, %s3494_s30 }
0x1637   : > { %2667 = vrot.lane.b32.xlu0 %v2659_v37, %s3490_s26  ;;  %2665 = vrot.lane.b32.xlu1 %v2658_v60, %s3490_s26 }
0x163b   : > { %2685 = vrot.lane.b32.xlu0 %v2677_v59, %s3492_s28  ;;  %2683 = vrot.lane.b32.xlu1 %v2676_v58, %s3492_s28 }
0x163f   : > { %2703 = vrot.lane.b32.xlu0 %v2695_v30, %s3494_s30  ;;  %2701 = vrot.lane.b32.xlu1 %v2694_v24, %s3494_s30 }
0x1643   : > { %2715 = vrot.lane.b32.xlu1 %v4360_v53, %s3486_s22 }
0x1645   : > { %v1154_v34 = vpop.permute.xlu1 %1153 }
0x1646   : > { %v1162_v45 = vadd.f32 %v1154_v34, %v1144_v42  ;;  %v1748_v34 = vmul.f32 %v4602_v57, %v5029_v36 }
0x1649   : > { %v1156_v23 = vpop.permute.xlu0 %1155 }
0x164a   : > { %v1163_v52 = vadd.f32 %v1156_v23, %v1145_v18 }
0x164d   : > { %v1172_v54 = vpop.permute.xlu0 %1171  ;;  %v1158_v44 = vpop.permute.xlu1 %1157 }
0x164e   : > { %v1180_v43 = vadd.f32 %v1172_v54, %v1162_v45  ;;  %v1164_v56 = vadd.f32 %v1158_v44, %v1146_v5  ;;  %v1749_v45 = vmul.f32 %v4604_v27, %v5029_v36  ;;  %v2050_v27 = vmul.f32 %v4623_v2, %v5029_v36 }
0x1651   : > { %v1176_v63 = vpop.permute.xlu0 %1175  ;;  %v1174_v12 = vpop.permute.xlu1 %1173 }
0x1652   : > { %v1182_v53 = vadd.f32 %v1176_v63, %v1164_v56  ;;  %v1181_v14 = vadd.f32 %v1174_v12, %v1163_v52 }
0x1655   : > { %v1192_v38 = vpop.permute.xlu0 %1191  ;;  %v1190_v6 = vpop.permute.xlu1 %1189 }
0x1656   : > { %v1199_v48 = vadd.f32 %v1192_v38, %v1181_v14  ;;  %v1198_v4 = vadd.f32 %v1190_v6, %v1180_v43 }
0x1658   : > { %v4762_v0 = vadd.f32 %v1199_v48, %v5031_v19  ;;  %v4765_v13 = vadd.f32 %v1198_v4, %v5031_v19 }
0x1659   : > { %v1456_v3 = vpop.permute.xlu0 %1455  ;;  %v1194_v32 = vpop.permute.xlu1 %1193 }
0x165a   : > { %v1464_v10 = vadd.f32 %v1456_v3, %v1446_v49  ;;  %v1200_v17 = vadd.f32 %v1194_v32, %v1182_v53 }
0x165c   : > { %v4770_v21 = vadd.f32 %v1200_v17, %v5031_v19 }
0x165d   : > { %v1460_v22 = vpop.permute.xlu0 %1459  ;;  %v1458_v26 = vpop.permute.xlu1 %1457 }
0x165e   : > { %v1466_v39 = vadd.f32 %v1460_v22, %v1448_v11  ;;  %v1465_v16 = vadd.f32 %v1458_v26, %v1447_v25  ;;  %v2052_v25 = vmul.f32 %v4636_v20, %v5029_v36 }
0x1661   : > { %v1476_v35 = vpop.permute.xlu0 %1475  ;;  %v1474_v15 = vpop.permute.xlu1 %1473 }
0x1662   : > { %v1483_v31 = vadd.f32 %v1476_v35, %v1465_v16  ;;  %v1482_v41 = vadd.f32 %v1474_v15, %v1464_v10 }
0x1665   : > { %v1492_v62 = vpop.permute.xlu0 %1491  ;;  %v1478_v40 = vpop.permute.xlu1 %1477 }
0x1666   : > { %v1500_v37 = vadd.f32 %v1492_v62, %v1482_v41  ;;  %v1484_v60 = vadd.f32 %v1478_v40, %v1466_v39  ;;  %v2353_v41 = vmul.f32 %v4648_v61, %v5029_v36 }
0x1668   : > { %v4777_v59 = vadd.f32 %v1500_v37, %v5031_v19 }
0x1669   : > { %v1496_v58 = vpop.permute.xlu0 %1495  ;;  %v1494_v51 = vpop.permute.xlu1 %1493 }
0x166a   : > { %v1502_v30 = vadd.f32 %v1496_v58, %v1484_v60  ;;  %v1501_v24 = vadd.f32 %v1494_v51, %v1483_v31  ;;  %v1750_v31 = vmul.f32 %v4614_v1, %v5029_v36 }
0x166c   : > { %v4780_v46 = vadd.f32 %v1502_v30, %v5031_v19  ;;  %v4783_v42 = vadd.f32 %v1501_v24, %v5031_v19  ;;  %v2051_v24 = vmul.f32 %v4632_v8, %v5029_v36 }
0x166d   : > { %v1758_v18 = vpop.permute.xlu1 %1757  ;;  %v1760_v23 = vpop.permute.xlu0 %1759 }
0x166e   : > { %v1766_v52 = vadd.f32 %v1758_v18, %v1748_v34  ;;  %v1767_v5 = vadd.f32 %v1760_v23, %v1749_v45 }
0x1671   : > { %v1776_v54 = vpop.permute.xlu0 %1775  ;;  %v1762_v44 = vpop.permute.xlu1 %1761 }
0x1672   : > { %v1784_v2 = vadd.f32 %v1776_v54, %v1766_v52  ;;  %v1768_v60 = vadd.f32 %v1762_v44, %v1750_v31  ;;  %v2352_v44 = vmul.f32 %v4646_v55, %v5029_v36 }
0x1675   : > { %v2060_v43 = vpop.permute.xlu0 %2059  ;;  %v1778_v56 = vpop.permute.xlu1 %1777 }
0x1676   : > { %v1785_v3 = vadd.f32 %v1778_v56, %v1767_v5  ;;  %v2068_v17 = vadd.f32 %v2060_v43, %v2050_v27 }
0x1679   : > { %v2064_v63 = vpop.permute.xlu0 %2063  ;;  %v2062_v12 = vpop.permute.xlu1 %2061 }
0x167a   : > { %v2070_v35 = vadd.f32 %v2064_v63, %v2052_v25  ;;  %v2069_v52 = vadd.f32 %v2062_v12, %v2051_v24 }
0x167d   : > { %v2362_v53 = vpop.permute.xlu1 %2361  ;;  %v2364_v14 = vpop.permute.xlu0 %2363 }
0x167e   : > { %v2371_v58 = vadd.f32 %v2364_v14, %v2353_v41 }
0x1681   : > { %v2078_v38 = vpop.permute.xlu0 %2077  ;;  %v2366_v6 = vpop.permute.xlu1 %2365 }
0x1682   : > { %v2086_v22 = vadd.f32 %v2078_v38, %v2068_v17  ;;  %v2370_v38 = vadd.f32 %v2362_v53, %v2352_v44 }
0x1685   : > { %v2082_v48 = vpop.permute.xlu0 %2081  ;;  %v1780_v4 = vpop.permute.xlu1 %1779 }
0x1686   : > { %v2088_v62 = vadd.f32 %v2082_v48, %v2070_v35  ;;  %v1786_v34 = vadd.f32 %v1780_v4, %v1768_v60  ;;  %v2354_v4 = vmul.f32 %v4655_v7, %v5029_v36 }
0x1689   : > { %v2382_v57 = vpop.permute.xlu0 %2381  ;;  %v2080_v49 = vpop.permute.xlu1 %2079 }
0x168a   : > { %v2389_v45 = vadd.f32 %v2382_v57, %v2371_v58  ;;  %v2087_v43 = vadd.f32 %v2080_v49, %v2069_v52  ;;  %v2654_v57 = vmul.f32 %v4701_v28, %v5029_v36 }
0x168d   : > { %v1796_v32 = vpop.permute.xlu0 %1795  ;;  %v2380_v10 = vpop.permute.xlu1 %2379 }
0x168e   : > { %v1803_v11 = vadd.f32 %v1796_v32, %v1785_v3  ;;  %v2388_v12 = vadd.f32 %v2380_v10, %v2370_v38  ;;  %v2372_v3 = vadd.f32 %v2366_v6, %v2354_v4  ;;  %v2655_v6 = vmul.f32 %v4725_v9, %v5029_v36 }
0x1690   : > { %v4794_v26 = vadd.f32 %v1803_v11, %v5031_v19 }
0x1691   : > { %v2096_v39 = vpop.permute.xlu0 %2095  ;;  %v2384_v16 = vpop.permute.xlu1 %2383 }
0x1692   : > { %v2104_v15 = vadd.f32 %v2096_v39, %v2086_v22  ;;  %v2390_v11 = vadd.f32 %v2384_v16, %v2372_v3 }
0x1694   : > { %v4801_v40 = vadd.f32 %v2104_v15, %v5031_v19 }
0x1695   : > { %v2100_v20 = vpop.permute.xlu0 %2099  ;;  %v1794_v37 = vpop.permute.xlu1 %1793 }
0x1696   : > { %v2106_v51 = vadd.f32 %v2100_v20, %v2088_v62  ;;  %v1802_v30 = vadd.f32 %v1794_v37, %v1784_v2  ;;  %v2656_v2 = vmul.f32 %v4727_v50, %v5029_v36 }
0x1698   : > { %v4806_v1 = vadd.f32 %v2106_v51, %v5031_v19  ;;  %v1805_v61 = vadd.f32 %v1802_v30, %v5031_v19 }
0x1699   : > { %v2400_v18 = vpop.permute.xlu0 %2399  ;;  %v1798_v23 = vpop.permute.xlu1 %1797 }
0x169a   : > { %v2407_v5 = vadd.f32 %v2400_v18, %v2389_v45  ;;  %v1804_v54 = vadd.f32 %v1798_v23, %v1786_v34 }
0x169c   : > { %v4812_v56 = vadd.f32 %v2407_v5, %v5031_v19  ;;  %v4815_v8 = vadd.f32 %v1804_v54, %v5031_v19 }
0x169d   : > { %v2664_v63 = vpop.permute.xlu0 %2663  ;;  %v2098_v14 = vpop.permute.xlu1 %2097 }
0x169e   : > { %v2105_v48 = vadd.f32 %v2098_v14, %v2087_v43  ;;  %v2672_v32 = vadd.f32 %v2664_v63, %v2654_v57 }
0x16a0   : > { %v2108_v55 = vadd.f32 %v2105_v48, %v5031_v19 }
0x16a1   : > { %v2682_v49 = vpop.permute.xlu0 %2681  ;;  %v2398_v27 = vpop.permute.xlu1 %2397 }
0x16a2   : > { %v2406_v17 = vadd.f32 %v2398_v27, %v2388_v12  ;;  %v2690_v25 = vadd.f32 %v2682_v49, %v2672_v32 }
0x16a4   : > { %v2409_v22 = vadd.f32 %v2406_v17, %v5031_v19 }
0x16a5   : > { %v2700_v53 = vpop.permute.xlu0 %2699  ;;  %v2402_v39 = vpop.permute.xlu1 %2401 }
0x16a6   : > { %v2708_v35 = vadd.f32 %v2700_v53, %v2690_v25  ;;  %v2408_v15 = vadd.f32 %v2402_v39, %v2390_v11 }
0x16a8   : > { %v2711_v7 = vadd.f32 %v2708_v35, %v5031_v19  ;;  %v2411_v10 = vadd.f32 %v2408_v15, %v5031_v19 }
0x16a9   : > { %v2668_v28 = vpop.permute.xlu0 %2667  ;;  %v2666_v31 = vpop.permute.xlu1 %2665 }
0x16aa   : > { %v2674_v62 = vadd.f32 %v2668_v28, %v2656_v2  ;;  %v2673_v20 = vadd.f32 %v2666_v31, %v2655_v6 }
0x16ad   : > { %v2686_v16 = vpop.permute.xlu0 %2685  ;;  %v2684_v41 = vpop.permute.xlu1 %2683 }
0x16ae   : > { %v2692_v37 = vadd.f32 %v2686_v16, %v2674_v62  ;;  %v2691_v60 = vadd.f32 %v2684_v41, %v2673_v20 }
0x16b0   : > { %2723 = sbr.rel (%p3018_p6) target bundleno = 5815 (0x16b7), region = 44 }
0x16b1   : > { %v2704_v58 = vpop.permute.xlu0 %2703  ;;  %v2702_v51 = vpop.permute.xlu1 %2701 }
0x16b2   : > { %v2710_v30 = vadd.f32 %v2704_v58, %v2692_v37  ;;  %v2709_v24 = vadd.f32 %v2702_v51, %v2691_v60 }
0x16b4   : > { %v2713_v34 = vadd.f32 %v2710_v30, %v5031_v19  ;;  %v2712_v45 = vadd.f32 %v2709_v24, %v5031_v19 }
0x16b5   : > { %v2716_v18 = vpop.permute.xlu1 %2715 }
0x16b6   : > { %2719 = vst.msk [vmem:[#allocation2] sm:$0xf] %vm2718_vm4, %v2716_v18  ;;  %2724 = vst.msk [vmem:[#allocation3] sm:$0xf] (!%p3018_p6), %vm2718_vm4, %v2716_v18 }
0x16b7 PF: > { %s3495_s6 = smov 1   ;;  %s3496_s7 = smov 3   ;;  %vm2809_vm5 = vcmask 7168   ;;  %vm2813_vm6 = vcmask 15360   ;;  %vm2817_vm7 = vcmask 23552   ;;  %vm2821_vm8 = vcmask 31744  }
0x16b8   : > { %2730 = vrot.lane.b32.xlu1 %v4523_v33, %s3495_s6  ;;  %2728 = vrot.lane.b32.xlu0 %v4520_v47, %s3495_s6  ;;  %s3497_s8 = smov 2   ;;  %s3498_s9 = smov 5   ;;  %vm2825_vm9 = vcmask 39936   ;;  %vm2829_vm10 = vcmask 48128   ;;  %vm2833_vm11 = vcmask 56320   ;;  %v5034_v57 = vld [vmem:[#allocation22_spill] sm:$0xff] }
0x16b9   : > { %s3499_s10 = smov 6   ;;  %s3500_s12 = smov 7  }
0x16ba   : > { %p3220_p7 = scmp.eq.s32.totalorder %s3538_s19, 3  ;;  %s3501_s13 = smov [#allocation3]  }
0x16bb   : > { %s2884_s14 = sshll.u32 %s3501_s13, 4  ;;  %s2885_s14 = int_to_ptr.vmem [resolvable:$true] %s2884_s14 }
0x16bc   : > { %2752 = vrot.lane.b32.xlu1 %v4777_v59, %s3496_s7  ;;  %2740 = vrot.lane.b32.xlu0 %v4765_v13, %s3497_s8  ;;  %p3439_p11 = scmp.lt.s32.totalorder %s2885_s14, %s2885_s14 }
0x16c0   : > { %2764 = vrot.lane.b32.xlu1 %v1805_v61, %s3474_s15  ;;  %2742 = vrot.lane.b32.xlu0 %v4762_v0, %s3497_s8 }
0x16c4   : > { %2754 = vrot.lane.b32.xlu1 %v4783_v42, %s3496_s7  ;;  %2732 = vrot.lane.b32.xlu0 %v4526_v29, %s3495_s6  ;;  %v5032_v42 = vld [vmem:[#allocation20_spill] sm:$0xff] }
0x16c8   : > { %2744 = vrot.lane.b32.xlu1 %v4770_v21, %s3497_s8  ;;  %2776 = vrot.lane.b32.xlu0 %v4801_v40, %s3498_s9 }
0x16cc   : > { %2788 = vrot.lane.b32.xlu1 %v2409_v22, %s3499_s10  ;;  %2766 = vrot.lane.b32.xlu0 %v4794_v26, %s3474_s15 }
0x16d0   : > { %2778 = vrot.lane.b32.xlu1 %v2108_v55, %s3498_s9  ;;  %2756 = vrot.lane.b32.xlu0 %v4780_v46, %s3496_s7 }
0x16d4   : > { %2768 = vrot.lane.b32.xlu1 %v4815_v8, %s3474_s15  ;;  %2800 = vrot.lane.b32.xlu0 %v2711_v7, %s3500_s12  ;;  %v5033_v8 = vld [vmem:[#allocation21_spill] sm:$0xff]  ;;  %s3432_s15 = scalar_lea.vmem %s2885_s14, 64 }
0x16d5   : > { %p3433_p8 = scmp.ne.s32.totalorder %s2885_s14, %s3432_s15  ;;  %p3440_p12 = scmp.lt.s32.totalorder %s3432_s15, %s3432_s15 }
0x16d7   : > { %p3434_p9 = pnand %p3433_p8, %p3220_p7  ;;  %p3441_p13 = por %p3440_p12, %p3439_p11 }
0x16d8   : > { %2780 = vrot.lane.b32.xlu1 %v4806_v1, %s3498_s9  ;;  %2790 = vrot.lane.b32.xlu0 %v4812_v56, %s3499_s10 }
0x16d9   : > { %p3435_p10 = pneg %p3434_p9 }
0x16db   : > { %p3442_p0 = pnand %p3441_p13, %p3435_p10 }
0x16dc   : > { %2792 = vrot.lane.b32.xlu1 %v2411_v10, %s3499_s10  ;;  %2802 = vrot.lane.b32.xlu0 %v2712_v45, %s3500_s12 }
0x16e0   : > { %2804 = vrot.lane.b32.xlu0 %v2713_v34, %s3500_s12 }
0x172a   : > { %v2731_v36 = vpop.permute.xlu1 %2730  ;;  %v2729_v19 = vpop.permute.xlu0 %2728 }
0x172b   : > { %v2810_v26 = vsel %vm2809_vm5, %v5032_v42, %v2729_v19  ;;  %v2811_v63 = vsel %vm2809_vm5, %v5033_v8, %v2731_v36 }
0x172e   : > { %v2753_v47 = vpop.permute.xlu1 %2752  ;;  %v2741_v33 = vpop.permute.xlu0 %2740 }
0x172f   : > { %v2814_v40 = vsel %vm2813_vm6, %v2810_v26, %v2741_v33 }
0x1730   : > { %v2818_v23 = vsel %vm2817_vm7, %v2814_v40, %v2753_v47 }
0x1732   : > { %v2765_v29 = vpop.permute.xlu1 %2764  ;;  %v2743_v9 = vpop.permute.xlu0 %2742 }
0x1733   : > { %v2822_v52 = vsel %vm2821_vm8, %v2818_v23, %v2765_v29  ;;  %v2815_v14 = vsel %vm2813_vm6, %v2811_v63, %v2743_v9 }
0x1736   : > { %v2755_v50 = vpop.permute.xlu1 %2754  ;;  %v2733_v0 = vpop.permute.xlu0 %2732 }
0x1737   : > { %v2819_v4 = vsel %vm2817_vm7, %v2815_v14, %v2755_v50  ;;  %v2812_v55 = vsel %vm2809_vm5, %v5034_v57, %v2733_v0 }
0x173a   : > { %v2745_v13 = vpop.permute.xlu1 %2744  ;;  %v2777_v21 = vpop.permute.xlu0 %2776 }
0x173b   : > { %v2826_v5 = vsel %vm2825_vm9, %v2822_v52, %v2777_v21 }
0x173e   : > { %v2789_v59 = vpop.permute.xlu1 %2788  ;;  %v2767_v46 = vpop.permute.xlu0 %2766 }
0x173f   : > { %v2830_v54 = vsel %vm2829_vm10, %v2826_v5, %v2789_v59  ;;  %v2823_v12 = vsel %vm2821_vm8, %v2819_v4, %v2767_v46 }
0x1742   : > { %v2779_v1 = vpop.permute.xlu1 %2778  ;;  %v2757_v61 = vpop.permute.xlu0 %2756 }
0x1743   : > { %v2827_v49 = vsel %vm2825_vm9, %v2823_v12, %v2779_v1 }
0x1746   : > { %v2769_v44 = vpop.permute.xlu1 %2768  ;;  %v2801_v43 = vpop.permute.xlu0 %2800 }
0x1747   : > { %v2834_v56 = vsel %vm2833_vm11, %v2830_v54, %v2801_v43 }
0x1748   : > { %2837 = vxpose.xlu1.b32.start [1/3] (short) (narrow) %v2834_v56, 8 }
0x174a   : > { %v2781_v38 = vpop.permute.xlu1 %2780  ;;  %v2791_v48 = vpop.permute.xlu0 %2790 }
0x174b   : > { %3445 = shalt.err (!%p3442_p0)
}
0x174c   : > { %s3446_s20 = scalar_lea.hbm %s4906_s5, 64 }
0x174d   : > { %p3447_p1 = scmp.ne.s32.totalorder %s4906_s5, %s3446_s20  ;;  %p3452_p4 = scmp.lt.u32.totalorder %s3446_s20, %s4906_s5 }
0x174f   : > { %p3448_p2 = pnand %p3447_p1, %p3220_p7 }
0x1751   : > { %p3449_p3 = pneg %p3448_p2 }
0x1753   : > { %p3454_p5 = pnand %p3452_p4, %p3449_p3 }
0x1755   : > { %3457 = shalt.err (!%p3454_p5)
}
0x1756   : > { %3217 = dma.vmem_to_hbm [thread:$0]  (%p3220_p7), %s2885_s14, 64, %s4906_s5, [#allocation4]   ;;  %v2816_v27 = vsel %vm2813_vm6, %v2812_v55, %v2745_v13  ;;  %v2831_v3 = vsel %vm2829_vm10, %v2827_v49, %v2791_v48  ;;  %v2803_v32 = vpop.permute.xlu0 %2802  ;;  %v2793_v11 = vpop.permute.xlu1 %2792 }
0x1757   : > { %v2820_v17 = vsel %vm2817_vm7, %v2816_v27, %v2757_v61  ;;  %v2835_v25 = vsel %vm2833_vm11, %v2831_v3, %v2803_v32 }
0x1758   : > { %v2824_v22 = vsel %vm2821_vm8, %v2820_v17, %v2769_v44  ;;  %2838 = vxpose.xlu1.b32.cont [2/3] (short) (narrow) %v2835_v25, 8 }
0x1759   : > { %v2828_v53 = vsel %vm2825_vm9, %v2824_v22, %v2781_v38 }
0x175a   : > { %v2832_v39 = vsel %vm2829_vm10, %v2828_v53, %v2793_v11  ;;  %v2805_v35 = vpop.permute.xlu0 %2804 }
0x175b   : > { %v2836_v15 = vsel %vm2833_vm11, %v2832_v39, %v2805_v35 }
0x175c   : > { %2839 = vxpose.xlu1.b32.end [3/3] (short) (narrow) %v2836_v15, 8 }
0x17d4   : > { %v2853_v7 = vpop.trf.xlu1 }
0x17d5   : > { %2869 = vst.msk [vmem:[%s3571_s11] sm:$0xff] %vm425_vm3, %v2853_v7 }
0x17d6   : > { %3463 = dma.done.wait (%p3220_p7), [#allocation4], 64  }
0x17d7   : > { %3465 = vsyncadd (%p3220_p7), [#allocation4], 4294967232 }
0x17d8 PF: > { %s17_s18 = sadd.s32 1, %s3468_s18  }
0x17d9   : > { %p14_p6 = scmp.ge.s32.totalorder %s17_s18, 6  }
0x17db   :  { %16 = sbr.rel (!%p14_p6) target bundleno = 1 (0x1), region = 90 }
0x17e2   :  { %2904 = vsyncpa [#allocation4], 1 }
0x17e3   :  { %2906 = vsyncpa [#allocation4 + $0x1], 1 }

</bundles_post_ra>
